<compile_context>
chip_gen: v6e
topology: v6e:2x2x1
jax: 0.10.0
libtpu: 0.0.40
codegen_flags: <defaults>
</compile_context>

<pallas_src>
import functools

import jax
import jax.numpy as jnp
from jax.experimental import pallas as pl
from jax.experimental.pallas import tpu as pltpu


def _round_up(a, b):
    return (a + b - 1) // b * b


def _cdiv(a, b):
    return (a + b - 1) // b


# --------------------------------------------------------------------------
# Pass A: in-kernel im2col (k*k shifted row views of the padded-input slab)
#         -> k*k small MXU matmuls (f32 acc) -> narrow conv tile + per-tile
#         partial BN statistics over the valid output positions only.
# --------------------------------------------------------------------------
def conv_stats_kernel(slab_ref, w_ref, mask_ref, conv_ref, stats_ref, *,
                      ksize, w_padded):
    """slab_ref  : (1, tile+halo, Cin)   padded-input rows for this tile (+halo)
       w_ref     : (k*k, Cin, oup)       conv weight, one (Cin,oup) slice per tap
       mask_ref  : (tile, 1)   f32       1.0 where the row is a real output pos
       conv_ref  : (tile, oup) f32       conv output tile (true channel width)
       stats_ref : (1, 8, oup) f32       row0 = tile mean, row1 = centered sum-sq
    """
    tile, oup = conv_ref.shape
    slab = slab_ref[0]                                       # (tile+halo, Cin)

    acc = jnp.zeros((tile, oup), jnp.float32)
    for kh in range(ksize):                                  # static unroll: k*k taps
        for kw in range(ksize):
            d = kh * w_padded + kw                           # row shift of this tap
            acc += jnp.dot(slab[d:d + tile, :], w_ref[kh * ksize + kw],
                           preferred_element_type=jnp.float32)
    conv_ref[...] = acc

    # Partial BN statistics (Chan/Welford pieces) over the valid rows only.
    mask = mask_ref[...]                                     # (tile, 1) of {0,1}
    cnt = jnp.maximum(jnp.sum(mask), 1.0)
    m_t = jnp.sum(acc * mask, axis=0, keepdims=True) / cnt   # (1, oup)
    d_c = (acc - m_t) * mask
    m2_t = jnp.sum(d_c * d_c, axis=0, keepdims=True)         # (1, oup)
    stats_ref[...] = jnp.pad(jnp.concatenate([m_t, m2_t], axis=0),
                             ((0, 6), (0, 0)))[None]         # (1, 8, oup)


# --------------------------------------------------------------------------
# Pass B: y = conv*scale + shift ; PReLU.  params: row0=scale row1=shift row2=alpha
# --------------------------------------------------------------------------
def bn_prelu_kernel(conv_ref, par_ref, o_ref):
    y = conv_ref[...] * par_ref[0:1, :] + par_ref[1:2, :]     # f32 math
    o_ref[...] = jnp.where(y > 0, y, y * par_ref[2:3, :]).astype(o_ref.dtype)


# --------------------------------------------------------------------------
# VMEM working-set estimate (double-buffered pipeline), used to size the row
# tile and the scoped-VMEM limit so the same code fits v7x's 64 MiB.
# --------------------------------------------------------------------------
def _vmem_working_set(tile, halo, cin, oup, mm_bytes, ksize):
    lane = lambda c: _round_up(max(c, 1), 128)
    sub = lambda r: _round_up(max(r, 1), 8)
    slab = sub(tile + halo) * lane(cin) * mm_bytes
    wgt = ksize * ksize * sub(cin) * lane(oup) * mm_bytes
    mask = sub(tile) * lane(1) * 4
    conv = sub(tile) * lane(oup) * 4
    stats = 8 * lane(oup) * 4
    return 2 * (slab + wgt + mask + conv + stats)


# --------------------------------------------------------------------------
# Wrapper
# --------------------------------------------------------------------------
def conv_block(x_nchw, weight_oihw, gamma, beta, alpha, *,
               stride, padding, eps=1e-5, tile_rows=1024,
               matmul_dtype=jnp.bfloat16):
    n, cin, h, w = x_nchw.shape
    oup, _, k, _ = weight_oihw.shape
    h_out = (h + 2 * padding - k) // stride + 1
    w_out = (w + 2 * padding - k) // stride + 1
    hp, wp = h + 2 * padding, w + 2 * padding
    rows = n * hp * wp                    # conv evaluated at every padded position
    rows_valid = n * h_out * w_out        # BN statistics population (torch semantics)
    halo = (k - 1) * wp + (k - 1)         # largest row shift used by the k*k taps

    # ---- row tile: as big as the VMEM budget allows, with >=2 (and preferably
    #      even) grid steps so both v7x TensorCores stay busy.
    mm_bytes = jnp.dtype(matmul_dtype).itemsize
    tile = min(tile_rows, _round_up(rows, 16))
    budget = 40 * 1024 * 1024             # headroom inside v7x's 64 MiB VMEM
    while tile > 64 and _vmem_working_set(tile, halo, cin, oup, mm_bytes, k) > budget:
        tile = _round_up(tile // 2, 16)
    if _cdiv(rows, tile) < 2 and rows > 32:
        tile = _round_up(_cdiv(rows, 2), 16)
    num_tiles = _cdiv(rows, tile)
    if num_tiles > 1 and num_tiles % 2 == 1:
        t2 = _round_up(_cdiv(rows, num_tiles + 1), 16)
        if _cdiv(rows, t2) % 2 == 0:
            tile = t2
    num_tiles = _cdiv(rows, tile)
    rows_pad = num_tiles * tile

    # ---- glue (≈ one pass over the small input): NCHW->NHWC, spatial zero-pad,
    #      flatten, then cut overlapping row slabs so each grid step gets its
    #      halo through a plain Blocked BlockSpec (no in-kernel HBM gather).
    xp = jnp.transpose(x_nchw, (0, 2, 3, 1)).astype(matmul_dtype)
    xp = jnp.pad(xp, ((0, 0), (padding, padding), (padding, padding), (0, 0)))
    xflat = jnp.pad(xp.reshape(rows, cin),
                    ((0, rows_pad + halo - rows), (0, 0)))
    slabs = jnp.stack([xflat[i * tile:i * tile + tile + halo]
                       for i in range(num_tiles)], axis=0)   # (T, tile+halo, Cin)

    w_mat = jnp.transpose(weight_oihw, (2, 3, 1, 0)).reshape(k * k, cin, oup)
    w_mat = w_mat.astype(matmul_dtype)

    # Validity of each padded position as a real output position (handles the
    # right/bottom padding band and stride); also drives the BN stats mask.
    hh, ww = jnp.arange(hp), jnp.arange(wp)
    vh = (hh % stride == 0) & (hh // stride < h_out)
    vw = (ww % stride == 0) & (ww // stride < w_out)
    valid = (vh[:, None] & vw[None, :]).astype(jnp.float32)
    valid = jnp.broadcast_to(valid[None], (n, hp, wp)).reshape(rows)
    valid = jnp.pad(valid, (0, rows_pad - rows))[:, None]    # (rows_pad, 1)

    vmem_limit = int(min(48 * 1024 * 1024,
                         max(16 * 1024 * 1024,
                             2 * _vmem_working_set(tile, halo, cin, oup,
                                                   mm_bytes, k))))
    cparams = pltpu.CompilerParams(
        dimension_semantics=("parallel",),
        vmem_limit_bytes=vmem_limit,
    )

    # ---- pass A: conv tiles (in-kernel im2col) + per-tile partial stats.
    # NOTE: the weight block is tiny here; for large Cin*Cout it could be
    # single-buffered (pipeline_mode=pl.Buffered(1)) since its index is constant.
    kern_a = functools.partial(conv_stats_kernel, ksize=k, w_padded=wp)
    conv_f32, stats = pl.pallas_call(
        kern_a,
        grid=(num_tiles,),
        in_specs=[pl.BlockSpec((1, tile + halo, cin), lambda i: (i, 0, 0)),
                  pl.BlockSpec((k * k, cin, oup), lambda i: (0, 0, 0)),
                  pl.BlockSpec((tile, 1), lambda i: (i, 0))],
        out_specs=[pl.BlockSpec((tile, oup), lambda i: (i, 0)),
                   pl.BlockSpec((1, 8, oup), lambda i: (i, 0, 0))],
        out_shape=[jax.ShapeDtypeStruct((rows_pad, oup), jnp.float32),
                   jax.ShapeDtypeStruct((num_tiles, 8, oup), jnp.float32)],
        compiler_params=cparams,
    )(slabs, w_mat, valid)

    # ---- glue: Chan-style merge of per-tile stats -> exact global mean / biased
    #      var over the N*H_out*W_out population, folded into scale/shift.
    tm, tm2 = stats[:, 0, :], stats[:, 1, :]                  # (T, oup)
    n_t = valid[:, 0].reshape(num_tiles, tile).sum(axis=1)[:, None]
    mean = jnp.sum(n_t * tm, axis=0) / float(rows_valid)
    m2 = jnp.sum(tm2, axis=0) + jnp.sum(n_t * (tm - mean) ** 2, axis=0)
    var = m2 / float(rows_valid)
    inv = jax.lax.rsqrt(var + eps)
    scale = gamma.astype(jnp.float32) * inv
    shift = beta.astype(jnp.float32) - mean * scale
    params = jnp.zeros((8, oup), jnp.float32)
    params = params.at[0].set(scale).at[1].set(shift)
    params = params.at[2].set(alpha.astype(jnp.float32))

    # ---- pass B: normalize + PReLU on the narrow (rows, oup) stream.
    out_flat = pl.pallas_call(
        bn_prelu_kernel,
        grid=(num_tiles,),
        in_specs=[pl.BlockSpec((tile, oup), lambda i: (i, 0)),
                  pl.BlockSpec((8, oup), lambda i: (0, 0))],
        out_specs=pl.BlockSpec((tile, oup), lambda i: (i, 0)),
        out_shape=jax.ShapeDtypeStruct((rows_pad, oup), x_nchw.dtype),
        compiler_params=cparams,
    )(conv_f32, params)

    # ---- drop invalid/padded positions, back to NCHW (true-oup width only).
    out = out_flat[:rows].reshape(n, hp, wp, oup)
    out = out[:, ::stride, ::stride][:, :h_out, :w_out]
    return jnp.transpose(out, (0, 3, 1, 2))


# --------------------------------------------------------------------------
# Pure-JAX reference (conv + train-mode BN + PReLU)
# --------------------------------------------------------------------------
def conv_block_reference(x_nchw, weight_oihw, gamma, beta, alpha, *,
                         stride, padding, eps=1e-5):
    conv = jax.lax.conv_general_dilated(
        x_nchw, weight_oihw, (stride, stride),
        [(padding, padding), (padding, padding)],
        dimension_numbers=("NCHW", "OIHW", "NCHW"))
    mean = jnp.mean(conv, axis=(0, 2, 3), keepdims=True)
    var = jnp.mean((conv - mean) ** 2, axis=(0, 2, 3), keepdims=True)
    y = (conv - mean) * jax.lax.rsqrt(var + eps)
    y = y * gamma[None, :, None, None] + beta[None, :, None, None]
    a = alpha[None, :, None, None]
    return jnp.where(y > 0, y, y * a)


if __name__ == "__main__":
    # ConvBlock(inp=4, oup=8, k=3, s=1, p=1, dw=False, linear=False, relu=False)
    N, CIN, H, W = 2, 4, 16, 16
    COUT, K, S, P = 8, 3, 1, 1

    key = jax.random.PRNGKey(0)
    kx, kw = jax.random.split(key)
    x = jax.random.normal(kx, (N, CIN, H, W), dtype=jnp.float32)
    weight = jax.random.normal(kw, (COUT, CIN, K, K), dtype=jnp.float32)
    weight = weight * (1.0 / jnp.sqrt(CIN * K * K))
    # BatchNorm2d defaults: weight=1, bias=0; PReLU default slope=0.25
    gamma = jnp.ones((COUT,), jnp.float32)
    beta = jnp.zeros((COUT,), jnp.float32)
    alpha = jnp.full((COUT,), 0.25, jnp.float32)

    ref = conv_block_reference(x, weight, gamma, beta, alpha,
                               stride=S, padding=P)

    # Exact-precision path (f32 matmul inputs) — tight tolerance.
    f32_fn = jax.jit(functools.partial(conv_block, stride=S, padding=P,
                                       matmul_dtype=jnp.float32))
    out_f32 = jax.block_until_ready(f32_fn(x, weight, gamma, beta, alpha))
    assert out_f32.shape == (N, COUT, H, W)
    assert jnp.allclose(out_f32, ref, atol=2e-4, rtol=2e-4), (
        float(jnp.max(jnp.abs(out_f32 - ref))))

    # Fast path (bf16 MXU inputs, f32 accumulation) — recommended config.
    bf16_fn = jax.jit(functools.partial(conv_block, stride=S, padding=P,
                                        matmul_dtype=jnp.bfloat16))
    out_bf16 = jax.block_until_ready(bf16_fn(x, weight, gamma, beta, alpha))
    assert out_bf16.shape == (N, COUT, H, W)
    assert jnp.allclose(out_bf16, ref, atol=5e-2, rtol=5e-2), (
        float(jnp.max(jnp.abs(out_bf16 - ref))))

    # Stride-2 path (same kernels; only the validity mask / subsample change).
    ref2 = conv_block_reference(x, weight, gamma, beta, alpha,
                                stride=2, padding=P)
    s2_fn = jax.jit(functools.partial(conv_block, stride=2, padding=P,
                                      matmul_dtype=jnp.float32))
    out_s2 = jax.block_until_ready(s2_fn(x, weight, gamma, beta, alpha))
    assert out_s2.shape == ref2.shape
    assert jnp.allclose(out_s2, ref2, atol=2e-4, rtol=2e-4), (
        float(jnp.max(jnp.abs(out_s2 - ref2))))

    print("KERNEL_OK")
</pallas_src>

<mosaic_0001>
module attributes {stable_mosaic.version = 11 : i64} {
  func.func @conv_stats_kernel(%arg0: i32, %arg1: memref<1x374x4xf32, #tpu.memory_space<vmem>>, %arg2: memref<9x4x8xf32, #tpu.memory_space<vmem>>, %arg3: memref<336x1xf32, #tpu.memory_space<vmem>>, %arg4: memref<336x8xf32, #tpu.memory_space<vmem>>, %arg5: memref<1x8x8xf32, #tpu.memory_space<vmem>>) attributes {dimension_semantics = [#tpu.dimension_semantics<parallel>], iteration_bounds = array<i64: 2>, scalar_prefetch = 0 : i64, scratch_operands = 0 : i64, tpu.core_type = #tpu.core_type<tc>, window_params = [{transform_indices = @transform_0, window_bounds = array<i64: 1, 374, 4>}, {pipeline_mode = #tpu.pipeline_mode<synchronous>, transform_indices = @transform_1, window_bounds = array<i64: 9, 4, 8>}, {transform_indices = @transform_2, window_bounds = array<i64: 336, 1>}, {transform_indices = @transform_3, window_bounds = array<i64: 336, 8>}, {transform_indices = @transform_4, window_bounds = array<i64: 1, 8, 8>}]} {
    %c0 = arith.constant 0 : index
    %c0_0 = arith.constant 0 : index
    %c0_1 = arith.constant 0 : index
    %0 = vector.load %arg1[%c0, %c0_0, %c0_1] : memref<1x374x4xf32, #tpu.memory_space<vmem>>, vector<1x374x4xf32>
    %1 = vector.shape_cast %0 : vector<1x374x4xf32> to vector<374x4xf32>
    %cst = arith.constant 0.000000e+00 : f32
    %2 = vector.broadcast %cst : f32 to vector<336x8xf32>
    %3 = vector.extract_strided_slice %1 {offsets = [0, 0], sizes = [336, 4], strides = [1, 1]} : vector<374x4xf32> to vector<336x4xf32>
    %c0_2 = arith.constant 0 : index
    %c0_3 = arith.constant 0 : index
    %c0_4 = arith.constant 0 : index
    %4 = vector.load %arg2[%c0_2, %c0_3, %c0_4] : memref<9x4x8xf32, #tpu.memory_space<vmem>>, vector<1x4x8xf32>
    %5 = vector.shape_cast %4 : vector<1x4x8xf32> to vector<4x8xf32>
    %cst_5 = arith.constant dense<0.000000e+00> : vector<336x8xf32>
    %6 = tpu.matmul %3, %5, %cst_5 {dimension_numbers = #tpu.dot_dimension_numbers<[1], [0], [0], [1], [0, 0, 1, 1], [], []>} : vector<336x4xf32>, vector<4x8xf32>, vector<336x8xf32> -> vector<336x8xf32>
    %7 = arith.addf %2, %6 : vector<336x8xf32>
    %8 = vector.extract_strided_slice %1 {offsets = [1, 0], sizes = [336, 4], strides = [1, 1]} : vector<374x4xf32> to vector<336x4xf32>
    %c1 = arith.constant 1 : index
    %c0_6 = arith.constant 0 : index
    %c0_7 = arith.constant 0 : index
    %9 = vector.load %arg2[%c1, %c0_6, %c0_7] : memref<9x4x8xf32, #tpu.memory_space<vmem>>, vector<1x4x8xf32>
    %10 = vector.shape_cast %9 : vector<1x4x8xf32> to vector<4x8xf32>
    %cst_8 = arith.constant dense<0.000000e+00> : vector<336x8xf32>
    %11 = tpu.matmul %8, %10, %cst_8 {dimension_numbers = #tpu.dot_dimension_numbers<[1], [0], [0], [1], [0, 0, 1, 1], [], []>} : vector<336x4xf32>, vector<4x8xf32>, vector<336x8xf32> -> vector<336x8xf32>
    %12 = arith.addf %7, %11 : vector<336x8xf32>
    %13 = vector.extract_strided_slice %1 {offsets = [2, 0], sizes = [336, 4], strides = [1, 1]} : vector<374x4xf32> to vector<336x4xf32>
    %c2 = arith.constant 2 : index
    %c0_9 = arith.constant 0 : index
    %c0_10 = arith.constant 0 : index
    %14 = vector.load %arg2[%c2, %c0_9, %c0_10] : memref<9x4x8xf32, #tpu.memory_space<vmem>>, vector<1x4x8xf32>
    %15 = vector.shape_cast %14 : vector<1x4x8xf32> to vector<4x8xf32>
    %cst_11 = arith.constant dense<0.000000e+00> : vector<336x8xf32>
    %16 = tpu.matmul %13, %15, %cst_11 {dimension_numbers = #tpu.dot_dimension_numbers<[1], [0], [0], [1], [0, 0, 1, 1], [], []>} : vector<336x4xf32>, vector<4x8xf32>, vector<336x8xf32> -> vector<336x8xf32>
    %17 = arith.addf %12, %16 : vector<336x8xf32>
    %18 = vector.extract_strided_slice %1 {offsets = [18, 0], sizes = [336, 4], strides = [1, 1]} : vector<374x4xf32> to vector<336x4xf32>
    %c3 = arith.constant 3 : index
    %c0_12 = arith.constant 0 : index
    %c0_13 = arith.constant 0 : index
    %19 = vector.load %arg2[%c3, %c0_12, %c0_13] : memref<9x4x8xf32, #tpu.memory_space<vmem>>, vector<1x4x8xf32>
    %20 = vector.shape_cast %19 : vector<1x4x8xf32> to vector<4x8xf32>
    %cst_14 = arith.constant dense<0.000000e+00> : vector<336x8xf32>
    %21 = tpu.matmul %18, %20, %cst_14 {dimension_numbers = #tpu.dot_dimension_numbers<[1], [0], [0], [1], [0, 0, 1, 1], [], []>} : vector<336x4xf32>, vector<4x8xf32>, vector<336x8xf32> -> vector<336x8xf32>
    %22 = arith.addf %17, %21 : vector<336x8xf32>
    %23 = vector.extract_strided_slice %1 {offsets = [19, 0], sizes = [336, 4], strides = [1, 1]} : vector<374x4xf32> to vector<336x4xf32>
    %c4 = arith.constant 4 : index
    %c0_15 = arith.constant 0 : index
    %c0_16 = arith.constant 0 : index
    %24 = vector.load %arg2[%c4, %c0_15, %c0_16] : memref<9x4x8xf32, #tpu.memory_space<vmem>>, vector<1x4x8xf32>
    %25 = vector.shape_cast %24 : vector<1x4x8xf32> to vector<4x8xf32>
    %cst_17 = arith.constant dense<0.000000e+00> : vector<336x8xf32>
    %26 = tpu.matmul %23, %25, %cst_17 {dimension_numbers = #tpu.dot_dimension_numbers<[1], [0], [0], [1], [0, 0, 1, 1], [], []>} : vector<336x4xf32>, vector<4x8xf32>, vector<336x8xf32> -> vector<336x8xf32>
    %27 = arith.addf %22, %26 : vector<336x8xf32>
    %28 = vector.extract_strided_slice %1 {offsets = [20, 0], sizes = [336, 4], strides = [1, 1]} : vector<374x4xf32> to vector<336x4xf32>
    %c5 = arith.constant 5 : index
    %c0_18 = arith.constant 0 : index
    %c0_19 = arith.constant 0 : index
    %29 = vector.load %arg2[%c5, %c0_18, %c0_19] : memref<9x4x8xf32, #tpu.memory_space<vmem>>, vector<1x4x8xf32>
    %30 = vector.shape_cast %29 : vector<1x4x8xf32> to vector<4x8xf32>
    %cst_20 = arith.constant dense<0.000000e+00> : vector<336x8xf32>
    %31 = tpu.matmul %28, %30, %cst_20 {dimension_numbers = #tpu.dot_dimension_numbers<[1], [0], [0], [1], [0, 0, 1, 1], [], []>} : vector<336x4xf32>, vector<4x8xf32>, vector<336x8xf32> -> vector<336x8xf32>
    %32 = arith.addf %27, %31 : vector<336x8xf32>
    %33 = vector.extract_strided_slice %1 {offsets = [36, 0], sizes = [336, 4], strides = [1, 1]} : vector<374x4xf32> to vector<336x4xf32>
    %c6 = arith.constant 6 : index
    %c0_21 = arith.constant 0 : index
    %c0_22 = arith.constant 0 : index
    %34 = vector.load %arg2[%c6, %c0_21, %c0_22] : memref<9x4x8xf32, #tpu.memory_space<vmem>>, vector<1x4x8xf32>
    %35 = vector.shape_cast %34 : vector<1x4x8xf32> to vector<4x8xf32>
    %cst_23 = arith.constant dense<0.000000e+00> : vector<336x8xf32>
    %36 = tpu.matmul %33, %35, %cst_23 {dimension_numbers = #tpu.dot_dimension_numbers<[1], [0], [0], [1], [0, 0, 1, 1], [], []>} : vector<336x4xf32>, vector<4x8xf32>, vector<336x8xf32> -> vector<336x8xf32>
    %37 = arith.addf %32, %36 : vector<336x8xf32>
    %38 = vector.extract_strided_slice %1 {offsets = [37, 0], sizes = [336, 4], strides = [1, 1]} : vector<374x4xf32> to vector<336x4xf32>
    %c7 = arith.constant 7 : index
    %c0_24 = arith.constant 0 : index
    %c0_25 = arith.constant 0 : index
    %39 = vector.load %arg2[%c7, %c0_24, %c0_25] : memref<9x4x8xf32, #tpu.memory_space<vmem>>, vector<1x4x8xf32>
    %40 = vector.shape_cast %39 : vector<1x4x8xf32> to vector<4x8xf32>
    %cst_26 = arith.constant dense<0.000000e+00> : vector<336x8xf32>
    %41 = tpu.matmul %38, %40, %cst_26 {dimension_numbers = #tpu.dot_dimension_numbers<[1], [0], [0], [1], [0, 0, 1, 1], [], []>} : vector<336x4xf32>, vector<4x8xf32>, vector<336x8xf32> -> vector<336x8xf32>
    %42 = arith.addf %37, %41 : vector<336x8xf32>
    %43 = vector.extract_strided_slice %1 {offsets = [38, 0], sizes = [336, 4], strides = [1, 1]} : vector<374x4xf32> to vector<336x4xf32>
    %c8 = arith.constant 8 : index
    %c0_27 = arith.constant 0 : index
    %c0_28 = arith.constant 0 : index
    %44 = vector.load %arg2[%c8, %c0_27, %c0_28] : memref<9x4x8xf32, #tpu.memory_space<vmem>>, vector<1x4x8xf32>
    %45 = vector.shape_cast %44 : vector<1x4x8xf32> to vector<4x8xf32>
    %cst_29 = arith.constant dense<0.000000e+00> : vector<336x8xf32>
    %46 = tpu.matmul %43, %45, %cst_29 {dimension_numbers = #tpu.dot_dimension_numbers<[1], [0], [0], [1], [0, 0, 1, 1], [], []>} : vector<336x4xf32>, vector<4x8xf32>, vector<336x8xf32> -> vector<336x8xf32>
    %47 = arith.addf %42, %46 : vector<336x8xf32>
    %c0_30 = arith.constant 0 : index
    %c0_31 = arith.constant 0 : index
    %48 = vector.load %arg4[%c0_30, %c0_31] : memref<336x8xf32, #tpu.memory_space<vmem>>, vector<336x8xf32>
    tpu.vector_store %arg4[%c0_30, %c0_31], %47 {strides = array<i32>} : memref<336x8xf32, #tpu.memory_space<vmem>>, vector<336x8xf32>,
    %c0_32 = arith.constant 0 : index
    %c0_33 = arith.constant 0 : index
    %49 = vector.load %arg3[%c0_32, %c0_33] : memref<336x1xf32, #tpu.memory_space<vmem>>, vector<336x1xf32>
    %50 = vector.shape_cast %49 : vector<336x1xf32> to vector<1x336x1xf32>
    %cst_34 = arith.constant dense<0.000000e+00> : vector<1xf32>
    %51 = vector.multi_reduction <add>, %50, %cst_34 [1, 2] : vector<1x336x1xf32> to vector<1xf32>
    %52 = vector.shape_cast %51 : vector<1xf32> to vector<1x1x1xf32>
    %53 = vector.extract %52[0, 0, 0] : f32 from vector<1x1x1xf32>
    %cst_35 = arith.constant 1.000000e+00 : f32
    %54 = arith.maximumf %53, %cst_35 : f32
    %55 = vector.broadcast %49 : vector<336x1xf32> to vector<336x8xf32>
    %56 = arith.mulf %47, %55 : vector<336x8xf32>
    %cst_36 = arith.constant dense<0.000000e+00> : vector<8xf32>
    %57 = vector.multi_reduction <add>, %56, %cst_36 [0] : vector<336x8xf32> to vector<8xf32>
    %58 = vector.shape_cast %57 : vector<8xf32> to vector<1x8xf32>
    %59 = vector.broadcast %54 : f32 to vector<1x8xf32>
    %60 = arith.divf %58, %59 : vector<1x8xf32>
    %61 = vector.broadcast %60 : vector<1x8xf32> to vector<336x8xf32>
    %62 = arith.subf %47, %61 : vector<336x8xf32>
    %63 = vector.broadcast %49 : vector<336x1xf32> to vector<336x8xf32>
    %64 = arith.mulf %62, %63 : vector<336x8xf32>
    %65 = arith.mulf %64, %64 : vector<336x8xf32>
    %cst_37 = arith.constant dense<0.000000e+00> : vector<8xf32>
    %66 = vector.multi_reduction <add>, %65, %cst_37 [0] : vector<336x8xf32> to vector<8xf32>
    %67 = vector.shape_cast %66 : vector<8xf32> to vector<1x8xf32>
    %68 = tpu.concatenate %60, %67 in 0 : vector<1x8xf32>, vector<1x8xf32> -> vector<2x8xf32>
    %c0_i32 = arith.constant 0 : i32
    %69 = arith.sitofp %c0_i32 : i32 to f32
    %70 = vector.broadcast %69 : f32 to vector<6x8xf32>
    %71 = tpu.concatenate %68, %70 in 0 : vector<2x8xf32>, vector<6x8xf32> -> vector<8x8xf32>
    %72 = vector.shape_cast %71 : vector<8x8xf32> to vector<1x8x8xf32>
    %c0_38 = arith.constant 0 : index
    %c0_39 = arith.constant 0 : index
    %c0_40 = arith.constant 0 : index
    %73 = vector.load %arg5[%c0_38, %c0_39, %c0_40] : memref<1x8x8xf32, #tpu.memory_space<vmem>>, vector<1x8x8xf32>
    tpu.vector_store %arg5[%c0_38, %c0_39, %c0_40], %72 {strides = array<i32>} : memref<1x8x8xf32, #tpu.memory_space<vmem>>, vector<1x8x8xf32>,
    return
  }
  func.func @transform_0(%arg0: i32) -> (i32, i32, i32) {
    %c0_i32 = arith.constant 0 : i32
    %c0_i32_0 = arith.constant 0 : i32
    %c0_i32_1 = arith.constant 0 : i32
    return %arg0, %c0_i32, %c0_i32_0 : i32, i32, i32
  }
  func.func @transform_1(%arg0: i32) -> (i32, i32, i32) {
    %c0_i32 = arith.constant 0 : i32
    %c0_i32_0 = arith.constant 0 : i32
    %c0_i32_1 = arith.constant 0 : i32
    %c0_i32_2 = arith.constant 0 : i32
    return %c0_i32, %c0_i32_0, %c0_i32_1 : i32, i32, i32
  }
  func.func @transform_2(%arg0: i32) -> (i32, i32) {
    %c0_i32 = arith.constant 0 : i32
    %c0_i32_0 = arith.constant 0 : i32
    return %arg0, %c0_i32 : i32, i32
  }
  func.func @transform_3(%arg0: i32) -> (i32, i32) {
    %c0_i32 = arith.constant 0 : i32
    %c0_i32_0 = arith.constant 0 : i32
    return %arg0, %c0_i32 : i32, i32
  }
  func.func @transform_4(%arg0: i32) -> (i32, i32, i32) {
    %c0_i32 = arith.constant 0 : i32
    %c0_i32_0 = arith.constant 0 : i32
    %c0_i32_1 = arith.constant 0 : i32
    return %arg0, %c0_i32, %c0_i32_0 : i32, i32, i32
  }
}

module attributes {stable_mosaic.version = 11 : i64} {
  func.func @bn_prelu_kernel(%arg0: i32, %arg1: memref<336x8xf32, #tpu.memory_space<vmem>>, %arg2: memref<8x8xf32, #tpu.memory_space<vmem>>, %arg3: memref<336x8xf32, #tpu.memory_space<vmem>>) attributes {dimension_semantics = [#tpu.dimension_semantics<parallel>], iteration_bounds = array<i64: 2>, scalar_prefetch = 0 : i64, scratch_operands = 0 : i64, tpu.core_type = #tpu.core_type<tc>, window_params = [{transform_indices = @transform_0, window_bounds = array<i64: 336, 8>}, {pipeline_mode = #tpu.pipeline_mode<synchronous>, transform_indices = @transform_1, window_bounds = array<i64: 8, 8>}, {transform_indices = @transform_2, window_bounds = array<i64: 336, 8>}]} {
    %c0 = arith.constant 0 : index
    %c0_0 = arith.constant 0 : index
    %0 = vector.load %arg1[%c0, %c0_0] : memref<336x8xf32, #tpu.memory_space<vmem>>, vector<336x8xf32>
    %c0_1 = arith.constant 0 : index
    %c0_2 = arith.constant 0 : index
    %1 = vector.load %arg2[%c0_1, %c0_2] : memref<8x8xf32, #tpu.memory_space<vmem>>, vector<1x8xf32>
    %2 = vector.broadcast %1 : vector<1x8xf32> to vector<336x8xf32>
    %3 = arith.mulf %0, %2 : vector<336x8xf32>
    %c1 = arith.constant 1 : index
    %c0_3 = arith.constant 0 : index
    %4 = vector.load %arg2[%c1, %c0_3] : memref<8x8xf32, #tpu.memory_space<vmem>>, vector<1x8xf32>
    %5 = vector.broadcast %4 : vector<1x8xf32> to vector<336x8xf32>
    %6 = arith.addf %3, %5 : vector<336x8xf32>
    %cst = arith.constant 0.000000e+00 : f32
    %7 = vector.broadcast %cst : f32 to vector<336x8xf32>
    %8 = arith.cmpf ogt, %6, %7 : vector<336x8xf32>
    %c2 = arith.constant 2 : index
    %c0_4 = arith.constant 0 : index
    %9 = vector.load %arg2[%c2, %c0_4] : memref<8x8xf32, #tpu.memory_space<vmem>>, vector<1x8xf32>
    %10 = vector.broadcast %9 : vector<1x8xf32> to vector<336x8xf32>
    %11 = arith.mulf %6, %10 : vector<336x8xf32>
    %12 = arith.select %8, %6, %11 : vector<336x8xi1>, vector<336x8xf32>
    %c0_5 = arith.constant 0 : index
    %c0_6 = arith.constant 0 : index
    %13 = vector.load %arg3[%c0_5, %c0_6] : memref<336x8xf32, #tpu.memory_space<vmem>>, vector<336x8xf32>
    tpu.vector_store %arg3[%c0_5, %c0_6], %12 {strides = array<i32>} : memref<336x8xf32, #tpu.memory_space<vmem>>, vector<336x8xf32>,
    return
  }
  func.func @transform_0(%arg0: i32) -> (i32, i32) {
    %c0_i32 = arith.constant 0 : i32
    %c0_i32_0 = arith.constant 0 : i32
    return %arg0, %c0_i32 : i32, i32
  }
  func.func @transform_1(%arg0: i32) -> (i32, i32) {
    %c0_i32 = arith.constant 0 : i32
    %c0_i32_0 = arith.constant 0 : i32
    %c0_i32_1 = arith.constant 0 : i32
    return %c0_i32, %c0_i32_0 : i32, i32
  }
  func.func @transform_2(%arg0: i32) -> (i32, i32) {
    %c0_i32 = arith.constant 0 : i32
    %c0_i32_0 = arith.constant 0 : i32
    return %arg0, %c0_i32 : i32, i32
  }
}

</mosaic_0001>

<bundles_post_ra>
// kernel: conv_block.3
= control target key start
LH: loop header
LB: loop body
LE: loop exit
PB: predicated region body
PF: predicated region fallthrough
CT: control target
= control target key end

     0   :  { %s556_s9 = smov 0   ;;  %s847_s0 = inlined_call_operand.vmem [shape: f32[672,8], index: 0, kind: input, shape index: {}]   ;;  %s848_s1 = inlined_call_operand.vmem [shape: f32[8,8], index: 1, kind: input, shape index: {}]   ;;  %s849_s2 = inlined_call_operand.vmem [shape: f32[672,8], index: 2, kind: output, shape index: {}]  }
   0x1 LB: > { %s513_s10 = sadd.s32 4294967295, %s539_s9   ;;  %p517_p0 = scmp.ge.s32.totalorder %s539_s9, 1  ;;  %s539_s9 = sphi %s556_s9, %s12_s9  }
   0x2   : > { %p113_p1 = scmp.lt.s32.totalorder %s539_s9, 3 }
   0x4   : > { %p114_p2 = pnand %p517_p0, %p113_p1 }
   0x5   : > { %s135_s11 = smul.u32 (!%p114_p2), 42, %s513_s10 }
   0x6   : > { %117 = sbr.rel (%p114_p2) target bundleno = 73 (0x49), region = 28 }
   0x7   : > { %p136_p3 = scmp.lt.s32.totalorder (!%p114_p2), %s135_s11, 83 }
   0xb   : > { %s851_s11 = smov (!%p136_p3, %s135_s11), 83  ;;  %v570_v0 = vld [vmem:[%s848_s1] ss:$0 sm:$0xff]  ;;  %v580_v1 = vld [vmem:[%s848_s1 + $0x1] ss:$0 sm:$0xff]  ;;  %vm414_vm0 = vcmask 64512  }
   0xc   : > { %s518_s12 = sshll.u32 %s851_s11, 3  ;;  %v594_v11 = vld [vmem:[%s848_s1 + $0x2] ss:$0 sm:$0xff] }
   0xd   : > { %s575_s17 = scalar_lea.vmem %s847_s0, %s518_s12  ;;  %s612_s24 = scalar_lea.vmem %s849_s2, %s518_s12 }
   0xe   : > { %v147_v2 = vld [vmem:[%s575_s17] sm:$0xff]  ;;  %v148_v3 = vld [vmem:[%s575_s17 + $0x8] sm:$0xff]  ;;  %v149_v4 = vld [vmem:[%s575_s17 + $0x10] sm:$0xff] }
   0xf   : > { %v194_v5 = vmul.f32 %v570_v0, %v147_v2  ;;  %v195_v6 = vmul.f32 %v570_v0, %v148_v3  ;;  %v196_v7 = vmul.f32 %v570_v0, %v149_v4  ;;  %v150_v8 = vld [vmem:[%s575_s17 + $0x18] sm:$0xff]  ;;  %v151_v9 = vld [vmem:[%s575_s17 + $0x20] sm:$0xff]  ;;  %v152_v10 = vld [vmem:[%s575_s17 + $0x28] sm:$0xff] }
  0x10   : > { %v197_v12 = vmul.f32 %v570_v0, %v150_v8  ;;  %v198_v13 = vmul.f32 %v570_v0, %v151_v9  ;;  %v199_v14 = vmul.f32 %v570_v0, %v152_v10  ;;  %v153_v15 = vld [vmem:[%s575_s17 + $0x30] sm:$0xff]  ;;  %v154_v16 = vld [vmem:[%s575_s17 + $0x38] sm:$0xff]  ;;  %v155_v29 = vld [vmem:[%s575_s17 + $0x40] sm:$0xff] }
  0x11   : > { %v241_v17 = vadd.f32 %v580_v1, %v194_v5  ;;  %v242_v18 = vadd.f32 %v580_v1, %v195_v6  ;;  %v243_v19 = vadd.f32 %v580_v1, %v196_v7  ;;  %v200_v20 = vmul.f32 %v570_v0, %v153_v15  ;;  %v156_v33 = vld [vmem:[%s575_s17 + $0x48] sm:$0xff]  ;;  %v157_v34 = vld [vmem:[%s575_s17 + $0x50] sm:$0xff]  ;;  %v158_v35 = vld [vmem:[%s575_s17 + $0x58] sm:$0xff] }
  0x12   : > { %v244_v21 = vadd.f32 %v580_v1, %v197_v12  ;;  %v245_v22 = vadd.f32 %v580_v1, %v198_v13  ;;  %v246_v23 = vadd.f32 %v580_v1, %v199_v14  ;;  %v201_v24 = vmul.f32 %v570_v0, %v154_v16  ;;  %v159_v47 = vld [vmem:[%s575_s17 + $0x60] sm:$0xff]  ;;  %v160_v48 = vld [vmem:[%s575_s17 + $0x68] sm:$0xff]  ;;  %v161_v61 = vld [vmem:[%s575_s17 + $0x70] sm:$0xff] }
  0x13   : > { %vm283_vm1 = vcmp.gt.f32.partialorder %v241_v17, 0.0  ;;  %v330_v25 = vmul.f32 %v594_v11, %v241_v17  ;;  %vm284_vm2 = vcmp.gt.f32.partialorder %v242_v18, 0.0  ;;  %v331_v26 = vmul.f32 %v594_v11, %v242_v18  ;;  %v162_v62 = vld [vmem:[%s575_s17 + $0x78] sm:$0xff]  ;;  %v163_v7 = vld [vmem:[%s575_s17 + $0x80] sm:$0xff]  ;;  %v164_v8 = vld [vmem:[%s575_s17 + $0x88] sm:$0xff] }
  0x14   : > { %vm285_vm3 = vcmp.gt.f32.partialorder %v243_v19, 0.0  ;;  %v332_v27 = vmul.f32 %v594_v11, %v243_v19  ;;  %vm286_vm4 = vcmp.gt.f32.partialorder %v244_v21, 0.0  ;;  %v333_v28 = vmul.f32 %v594_v11, %v244_v21  ;;  %v165_v14 = vld [vmem:[%s575_s17 + $0x90] sm:$0xff]  ;;  %v166_v15 = vld [vmem:[%s575_s17 + $0x98] sm:$0xff] }
  0x15   : > { %v372_v30 = vsel %vm283_vm1, %v241_v17, %v330_v25  ;;  %v373_v31 = vsel %vm284_vm2, %v242_v18, %v331_v26  ;;  %vm287_vm5 = vcmp.gt.f32.partialorder %v245_v22, 0.0  ;;  %v334_v32 = vmul.f32 %v594_v11, %v245_v22  ;;  %v167_v26 = vld [vmem:[%s575_s17 + $0xa0] sm:$0xff] }
  0x16   : > { %415 = vst.msk [vmem:[%s612_s24] sm:$0xff] %vm414_vm0, %v372_v30  ;;  %416 = vst.msk [vmem:[%s612_s24 + $0x8] sm:$0xff] %vm414_vm0, %v373_v31  ;;  %v374_v36 = vsel %vm285_vm3, %v243_v19, %v332_v27  ;;  %v375_v37 = vsel %vm286_vm4, %v244_v21, %v333_v28  ;;  %vm288_vm6 = vcmp.gt.f32.partialorder %v246_v23, 0.0  ;;  %v335_v38 = vmul.f32 %v594_v11, %v246_v23  ;;  %v168_v27 = vld [vmem:[%s575_s17 + $0xa8] sm:$0xff] }
  0x17   : > { %417 = vst.msk [vmem:[%s612_s24 + $0x10] sm:$0xff] %vm414_vm0, %v374_v36  ;;  %418 = vst.msk [vmem:[%s612_s24 + $0x18] sm:$0xff] %vm414_vm0, %v375_v37  ;;  %v376_v39 = vsel %vm287_vm5, %v245_v22, %v334_v32  ;;  %v247_v40 = vadd.f32 %v580_v1, %v200_v20  ;;  %v248_v41 = vadd.f32 %v580_v1, %v201_v24 }
  0x18   : > { %v202_v42 = vmul.f32 %v570_v0, %v155_v29  ;;  %419 = vst.msk [vmem:[%s612_s24 + $0x20] sm:$0xff] %vm414_vm0, %v376_v39  ;;  %v377_v43 = vsel %vm288_vm6, %v246_v23, %v335_v38  ;;  %v203_v44 = vmul.f32 %v570_v0, %v156_v33  ;;  %v204_v45 = vmul.f32 %v570_v0, %v157_v34 }
  0x19   : > { %v205_v46 = vmul.f32 %v570_v0, %v158_v35  ;;  %420 = vst.msk [vmem:[%s612_s24 + $0x28] sm:$0xff] %vm414_vm0, %v377_v43  ;;  %vm289_vm7 = vcmp.gt.f32.partialorder %v247_v40, 0.0  ;;  %v336_v49 = vmul.f32 %v594_v11, %v247_v40  ;;  %vm290_vm8 = vcmp.gt.f32.partialorder %v248_v41, 0.0 }
  0x1a   : > { %v337_v50 = vmul.f32 %v594_v11, %v248_v41  ;;  %v249_v51 = vadd.f32 %v580_v1, %v202_v42  ;;  %v250_v52 = vadd.f32 %v580_v1, %v203_v44  ;;  %v251_v53 = vadd.f32 %v580_v1, %v204_v45 }
  0x1b   : > { %v252_v54 = vadd.f32 %v580_v1, %v205_v46  ;;  %v378_v55 = vsel %vm289_vm7, %v247_v40, %v336_v49  ;;  %v206_v57 = vmul.f32 %v570_v0, %v159_v47  ;;  %v207_v58 = vmul.f32 %v570_v0, %v160_v48  ;;  %v169_v40 = vld [vmem:[%s575_s17 + $0xb0] sm:$0xff]  ;;  %v171_v48 = vld [vmem:[%s575_s17 + $0xc0] sm:$0xff]  ;;  %v172_v49 = vld [vmem:[%s575_s17 + $0xc8] sm:$0xff] }
  0x1c   : > { %v379_v56 = vsel %vm290_vm8, %v248_v41, %v337_v50  ;;  %421 = vst.msk [vmem:[%s612_s24 + $0x30] sm:$0xff] %vm414_vm0, %v378_v55  ;;  %vm291_vm9 = vcmp.gt.f32.partialorder %v249_v51, 0.0  ;;  %v338_v59 = vmul.f32 %v594_v11, %v249_v51  ;;  %vm292_vm10 = vcmp.gt.f32.partialorder %v250_v52, 0.0  ;;  %v170_v41 = vld [vmem:[%s575_s17 + $0xb8] sm:$0xff] }
  0x1d   : > { %422 = vst.msk [vmem:[%s612_s24 + $0x38] sm:$0xff] %vm414_vm0, %v379_v56  ;;  %v339_v60 = vmul.f32 %v594_v11, %v250_v52  ;;  %vm293_vm11 = vcmp.gt.f32.partialorder %v251_v53, 0.0  ;;  %v340_v63 = vmul.f32 %v594_v11, %v251_v53  ;;  %vm294_vm12 = vcmp.gt.f32.partialorder %v252_v54, 0.0  ;;  %v174_v55 = vld [vmem:[%s575_s17 + $0xd8] sm:$0xff] }
  0x1e   : > { %v341_v2 = vmul.f32 %v594_v11, %v252_v54  ;;  %v380_v3 = vsel %vm291_vm9, %v249_v51, %v338_v59  ;;  %v253_v5 = vadd.f32 %v580_v1, %v206_v57  ;;  %v254_v6 = vadd.f32 %v580_v1, %v207_v58 }
  0x1f   : > { %v381_v4 = vsel %vm292_vm10, %v250_v52, %v339_v60  ;;  %423 = vst.msk [vmem:[%s612_s24 + $0x40] sm:$0xff] %vm414_vm0, %v380_v3  ;;  %v382_v9 = vsel %vm293_vm11, %v251_v53, %v340_v63  ;;  %v208_v12 = vmul.f32 %v570_v0, %v161_v61  ;;  %v209_v13 = vmul.f32 %v570_v0, %v162_v62 }
  0x20   : > { %424 = vst.msk [vmem:[%s612_s24 + $0x48] sm:$0xff] %vm414_vm0, %v381_v4  ;;  %v383_v10 = vsel %vm294_vm12, %v252_v54, %v341_v2  ;;  %425 = vst.msk [vmem:[%s612_s24 + $0x50] sm:$0xff] %vm414_vm0, %v382_v9  ;;  %vm295_vm13 = vcmp.gt.f32.partialorder %v253_v5, 0.0  ;;  %v342_v16 = vmul.f32 %v594_v11, %v253_v5  ;;  %vm296_vm14 = vcmp.gt.f32.partialorder %v254_v6, 0.0  ;;  %v173_v54 = vld [vmem:[%s575_s17 + $0xd0] sm:$0xff]  ;;  %v175_v4 = vld [vmem:[%s575_s17 + $0xe0] sm:$0xff] }
  0x21   : > { %426 = vst.msk [vmem:[%s612_s24 + $0x58] sm:$0xff] %vm414_vm0, %v383_v10  ;;  %v343_v17 = vmul.f32 %v594_v11, %v254_v6  ;;  %v255_v18 = vadd.f32 %v580_v1, %v208_v12  ;;  %v256_v19 = vadd.f32 %v580_v1, %v209_v13  ;;  %v210_v20 = vmul.f32 %v570_v0, %v163_v7 }
  0x22   : > { %v211_v21 = vmul.f32 %v570_v0, %v164_v8  ;;  %v384_v22 = vsel %vm295_vm13, %v253_v5, %v342_v16  ;;  %v212_v24 = vmul.f32 %v570_v0, %v165_v14  ;;  %v213_v25 = vmul.f32 %v570_v0, %v166_v15  ;;  %v176_v5 = vld [vmem:[%s575_s17 + $0xe8] sm:$0xff] }
  0x23   : > { %v385_v23 = vsel %vm296_vm14, %v254_v6, %v343_v17  ;;  %427 = vst.msk [vmem:[%s612_s24 + $0x60] sm:$0xff] %vm414_vm0, %v384_v22  ;;  %vm297_vm15 = vcmp.gt.f32.partialorder %v255_v18, 0.0  ;;  %v344_v28 = vmul.f32 %v594_v11, %v255_v18  ;;  %vm298_vm1 = vcmp.gt.f32.partialorder %v256_v19, 0.0 }
  0x24   : > { %428 = vst.msk [vmem:[%s612_s24 + $0x68] sm:$0xff] %vm414_vm0, %v385_v23  ;;  %v345_v29 = vmul.f32 %v594_v11, %v256_v19  ;;  %v257_v30 = vadd.f32 %v580_v1, %v210_v20  ;;  %v258_v31 = vadd.f32 %v580_v1, %v211_v21  ;;  %v259_v32 = vadd.f32 %v580_v1, %v212_v24  ;;  %v178_v20 = vld [vmem:[%s575_s17 + $0xf8] sm:$0xff] }
  0x25   : > { %v260_v33 = vadd.f32 %v580_v1, %v213_v25  ;;  %v386_v34 = vsel %vm297_vm15, %v255_v18, %v344_v28  ;;  %v214_v36 = vmul.f32 %v570_v0, %v167_v26  ;;  %v215_v37 = vmul.f32 %v570_v0, %v168_v27  ;;  %v179_v27 = vld [vmem:[%s575_s17 + $0x100] sm:$0xff]  ;;  %v180_v28 = vld [vmem:[%s575_s17 + $0x108] sm:$0xff] }
  0x26   : > { %v387_v35 = vsel %vm298_vm1, %v256_v19, %v345_v29  ;;  %429 = vst.msk [vmem:[%s612_s24 + $0x70] sm:$0xff] %vm414_vm0, %v386_v34  ;;  %vm299_vm2 = vcmp.gt.f32.partialorder %v257_v30, 0.0  ;;  %v346_v38 = vmul.f32 %v594_v11, %v257_v30  ;;  %vm300_vm3 = vcmp.gt.f32.partialorder %v258_v31, 0.0  ;;  %v177_v19 = vld [vmem:[%s575_s17 + $0xf0] sm:$0xff]  ;;  %v182_v34 = vld [vmem:[%s575_s17 + $0x118] sm:$0xff] }
  0x27   : > { %430 = vst.msk [vmem:[%s612_s24 + $0x78] sm:$0xff] %vm414_vm0, %v387_v35  ;;  %v347_v39 = vmul.f32 %v594_v11, %v258_v31  ;;  %vm301_vm4 = vcmp.gt.f32.partialorder %v259_v32, 0.0  ;;  %v348_v42 = vmul.f32 %v594_v11, %v259_v32  ;;  %vm302_vm5 = vcmp.gt.f32.partialorder %v260_v33, 0.0 }
  0x28   : > { %v349_v43 = vmul.f32 %v594_v11, %v260_v33  ;;  %v388_v44 = vsel %vm299_vm2, %v257_v30, %v346_v38  ;;  %v261_v46 = vadd.f32 %v580_v1, %v214_v36  ;;  %v262_v47 = vadd.f32 %v580_v1, %v215_v37 }
  0x29   : > { %v389_v45 = vsel %vm300_vm3, %v258_v31, %v347_v39  ;;  %431 = vst.msk [vmem:[%s612_s24 + $0x80] sm:$0xff] %vm414_vm0, %v388_v44  ;;  %v390_v50 = vsel %vm301_vm4, %v259_v32, %v348_v42  ;;  %v216_v52 = vmul.f32 %v570_v0, %v169_v40  ;;  %v217_v53 = vmul.f32 %v570_v0, %v170_v41 }
  0x2a   : > { %432 = vst.msk [vmem:[%s612_s24 + $0x88] sm:$0xff] %vm414_vm0, %v389_v45  ;;  %v391_v51 = vsel %vm302_vm5, %v260_v33, %v349_v43  ;;  %433 = vst.msk [vmem:[%s612_s24 + $0x90] sm:$0xff] %vm414_vm0, %v390_v50  ;;  %vm303_vm6 = vcmp.gt.f32.partialorder %v261_v46, 0.0  ;;  %v350_v56 = vmul.f32 %v594_v11, %v261_v46  ;;  %vm304_vm7 = vcmp.gt.f32.partialorder %v262_v47, 0.0  ;;  %v181_v33 = vld [vmem:[%s575_s17 + $0x110] sm:$0xff]  ;;  %v183_v45 = vld [vmem:[%s575_s17 + $0x120] sm:$0xff] }
  0x2b   : > { %434 = vst.msk [vmem:[%s612_s24 + $0x98] sm:$0xff] %vm414_vm0, %v391_v51  ;;  %v351_v57 = vmul.f32 %v594_v11, %v262_v47  ;;  %v263_v58 = vadd.f32 %v580_v1, %v216_v52  ;;  %v264_v59 = vadd.f32 %v580_v1, %v217_v53  ;;  %v218_v60 = vmul.f32 %v570_v0, %v171_v48 }
  0x2c   : > { %v219_v61 = vmul.f32 %v570_v0, %v172_v49  ;;  %v392_v62 = vsel %vm303_vm6, %v261_v46, %v350_v56  ;;  %v220_v2 = vmul.f32 %v570_v0, %v173_v54  ;;  %v221_v3 = vmul.f32 %v570_v0, %v174_v55  ;;  %v184_v46 = vld [vmem:[%s575_s17 + $0x128] sm:$0xff] }
  0x2d   : > { %v393_v63 = vsel %vm304_vm7, %v262_v47, %v351_v57  ;;  %435 = vst.msk [vmem:[%s612_s24 + $0xa0] sm:$0xff] %vm414_vm0, %v392_v62  ;;  %vm305_vm8 = vcmp.gt.f32.partialorder %v263_v58, 0.0  ;;  %v352_v6 = vmul.f32 %v594_v11, %v263_v58  ;;  %vm306_vm9 = vcmp.gt.f32.partialorder %v264_v59, 0.0 }
  0x2e   : > { %436 = vst.msk [vmem:[%s612_s24 + $0xa8] sm:$0xff] %vm414_vm0, %v393_v63  ;;  %v353_v7 = vmul.f32 %v594_v11, %v264_v59  ;;  %v265_v8 = vadd.f32 %v580_v1, %v218_v60  ;;  %v266_v9 = vadd.f32 %v580_v1, %v219_v61  ;;  %v267_v10 = vadd.f32 %v580_v1, %v220_v2  ;;  %v186_v60 = vld [vmem:[%s575_s17 + $0x138] sm:$0xff] }
  0x2f   : > { %v268_v12 = vadd.f32 %v580_v1, %v221_v3  ;;  %v394_v13 = vsel %vm305_vm8, %v263_v58, %v352_v6  ;;  %v222_v15 = vmul.f32 %v570_v0, %v175_v4  ;;  %v223_v16 = vmul.f32 %v570_v0, %v176_v5  ;;  %v187_v5 = vld [vmem:[%s575_s17 + $0x140] sm:$0xff]  ;;  %v188_v6 = vld [vmem:[%s575_s17 + $0x148] sm:$0xff] }
  0x30   : > { %v395_v14 = vsel %vm306_vm9, %v264_v59, %v353_v7  ;;  %437 = vst.msk [vmem:[%s612_s24 + $0xb0] sm:$0xff] %vm414_vm0, %v394_v13  ;;  %vm307_vm10 = vcmp.gt.f32.partialorder %v265_v8, 0.0  ;;  %v354_v17 = vmul.f32 %v594_v11, %v265_v8  ;;  %vm308_vm11 = vcmp.gt.f32.partialorder %v266_v9, 0.0  ;;  %v185_v59 = vld [vmem:[%s575_s17 + $0x130] sm:$0xff] }
  0x31   : > { %438 = vst.msk [vmem:[%s612_s24 + $0xb8] sm:$0xff] %vm414_vm0, %v395_v14  ;;  %v355_v18 = vmul.f32 %v594_v11, %v266_v9  ;;  %vm309_vm12 = vcmp.gt.f32.partialorder %v267_v10, 0.0  ;;  %v356_v21 = vmul.f32 %v594_v11, %v267_v10  ;;  %vm310_vm13 = vcmp.gt.f32.partialorder %v268_v12, 0.0 }
  0x32   : > { %v357_v22 = vmul.f32 %v594_v11, %v268_v12  ;;  %v396_v23 = vsel %vm307_vm10, %v265_v8, %v354_v17  ;;  %v269_v25 = vadd.f32 %v580_v1, %v222_v15  ;;  %v270_v26 = vadd.f32 %v580_v1, %v223_v16 }
  0x33   : > { %v397_v24 = vsel %vm308_vm11, %v266_v9, %v355_v18  ;;  %439 = vst.msk [vmem:[%s612_s24 + $0xc0] sm:$0xff] %vm414_vm0, %v396_v23  ;;  %v398_v29 = vsel %vm309_vm12, %v267_v10, %v356_v21  ;;  %v224_v31 = vmul.f32 %v570_v0, %v177_v19  ;;  %v225_v32 = vmul.f32 %v570_v0, %v178_v20 }
  0x34   : > { %440 = vst.msk [vmem:[%s612_s24 + $0xc8] sm:$0xff] %vm414_vm0, %v397_v24  ;;  %v399_v30 = vsel %vm310_vm13, %v268_v12, %v357_v22  ;;  %441 = vst.msk [vmem:[%s612_s24 + $0xd0] sm:$0xff] %vm414_vm0, %v398_v29  ;;  %vm311_vm14 = vcmp.gt.f32.partialorder %v269_v25, 0.0  ;;  %v358_v35 = vmul.f32 %v594_v11, %v269_v25  ;;  %vm312_vm15 = vcmp.gt.f32.partialorder %v270_v26, 0.0 }
  0x35   : > { %442 = vst.msk [vmem:[%s612_s24 + $0xd8] sm:$0xff] %vm414_vm0, %v399_v30  ;;  %v359_v36 = vmul.f32 %v594_v11, %v270_v26  ;;  %v271_v37 = vadd.f32 %v580_v1, %v224_v31  ;;  %v272_v38 = vadd.f32 %v580_v1, %v225_v32  ;;  %v226_v39 = vmul.f32 %v570_v0, %v179_v27 }
  0x36   : > { %v227_v40 = vmul.f32 %v570_v0, %v180_v28  ;;  %v400_v41 = vsel %vm311_vm14, %v269_v25, %v358_v35  ;;  %v228_v43 = vmul.f32 %v570_v0, %v181_v33  ;;  %v229_v44 = vmul.f32 %v570_v0, %v182_v34 }
  0x37   : > { %v401_v42 = vsel %vm312_vm15, %v270_v26, %v359_v36  ;;  %443 = vst.msk [vmem:[%s612_s24 + $0xe0] sm:$0xff] %vm414_vm0, %v400_v41  ;;  %vm313_vm1 = vcmp.gt.f32.partialorder %v271_v37, 0.0  ;;  %v360_v47 = vmul.f32 %v594_v11, %v271_v37  ;;  %vm314_vm2 = vcmp.gt.f32.partialorder %v272_v38, 0.0 }
  0x38   : > { %444 = vst.msk [vmem:[%s612_s24 + $0xe8] sm:$0xff] %vm414_vm0, %v401_v42  ;;  %v361_v48 = vmul.f32 %v594_v11, %v272_v38  ;;  %v273_v49 = vadd.f32 %v580_v1, %v226_v39  ;;  %v274_v50 = vadd.f32 %v580_v1, %v227_v40  ;;  %v275_v51 = vadd.f32 %v580_v1, %v228_v43 }
  0x39   : > { %v276_v52 = vadd.f32 %v580_v1, %v229_v44  ;;  %v402_v53 = vsel %vm313_vm1, %v271_v37, %v360_v47  ;;  %v230_v55 = vmul.f32 %v570_v0, %v183_v45  ;;  %v231_v56 = vmul.f32 %v570_v0, %v184_v46 }
  0x3a   : > { %v403_v54 = vsel %vm314_vm2, %v272_v38, %v361_v48  ;;  %445 = vst.msk [vmem:[%s612_s24 + $0xf0] sm:$0xff] %vm414_vm0, %v402_v53  ;;  %vm315_vm3 = vcmp.gt.f32.partialorder %v273_v49, 0.0  ;;  %v362_v57 = vmul.f32 %v594_v11, %v273_v49  ;;  %vm316_vm4 = vcmp.gt.f32.partialorder %v274_v50, 0.0 }
  0x3b   : > { %446 = vst.msk [vmem:[%s612_s24 + $0xf8] sm:$0xff] %vm414_vm0, %v403_v54  ;;  %v363_v58 = vmul.f32 %v594_v11, %v274_v50  ;;  %vm317_vm5 = vcmp.gt.f32.partialorder %v275_v51, 0.0  ;;  %v364_v61 = vmul.f32 %v594_v11, %v275_v51  ;;  %vm318_vm6 = vcmp.gt.f32.partialorder %v276_v52, 0.0 }
  0x3c   : > { %v365_v62 = vmul.f32 %v594_v11, %v276_v52  ;;  %v404_v63 = vsel %vm315_vm3, %v273_v49, %v362_v57  ;;  %v277_v3 = vadd.f32 %v580_v1, %v230_v55  ;;  %v278_v4 = vadd.f32 %v580_v1, %v231_v56 }
  0x3d   : > { %v405_v2 = vsel %vm316_vm4, %v274_v50, %v363_v58  ;;  %447 = vst.msk [vmem:[%s612_s24 + $0x100] sm:$0xff] %vm414_vm0, %v404_v63  ;;  %v406_v7 = vsel %vm317_vm5, %v275_v51, %v364_v61  ;;  %v232_v9 = vmul.f32 %v570_v0, %v185_v59  ;;  %v233_v10 = vmul.f32 %v570_v0, %v186_v60 }
  0x3e   : > { %448 = vst.msk [vmem:[%s612_s24 + $0x108] sm:$0xff] %vm414_vm0, %v405_v2  ;;  %v407_v8 = vsel %vm318_vm6, %v276_v52, %v365_v62  ;;  %449 = vst.msk [vmem:[%s612_s24 + $0x110] sm:$0xff] %vm414_vm0, %v406_v7  ;;  %vm319_vm7 = vcmp.gt.f32.partialorder %v277_v3, 0.0  ;;  %v366_v12 = vmul.f32 %v594_v11, %v277_v3  ;;  %vm320_vm8 = vcmp.gt.f32.partialorder %v278_v4, 0.0 }
  0x3f   : > { %450 = vst.msk [vmem:[%s612_s24 + $0x118] sm:$0xff] %vm414_vm0, %v407_v8  ;;  %v367_v13 = vmul.f32 %v594_v11, %v278_v4  ;;  %v279_v14 = vadd.f32 %v580_v1, %v232_v9  ;;  %v280_v15 = vadd.f32 %v580_v1, %v233_v10  ;;  %v234_v16 = vmul.f32 %v570_v0, %v187_v5 }
  0x40   : > { %v235_v17 = vmul.f32 %v570_v0, %v188_v6  ;;  %v408_v18 = vsel %vm319_vm7, %v277_v3, %v366_v12 }
  0x41   : > { %v409_v19 = vsel %vm320_vm8, %v278_v4, %v367_v13  ;;  %451 = vst.msk [vmem:[%s612_s24 + $0x120] sm:$0xff] %vm414_vm0, %v408_v18  ;;  %vm321_vm9 = vcmp.gt.f32.partialorder %v279_v14, 0.0  ;;  %v368_v20 = vmul.f32 %v594_v11, %v279_v14  ;;  %vm322_vm10 = vcmp.gt.f32.partialorder %v280_v15, 0.0 }
  0x42   : > { %452 = vst.msk [vmem:[%s612_s24 + $0x128] sm:$0xff] %vm414_vm0, %v409_v19  ;;  %v369_v21 = vmul.f32 %v594_v11, %v280_v15  ;;  %v281_v22 = vadd.f32 %v580_v1, %v234_v16  ;;  %v282_v23 = vadd.f32 %v580_v1, %v235_v17 }
  0x43   : > { %v410_v24 = vsel %vm321_vm9, %v279_v14, %v368_v20 }
  0x44   : > { %v411_v0 = vsel %vm322_vm10, %v280_v15, %v369_v21  ;;  %453 = vst.msk [vmem:[%s612_s24 + $0x130] sm:$0xff] %vm414_vm0, %v410_v24  ;;  %vm323_vm11 = vcmp.gt.f32.partialorder %v281_v22, 0.0  ;;  %v370_v25 = vmul.f32 %v594_v11, %v281_v22  ;;  %vm324_vm12 = vcmp.gt.f32.partialorder %v282_v23, 0.0 }
  0x45   : > { %454 = vst.msk [vmem:[%s612_s24 + $0x138] sm:$0xff] %vm414_vm0, %v411_v0  ;;  %v371_v26 = vmul.f32 %v594_v11, %v282_v23 }
  0x46   : > { %v412_v27 = vsel %vm323_vm11, %v281_v22, %v370_v25 }
  0x47   : > { %v413_v28 = vsel %vm324_vm12, %v282_v23, %v371_v26  ;;  %455 = vst.msk [vmem:[%s612_s24 + $0x140] sm:$0xff] %vm414_vm0, %v412_v27 }
  0x48   : > { %456 = vst.msk [vmem:[%s612_s24 + $0x148] sm:$0xff] %vm414_vm0, %v413_v28 }
  0x49 PF: > { %s12_s9 = sadd.s32 1, %s539_s9  }
  0x4a   : > { %p9_p4 = scmp.ge.s32.totalorder %s12_s9, 4  }
  0x4c   :  { %11 = sbr.rel (!%p9_p4) target bundleno = 1 (0x1), region = 58 }

// kernel: conv_block.2
= control target key start
LH: loop header
LB: loop body
LE: loop exit
PB: predicated region body
PF: predicated region fallthrough
CT: control target
= control target key end

     0   :  { %s6597_s15 = smov 0   ;;  %s9392_s0 = inlined_call_operand.vmem [shape: f32[2,374,4], index: 0, kind: input, shape index: {}]   ;;  %s9393_s1 = inlined_call_operand.vmem [shape: f32[9,4,8], index: 1, kind: input, shape index: {}]   ;;  %s9394_s2 = inlined_call_operand.vmem [shape: f32[672,1], index: 2, kind: input, shape index: {}]   ;;  %s9395_s3 = inlined_call_operand.vmem [shape: f32[672,8], index: 3, kind: output, shape index: {0}]   ;;  %s9396_s4 = inlined_call_operand.vmem [shape: f32[2,8,8], index: 4, kind: output, shape index: {1}]  }
   0x1 LB: > { %s6603_s16 = sadd.s32 4294967295, %s6568_s15   ;;  %p5105_p0 = scmp.ge.s32.totalorder %s6568_s15, 1  ;;  %s6568_s15 = sphi %s6597_s15, %s15_s15  }
   0x2   : > { %p176_p1 = scmp.lt.s32.totalorder %s6568_s15, 3 }
   0x4   : > { %p177_p2 = pnand %p5105_p0, %p176_p1 }
   0x6   : > { %180 = sbr.rel (%p177_p2) target bundleno = 721 (0x2d1), region = 32 }
   0xb   : > { %v5110_v0 = vld [vmem:[%s9393_s1 + $0x4] sm:$0xf]  ;;  %vm496_vm0 = vcmask 1043456   ;;  %p211_p3 = scmp.lt.s32.totalorder %s6603_s16, 1  ;;  %v5197_v1 = vld [vmem:[%s9393_s1 + $0x8] sm:$0xf] }
   0xc   : > { %5894 = vmatprep.subr.msk.mxu0 %vm496_vm0, %v5110_v0  ;;  %6479 = vmatprep.subr.msk.mxu1 %vm496_vm0, %v5110_v0  ;;  %v279_v2 = vld [vmem:[%s9393_s1] sm:$0xf]  ;;  %vm325_vm1 = vcmask 1046528   ;;  %vm411_vm2 = vcmask 31744   ;;  %v6705_v36 = vld [vmem:[%s9393_s1 + $0xc] sm:$0xf] }
   0xd   : > { %5895 = vmatpush3.msk.msra.mxu0 %vm496_vm0, %v5110_v0  ;;  %6480 = vmatpush3.msk.msra.mxu1 %vm496_vm0, %v5110_v0  ;;  %s6622_s23 = scalar_select %p211_p3, %s6603_s16, 1  ;;  %v6715_v40 = vld [vmem:[%s9393_s1 + $0x10] sm:$0xf]  ;;  %vm1139_vm3 = vcmask 1045504   ;;  %vm4345_vm4 = vcmask 7168   ;;  %vm1963_vm5 = vcmask 1044480  }
   0xe   : > { %6024 = vmatprep.subr.msk.mxu0 %vm496_vm0, %v5197_v1  ;;  %5959 = vmatprep.subr.msk.mxu1 %vm496_vm0, %v279_v2  ;;  %s216_s10 = smul.u32 42, %s6603_s16  ;;  %vm3278_vm6 = vcmask 1042432   ;;  %vm3770_vm7 = vcmask 1041408   ;;  %vm4260_vm8 = vcmask 64512   ;;  %s6571_s25 = smov 1.0   ;;  %vm4998_vm9 = vcmask 1040384  }
   0xf   : > { %s6481_s24 = smul.u32 376, %s6622_s23 }
  0x10   : > { %p217_p4 = scmp.lt.s32.totalorder %s216_s10, 83 }
  0x11   : > { %s6630_s27 = scalar_lea.vmem %s9392_s0, %s6481_s24 }
  0x12   : > { %v6633_v3 = vld [vmem:[%s6630_s27] sm:$0xff]  ;;  %v6636_v4 = vld [vmem:[%s6630_s27 + $0x8] sm:$0xff]  ;;  %v6639_v5 = vld [vmem:[%s6630_s27 + $0xb0] sm:$0xff]  ;;  %s9728_s10 = smov (!%p217_p4, %s216_s10), 83 }
  0x13   : > { %v326_v6 = vrot.slane %v6633_v3, 1  ;;  %v327_v7 = vrot.slane %v6636_v4, 1  ;;  %v6644_v8 = vld [vmem:[%s6630_s27 + $0xb8] sm:$0xff]  ;;  %v369_v9 = vrot.slane %v6639_v5, 1  ;;  %v6648_v10 = vld [vmem:[%s6630_s27 + $0x10] sm:$0xff]  ;;  %v6651_v11 = vld [vmem:[%s6630_s27 + $0xc0] sm:$0xff] }
  0x14   : > { %v371_v12 = vrot.slane %v6644_v8, 1  ;;  %v329_v13 = vrot.slane %v6648_v10, 1  ;;  %v373_v14 = vrot.slane %v6651_v11, 1  ;;  %v6657_v15 = vld [vmem:[%s6630_s27 + $0x18] sm:$0xff]  ;;  %v6660_v16 = vld [vmem:[%s6630_s27 + $0xc8] sm:$0xff]  ;;  %v6663_v17 = vld [vmem:[%s6630_s27 + $0x20] sm:$0xff] }
  0x15   : > { %v328_v18 = vsel %vm325_vm1, %v326_v6, %v327_v7  ;;  %v331_v19 = vrot.slane %v6657_v15, 1  ;;  %v375_v20 = vrot.slane %v6660_v16, 1  ;;  %v333_v21 = vrot.slane %v6663_v17, 1  ;;  %v6670_v22 = vld [vmem:[%s6630_s27 + $0xd0] sm:$0xff]  ;;  %v6673_v23 = vld [vmem:[%s6630_s27 + $0x28] sm:$0xff]  ;;  %v6676_v24 = vld [vmem:[%s6630_s27 + $0xd8] sm:$0xff] }
  0x16   : > { %5896 = vmatprep.mubr.msk.f32.mxu0 %vm411_vm2, %v328_v18  ;;  %v372_v25 = vsel %vm325_vm1, %v369_v9, %v371_v12  ;;  %v330_v26 = vsel %vm325_vm1, %v327_v7, %v329_v13  ;;  %v374_v27 = vsel %vm325_vm1, %v371_v12, %v373_v14  ;;  %v377_v28 = vrot.slane %v6670_v22, 1  ;;  %v6686_v29 = vld [vmem:[%s6630_s27 + $0x30] sm:$0xff]  ;;  %v6689_v30 = vld [vmem:[%s6630_s27 + $0xe0] sm:$0xff]  ;;  %v6692_v31 = vld [vmem:[%s6630_s27 + $0x38] sm:$0xff]  ;;  %s5107_s11 = sshll.u32 %s9728_s10, 3 }
  0x17   : > { %5929 = vmatprep.mubr.msk.f32.mxu1 %vm411_vm2, %v372_v25  ;;  %5897 = vmatmul.mubr.msk.f32.vlgmr.msra.gmra.mxu0 %vm411_vm2, %v330_v26  ;;  %v332_v32 = vsel %vm325_vm1, %v329_v13, %v331_v19  ;;  %v376_v33 = vsel %vm325_vm1, %v373_v14, %v375_v20  ;;  %v335_v34 = vrot.slane %v6673_v23, 1  ;;  %v6700_v35 = vld [vmem:[%s6630_s27 + $0xe8] sm:$0xff]  ;;  %v334_v37 = vsel %vm325_vm1, %v331_v19, %v333_v21  ;;  %v6724_v45 = vld [vmem:[%s6630_s27 + $0x40] sm:$0xff]  ;;  %v6730_v48 = vld [vmem:[%s6630_s27 + $0xf0] sm:$0xff]  ;;  %s7016_s14 = scalar_lea.vmem %s9394_s2, %s5107_s11  ;;  %s8795_s22 = scalar_lea.vmem %s9395_s3, %s5107_s11 }
  0x18   : > { %5930 = vmatmul.mubr.msk.f32.vlgmr.msra.gmra.mxu1 %vm411_vm2, %v374_v27  ;;  %6025 = vmatpush3.msk.msra.mxu0 %vm496_vm0, %v5197_v1  ;;  %v379_v38 = vrot.slane %v6676_v24, 1  ;;  %v337_v39 = vrot.slane %v6686_v29, 1  ;;  %v378_v41 = vsel %vm325_vm1, %v375_v20, %v377_v28  ;;  %v381_v43 = vrot.slane %v6689_v30, 1  ;;  %v6733_v49 = vld [vmem:[%s6630_s27 + $0x48] sm:$0xff]  ;;  %v6739_v50 = vld [vmem:[%s6630_s27 + $0xf8] sm:$0xff]  ;;  %v6753_v57 = vld [vmem:[%s6630_s27 + $0x50] sm:$0xff] }
  0x19   : > { %5960 = vmatpush3.msk.msra.mxu1 %vm496_vm0, %v279_v2  ;;  %5899 = vmatprep.mubr.msk.f32.mxu0 %vm411_vm2, %v332_v32  ;;  %v336_v42 = vsel %vm325_vm1, %v333_v21, %v335_v34  ;;  %v339_v44 = vrot.slane %v6692_v31, 1  ;;  %v383_v47 = vrot.slane %v6700_v35, 1  ;;  %v341_v52 = vrot.slane %v6724_v45, 1  ;;  %9498 = vst [vmem:[#allocation2_spill] sm:$0xff] %v6753_v57  ;;  %v6758_v60 = vld [vmem:[%s6630_s27 + $0x100] sm:$0xff]  ;;  %v6761_v61 = vld [vmem:[%s6630_s27 + $0x58] sm:$0xff] }
  0x1a   : > { %5932 = vmatprep.mubr.msk.f32.mxu1 %vm411_vm2, %v376_v33  ;;  %v380_v46 = vsel %vm325_vm1, %v377_v28, %v379_v38  ;;  %6089 = vmatprep.subr.msk.mxu1 %vm496_vm0, %v6705_v36  ;;  %v338_v51 = vsel %vm325_vm1, %v335_v34, %v337_v39  ;;  %v382_v53 = vsel %vm325_vm1, %v379_v38, %v381_v43  ;;  %v385_v55 = vrot.slane %v6730_v48, 1  ;;  %v6765_v62 = vld [vmem:[%s6630_s27 + $0x108] sm:$0xff]  ;;  %v6777_v12 = vld [vmem:[%s6630_s27 + $0x60] sm:$0xff]  ;;  %v6782_v18 = vld [vmem:[%s6630_s27 + $0x110] sm:$0xff] }
  0x1b   : > { %5900 = vmatmul.mubr.msk.f32.gmra.mxu0 %vm411_vm2, %v334_v37  ;;  %6154 = vmatprep.subr.msk.mxu0 %vm496_vm0, %v6715_v40  ;;  %v340_v54 = vsel %vm325_vm1, %v337_v39, %v339_v44  ;;  %v343_v56 = vrot.slane %v6733_v49, 1  ;;  %v384_v58 = vsel %vm325_vm1, %v381_v43, %v383_v47  ;;  %v387_v59 = vrot.slane %v6739_v50, 1  ;;  %9499 = vst [vmem:[#allocation3_spill] sm:$0xff] %v6761_v61  ;;  %v6785_v19 = vld [vmem:[%s6630_s27 + $0x68] sm:$0xff]  ;;  %v6789_v20 = vld [vmem:[%s6630_s27 + $0x118] sm:$0xff]  ;;  %v6801_v33 = vld [vmem:[%s6630_s27 + $0x70] sm:$0xff] }
  0x1c   : > { %5933 = vmatmul.mubr.msk.f32.gmra.mxu1 %vm411_vm2, %v378_v41  ;;  %5902 = vmatprep.mubr.msk.f32.mxu0 %vm411_vm2, %v336_v42  ;;  %v342_v63 = vsel %vm325_vm1, %v339_v44, %v341_v52  ;;  %v345_v0 = vrot.slane %v6753_v57, 1  ;;  %v386_v1 = vsel %vm325_vm1, %v383_v47, %v385_v55  ;;  %v389_v6 = vrot.slane %v6758_v60, 1  ;;  %9500 = vst [vmem:[#allocation4_spill] sm:$0xff] %v6777_v12  ;;  %v6806_v38 = vld [vmem:[%s6630_s27 + $0x120] sm:$0xff]  ;;  %v6809_v39 = vld [vmem:[%s6630_s27 + $0x78] sm:$0xff]  ;;  %v6813_v41 = vld [vmem:[%s6630_s27 + $0x128] sm:$0xff] }
  0x1d   : > { %5935 = vmatprep.mubr.msk.f32.mxu1 %vm411_vm2, %v380_v46  ;;  %v344_v2 = vsel %vm325_vm1, %v341_v52, %v343_v56  ;;  %v347_v7 = vrot.slane %v6761_v61, 1  ;;  %v388_v13 = vsel %vm325_vm1, %v385_v55, %v387_v59  ;;  %v391_v14 = vrot.slane %v6765_v62, 1  ;;  %9501 = vst [vmem:[#allocation5_spill] sm:$0xff] %v6785_v19  ;;  %9502 = vst [vmem:[#allocation6_spill] sm:$0xff] %v6801_v33  ;;  %v6825_v52 = vld [vmem:[%s6630_s27 + $0x80] sm:$0xff]  ;;  %v6830_v55 = vld [vmem:[%s6630_s27 + $0x130] sm:$0xff] }
  0x1e   : > { %v346_v21 = vsel %vm325_vm1, %v343_v56, %v345_v0  ;;  %v349_v25 = vrot.slane %v6777_v12, 1  ;;  %v390_v26 = vsel %vm325_vm1, %v387_v59, %v389_v6  ;;  %v393_v28 = vrot.slane %v6782_v18, 1  ;;  %9503 = vst [vmem:[#allocation7_spill] sm:$0xff] %v6809_v39  ;;  %9504 = vst [vmem:[#allocation8_spill] sm:$0xff] %v6825_v52  ;;  %v6833_v56 = vld [vmem:[%s6630_s27 + $0x88] sm:$0xff] }
  0x1f   : > { %5903 = vmatmul.mubr.msk.f32.gmra.mxu0 %vm411_vm2, %v338_v51  ;;  %v348_v27 = vsel %vm325_vm1, %v345_v0, %v347_v7  ;;  %v351_v32 = vrot.slane %v6785_v19, 1  ;;  %v392_v34 = vsel %vm325_vm1, %v389_v6, %v391_v14  ;;  %v395_v37 = vrot.slane %v6789_v20, 1  ;;  %9505 = vst [vmem:[#allocation9_spill] sm:$0xff] %v6833_v56 }
  0x20   : > { %5936 = vmatmul.mubr.msk.f32.gmra.mxu1 %vm411_vm2, %v382_v53  ;;  %5905 = vmatprep.mubr.msk.f32.mxu0 %vm411_vm2, %v340_v54  ;;  %v350_v42 = vsel %vm325_vm1, %v347_v7, %v349_v25  ;;  %v353_v43 = vrot.slane %v6801_v33, 1  ;;  %v394_v44 = vsel %vm325_vm1, %v391_v14, %v393_v28  ;;  %v397_v47 = vrot.slane %v6806_v38, 1  ;;  %v6849_v7 = vld [vmem:[%s6630_s27 + $0x90] sm:$0xff] }
  0x21   : > { %5938 = vmatprep.mubr.msk.f32.mxu1 %vm411_vm2, %v384_v58  ;;  %v352_v46 = vsel %vm325_vm1, %v349_v25, %v351_v32  ;;  %v355_v51 = vrot.slane %v6809_v39, 1  ;;  %v396_v53 = vsel %vm325_vm1, %v393_v28, %v395_v37  ;;  %v399_v54 = vrot.slane %v6813_v41, 1  ;;  %v6837_v58 = vld [vmem:[%s6630_s27 + $0x138] sm:$0xff] }
  0x22   : > { %v354_v59 = vsel %vm325_vm1, %v351_v32, %v353_v43  ;;  %v398_v0 = vsel %vm325_vm1, %v395_v37, %v397_v47  ;;  %v359_v6 = vrot.slane %v6833_v56, 1  ;;  %v403_v14 = vrot.slane %v6837_v58, 1  ;;  %v6857_v25 = vld [vmem:[%s6630_s27 + $0x98] sm:$0xff] }
  0x23   : > { %5906 = vmatmul.mubr.msk.f32.gmra.mxu0 %vm411_vm2, %v342_v63  ;;  %v357_v63 = vrot.slane %v6825_v52, 1  ;;  %v361_v28 = vrot.slane %v6849_v7, 1 }
  0x24   : > { %5939 = vmatmul.mubr.msk.f32.gmra.mxu1 %vm411_vm2, %v386_v1  ;;  %5908 = vmatprep.mubr.msk.f32.mxu0 %vm411_vm2, %v344_v2  ;;  %v356_v1 = vsel %vm325_vm1, %v353_v43, %v355_v51  ;;  %v401_v2 = vrot.slane %v6830_v55, 1  ;;  %v6873_v43 = vld [vmem:[%s6630_s27 + $0xa0] sm:$0xff] }
  0x25   : > { %5941 = vmatprep.mubr.msk.f32.mxu1 %vm411_vm2, %v388_v13  ;;  %v400_v13 = vsel %vm325_vm1, %v397_v47, %v399_v54  ;;  %9506 = vst [vmem:[#allocation10_spill] sm:$0xff] %v6873_v43  ;;  %v6878_v47 = vld [vmem:[%s6630_s27 + $0x150] sm:$0xff] }
  0x26   : > { %v402_v32 = vsel %vm325_vm1, %v399_v54, %v401_v2  ;;  %v365_v54 = vrot.slane %v6873_v43, 1 }
  0x27   : > { %5909 = vmatmul.mubr.msk.f32.gmra.mxu0 %vm411_vm2, %v346_v21  ;;  %v6854_v21 = vld [vmem:[%s6630_s27 + $0x140] sm:$0xff] }
  0x28   : > { %5942 = vmatmul.mubr.msk.f32.gmra.mxu1 %vm411_vm2, %v390_v26  ;;  %5911 = vmatprep.mubr.msk.f32.mxu0 %vm411_vm2, %v348_v27  ;;  %v6861_v26 = vld [vmem:[%s6630_s27 + $0x148] sm:$0xff]  ;;  %v358_v27 = vsel %vm325_vm1, %v355_v51, %v357_v63  ;;  %v405_v37 = vrot.slane %v6854_v21, 1 }
  0x29   : > { %5944 = vmatprep.mubr.msk.f32.mxu1 %vm411_vm2, %v392_v34  ;;  %v360_v34 = vsel %vm325_vm1, %v357_v63, %v359_v6  ;;  %v6881_v51 = vld [vmem:[%s6630_s27 + $0xa8] sm:$0xff] }
  0x2a   : > { %9507 = vst [vmem:[#allocation11_spill] sm:$0xff] %v6881_v51 }
  0x2b   : > { %5912 = vmatmul.mubr.msk.f32.gmra.mxu0 %vm411_vm2, %v350_v42  ;;  %v363_v42 = vrot.slane %v6857_v25, 1 }
  0x2c   : > { %5945 = vmatmul.mubr.msk.f32.gmra.mxu1 %vm411_vm2, %v394_v44  ;;  %5914 = vmatprep.mubr.msk.f32.mxu0 %vm411_vm2, %v352_v46  ;;  %v404_v44 = vsel %vm325_vm1, %v401_v2, %v403_v14  ;;  %v407_v46 = vrot.slane %v6861_v26, 1 }
  0x2d   : > { %5947 = vmatprep.mubr.msk.f32.mxu1 %vm411_vm2, %v396_v53  ;;  %v362_v53 = vsel %vm325_vm1, %v359_v6, %v361_v28  ;;  %v364_v63 = vsel %vm325_vm1, %v361_v28, %v363_v42  ;;  %v366_v6 = vsel %vm325_vm1, %v363_v42, %v365_v54  ;;  %v1141_v28 = vrot.slane %v6636_v4, 2 }
  0x2e   : > { %v408_v2 = vsel %vm325_vm1, %v405_v37, %v407_v46  ;;  %v1145_v42 = vrot.slane %v6657_v15, 2 }
  0x2f   : > { %5915 = vmatmul.mubr.msk.f32.gmra.mxu0 %vm411_vm2, %v354_v59  ;;  %v406_v59 = vsel %vm325_vm1, %v403_v14, %v405_v37 }
  0x30   : > { %5948 = vmatmul.mubr.msk.f32.gmra.mxu1 %vm411_vm2, %v398_v0  ;;  %5917 = vmatprep.mubr.msk.f32.mxu0 %vm411_vm2, %v356_v1  ;;  %v409_v0 = vrot.slane %v6878_v47, 1  ;;  %v367_v1 = vrot.slane %v6881_v51, 1 }
  0x31   : > { %5950 = vmatprep.mubr.msk.f32.mxu1 %vm411_vm2, %v400_v13 }
  0x32   : > { %v410_v13 = vsel %vm325_vm1, %v407_v46, %v409_v0  ;;  %v368_v14 = vsel %vm325_vm1, %v365_v54, %v367_v1  ;;  %v1149_v46 = vrot.slane %v6673_v23, 2  ;;  %v1151_v54 = vrot.slane %v6686_v29, 2 }
  0x33   : > { %5918 = vmatmul.mubr.msk.f32.gmra.mxu0 %vm411_vm2, %v358_v27  ;;  %v1140_v27 = vrot.slane %v6633_v3, 2  ;;  %v1155_v0 = vrot.slane %v6724_v45, 2 }
  0x34   : > { %5951 = vmatmul.mubr.msk.f32.gmra.mxu1 %vm411_vm2, %v402_v32  ;;  %5920 = vmatprep.mubr.msk.f32.mxu0 %vm411_vm2, %v360_v34  ;;  %v370_v32 = vsel %vm325_vm1, %v367_v1, %v369_v9  ;;  %v1143_v34 = vrot.slane %v6648_v10, 2 }
  0x35   : > { %5953 = vmatprep.mubr.msk.f32.mxu1 %vm411_vm2, %v404_v44  ;;  %v1142_v37 = vsel %vm1139_vm3, %v1140_v27, %v1141_v28  ;;  %v6918_v44 = vld [vmem:[%s9393_s1 + $0x14] sm:$0xf]  ;;  %v1161_v27 = vrot.slane %v6761_v61, 2 }
  0x36   : > { %v1144_v9 = vsel %vm1139_vm3, %v1141_v28, %v1143_v34 }
  0x37   : > { %5921 = vmatmul.mubr.msk.f32.gmra.mxu0 %vm411_vm2, %v362_v53  ;;  %v6931_v53 = vsel %vm1139_vm3, %v1143_v34, %v1145_v42 }
  0x38   : > { %5954 = vmatmul.mubr.msk.f32.gmra.mxu1 %vm411_vm2, %v406_v59  ;;  %5923 = vmatprep.mubr.msk.f32.mxu0 %vm411_vm2, %v364_v63  ;;  %v1153_v63 = vrot.slane %v6692_v31, 2 }
  0x39   : > { %5956 = vmatprep.mubr.msk.f32.mxu1 %vm411_vm2, %v408_v2  ;;  %v1157_v2 = vrot.slane %v6733_v49, 2 }
  0x3a   : > { %v6972_v1 = vsel %vm1139_vm3, %v1151_v54, %v1153_v63 }
  0x3b   : > { %5924 = vmatmul.mubr.msk.f32.gmra.mxu0 %vm411_vm2, %v366_v6  ;;  %v6983_v6 = vsel %vm1139_vm3, %v1153_v63, %v1155_v0  ;;  %v1167_v63 = vrot.slane %v6801_v33, 2 }
  0x3c   : > { %5957 = vmatmul.mubr.msk.f32.gmra.mxu1 %vm411_vm2, %v410_v13  ;;  %5926 = vmatprep.mubr.msk.f32.mxu0 %vm411_vm2, %v368_v14  ;;  %v1159_v13 = vrot.slane %v6753_v57, 2  ;;  %v6989_v14 = vsel %vm1139_vm3, %v1155_v0, %v1157_v2  ;;  %v7039_v0 = vld [vmem:[%s7016_s14 + $0x10] sm:$0xff] }
  0x3d   : > { %5961 = vmatprep.mubr.msk.f32.mxu1 %vm411_vm2, %v6633_v3  ;;  %v1147_v3 = vrot.slane %v6663_v17, 2  ;;  %9508 = vst [vmem:[#allocation12_spill] sm:$0xff] %v6989_v14 }
  0x3e   : > { %v7001_v28 = vsel %vm1139_vm3, %v1157_v2, %v1159_v13  ;;  %v7008_v34 = vsel %vm1139_vm3, %v1159_v13, %v1161_v27 }
  0x3f   : > { %5927 = vmatmul.mubr.msk.f32.gmra.mxu0 %vm411_vm2, %v370_v32  ;;  %v6954_v59 = vsel %vm1139_vm3, %v1147_v3, %v1149_v46  ;;  %9509 = vst [vmem:[#allocation13_spill] sm:$0xff] %v7001_v28  ;;  %v1163_v32 = vrot.slane %v6777_v12, 2  ;;  %9510 = vst [vmem:[#allocation14_spill] sm:$0xff] %v7008_v34 }
  0x40   : > { %5962 = vmatmul.mubr.msk.f32.vlgmr.msra.gmra.mxu1 %vm411_vm2, %v6636_v4  ;;  %6026 = vmatprep.mubr.msk.f32.mxu0 %vm411_vm2, %v1142_v37  ;;  %v6939_v4 = vld [vmem:[%s9393_s1 + $0x18] sm:$0xf]  ;;  %v1165_v37 = vrot.slane %v6785_v19, 2 }
  0x41   : > { %6090 = vmatpush3.msk.msra.mxu1 %vm496_vm0, %v6705_v36  ;;  %5964 = vmatprep.mubr.msk.f32.mxu1 %vm411_vm2, %v6648_v10  ;;  %v6946_v36 = vsel %vm1139_vm3, %v1145_v42, %v1147_v3  ;;  %v7019_v42 = vld [vmem:[%s7016_s14] sm:$0xff] }
  0x42   : > { %6219 = vmatprep.subr.msk.mxu1 %vm496_vm0, %v6918_v44  ;;  %v4346_v3 = vsel %vm4345_vm4, %v7019_v42, 0.0  ;;  %v7044_v13 = vsel %vm1139_vm3, %v1163_v32, %v1165_v37 }
  0x43   : > { %6027 = vmatmul.mubr.msk.f32.vlgmr.msra.gmra.mxu0 %vm411_vm2, %v1144_v9  ;;  %v7022_v9 = vld [vmem:[%s7016_s14 + $0x8] sm:$0xff]  ;;  %9512 = vst [vmem:[#allocation16_spill] sm:$0xff] %v7044_v13 }
  0x44   : > { %5965 = vmatmul.mubr.msk.f32.gmra.mxu1 %vm411_vm2, %v6657_v15  ;;  %6155 = vmatpush3.msk.msra.mxu0 %vm496_vm0, %v6715_v40  ;;  %v6966_v40 = vsel %vm1139_vm3, %v1149_v46, %v1151_v54  ;;  %v4347_v46 = vsel %vm4345_vm4, %v7022_v9, 0.0  ;;  %v7035_v54 = vsel %vm1139_vm3, %v1161_v27, %v1163_v32  ;;  %v7050_v27 = vld [vmem:[%s7016_s14 + $0x18] sm:$0xff]  ;;  %v7061_v32 = vsel %vm1139_vm3, %v1165_v37, %v1167_v63  ;;  %v7076_v37 = vld [vmem:[%s7016_s14 + $0x28] sm:$0xff] }
  0x45   : > { %5967 = vmatprep.mubr.msk.f32.mxu1 %vm411_vm2, %v6663_v17  ;;  %6029 = vmatprep.mubr.msk.f32.mxu0 %vm411_vm2, %v6931_v53  ;;  %9511 = vst [vmem:[#allocation15_spill] sm:$0xff] %v7035_v54  ;;  %v4348_v2 = vadd.f32 %v4347_v46, %v4346_v3  ;;  %v4351_v3 = vsel %vm4345_vm4, %v7050_v27, 0.0  ;;  %9513 = vst [vmem:[#allocation17_spill] sm:$0xff] %v7061_v32  ;;  %v1171_v46 = vrot.slane %v6825_v52, 2 }
  0x46   : > { %6284 = vmatprep.subr.msk.mxu0 %vm496_vm0, %v6939_v4 }
  0x47   : > { %6030 = vmatmul.mubr.msk.f32.gmra.mxu0 %vm411_vm2, %v6946_v36 }
  0x48   : > { %5968 = vmatmul.mubr.msk.f32.gmra.mxu1 %vm411_vm2, %v6673_v23  ;;  %6032 = vmatprep.mubr.msk.f32.mxu0 %vm411_vm2, %v6954_v59 }
  0x49   : > { %5970 = vmatprep.mubr.msk.f32.mxu1 %vm411_vm2, %v6686_v29 }
  0x4b   : > { %6033 = vmatmul.mubr.msk.f32.gmra.mxu0 %vm411_vm2, %v6966_v40 }
  0x4c   : > { %5971 = vmatmul.mubr.msk.f32.gmra.mxu1 %vm411_vm2, %v6692_v31  ;;  %6035 = vmatprep.mubr.msk.f32.mxu0 %vm411_vm2, %v6972_v1 }
  0x4d   : > { %5973 = vmatprep.mubr.msk.f32.mxu1 %vm411_vm2, %v6724_v45 }
  0x4f   : > { %6036 = vmatmul.mubr.msk.f32.gmra.mxu0 %vm411_vm2, %v6983_v6 }
  0x50   : > { %5974 = vmatmul.mubr.msk.f32.gmra.mxu1 %vm411_vm2, %v6733_v49  ;;  %6038 = vmatprep.mubr.msk.f32.mxu0 %vm411_vm2, %v6989_v14  ;;  %v7122_v14 = vld [vmem:[%s7016_s14 + $0x40] sm:$0xff] }
  0x51   : > { %5976 = vmatprep.mubr.msk.f32.mxu1 %vm411_vm2, %v6753_v57 }
  0x53   : > { %6039 = vmatmul.mubr.msk.f32.gmra.mxu0 %vm411_vm2, %v7001_v28  ;;  %v1169_v28 = vrot.slane %v6809_v39, 2 }
  0x54   : > { %5977 = vmatmul.mubr.msk.f32.gmra.mxu1 %vm411_vm2, %v6761_v61  ;;  %6041 = vmatprep.mubr.msk.f32.mxu0 %vm411_vm2, %v7008_v34  ;;  %v4349_v34 = vsel %vm4345_vm4, %v7039_v0, 0.0 }
  0x55   : > { %5979 = vmatprep.mubr.msk.f32.mxu1 %vm411_vm2, %v6777_v12  ;;  %v4350_v61 = vadd.f32 %v4349_v34, %v4348_v2  ;;  %v7065_v12 = vld [vmem:[%s7016_s14 + $0x20] sm:$0xff]  ;;  %v7070_v2 = vsel %vm1139_vm3, %v1167_v63, %v1169_v28  ;;  %v7087_v63 = vsel %vm1139_vm3, %v1169_v28, %v1171_v46  ;;  %v7102_v28 = vld [vmem:[%s7016_s14 + $0x38] sm:$0xff] }
  0x56   : > { %9514 = vst [vmem:[#allocation18_spill] sm:$0xff] %v7070_v2  ;;  %9515 = vst [vmem:[#allocation19_spill] sm:$0xff] %v7087_v63 }
  0x57   : > { %6042 = vmatmul.mubr.msk.f32.gmra.mxu0 %vm411_vm2, %v7035_v54  ;;  %v4352_v34 = vadd.f32 %v4351_v3, %v4350_v61  ;;  %v1173_v54 = vrot.slane %v6833_v56, 2  ;;  %v4355_v61 = vsel %vm4345_vm4, %v7076_v37, 0.0  ;;  %v1175_v3 = vrot.slane %v6849_v7, 2 }
  0x58   : > { %5980 = vmatmul.mubr.msk.f32.gmra.mxu1 %vm411_vm2, %v6785_v19  ;;  %6044 = vmatprep.mubr.msk.f32.mxu0 %vm411_vm2, %v7044_v13  ;;  %v4353_v13 = vsel %vm4345_vm4, %v7065_v12, 0.0 }
  0x59   : > { %5982 = vmatprep.mubr.msk.f32.mxu1 %vm411_vm2, %v6801_v33  ;;  %v4354_v19 = vadd.f32 %v4353_v13, %v4352_v34  ;;  %v7091_v33 = vld [vmem:[%s7016_s14 + $0x30] sm:$0xff]  ;;  %v7096_v34 = vsel %vm1139_vm3, %v1171_v46, %v1173_v54  ;;  %v4359_v46 = vsel %vm4345_vm4, %v7102_v28, 0.0 }
  0x5a   : > { %9516 = vst [vmem:[#allocation20_spill] sm:$0xff] %v7096_v34 }
  0x5b   : > { %6045 = vmatmul.mubr.msk.f32.gmra.mxu0 %vm411_vm2, %v7061_v32  ;;  %v4356_v13 = vadd.f32 %v4355_v61, %v4354_v19  ;;  %v1177_v32 = vrot.slane %v6857_v25, 2  ;;  %v1179_v19 = vrot.slane %v6873_v43, 2  ;;  %v7108_v61 = vld [vmem:[%s6630_s27 + $0x158] sm:$0xff] }
  0x5c   : > { %5983 = vmatmul.mubr.msk.f32.gmra.mxu1 %vm411_vm2, %v6809_v39  ;;  %6047 = vmatprep.mubr.msk.f32.mxu0 %vm411_vm2, %v7070_v2  ;;  %v4357_v2 = vsel %vm4345_vm4, %v7091_v33, 0.0  ;;  %9517 = vst [vmem:[#allocation21_spill] sm:$0xff] %v7108_v61 }
  0x5d   : > { %5985 = vmatprep.mubr.msk.f32.mxu1 %vm411_vm2, %v6825_v52  ;;  %v4358_v39 = vadd.f32 %v4357_v2, %v4356_v13  ;;  %v7117_v2 = vsel %vm1139_vm3, %v1173_v54, %v1175_v3  ;;  %v9417_v13 = vrot.slane %v6878_v47, 2  ;;  %v7127_v57 = vsel %vm1139_vm3, %v1175_v3, %v1177_v32 }
  0x5e   : > { %9518 = vst [vmem:[#allocation22_spill] sm:$0xff] %v7117_v2  ;;  %9519 = vst [vmem:[#allocation23_spill] sm:$0xff] %v7127_v57  ;;  %v4361_v54 = vsel %vm4345_vm4, %v7122_v14, 0.0 }
  0x5f   : > { %6048 = vmatmul.mubr.msk.f32.gmra.mxu0 %vm411_vm2, %v7087_v63  ;;  %v9416_v63 = vrot.slane %v7108_v61, 2  ;;  %v4360_v52 = vadd.f32 %v4359_v46, %v4358_v39  ;;  %v7151_v61 = vsel %vm1139_vm3, %v1177_v32, %v1179_v19  ;;  %v7166_v32 = vld [vmem:[%s7016_s14 + $0x58] sm:$0xff] }
  0x60   : > { %5986 = vmatmul.mubr.msk.f32.gmra.mxu1 %vm411_vm2, %v6833_v56  ;;  %6050 = vmatprep.mubr.msk.f32.mxu0 %vm411_vm2, %v7096_v34  ;;  %v1181_v56 = vrot.slane %v6881_v51, 2  ;;  %v7140_v34 = vld [vmem:[%s7016_s14 + $0x48] sm:$0xff]  ;;  %9521 = vst [vmem:[#allocation25_spill] sm:$0xff] %v7151_v61 }
  0x61   : > { %5988 = vmatprep.mubr.msk.f32.mxu1 %vm411_vm2, %v6849_v7  ;;  %v7137_v39 = vsel %vm1139_vm3, %v9417_v13, %v9416_v63  ;;  %v4362_v46 = vadd.f32 %v4361_v54, %v4360_v52  ;;  %v4363_v3 = vsel %vm4345_vm4, %v7140_v34, 0.0  ;;  %v1183_v52 = vrot.slane %v6639_v5, 2  ;;  %v7155_v63 = vld [vmem:[%s7016_s14 + $0x50] sm:$0xff] }
  0x62   : > { %9520 = vst [vmem:[#allocation24_spill] sm:$0xff] %v7137_v39  ;;  %v7160_v13 = vsel %vm1139_vm3, %v1179_v19, %v1181_v56  ;;  %v1185_v39 = vrot.slane %v6644_v8, 2 }
  0x63   : > { %6051 = vmatmul.mubr.msk.f32.gmra.mxu0 %vm411_vm2, %v7117_v2  ;;  %v4364_v54 = vadd.f32 %v4363_v3, %v4362_v46  ;;  %9522 = vst [vmem:[#allocation26_spill] sm:$0xff] %v7160_v13  ;;  %v4367_v46 = vsel %vm4345_vm4, %v7166_v32, 0.0  ;;  %v7177_v19 = vsel %vm1139_vm3, %v1181_v56, %v1183_v52  ;;  %v1187_v3 = vrot.slane %v6651_v11, 2 }
  0x64   : > { %5989 = vmatmul.mubr.msk.f32.gmra.mxu1 %vm411_vm2, %v6857_v25  ;;  %6053 = vmatprep.mubr.msk.f32.mxu0 %vm411_vm2, %v7127_v57  ;;  %v4365_v57 = vsel %vm4345_vm4, %v7155_v63, 0.0  ;;  %9523 = vst [vmem:[#allocation27_spill] sm:$0xff] %v7177_v19 }
  0x65   : > { %5991 = vmatprep.mubr.msk.f32.mxu1 %vm411_vm2, %v6873_v43  ;;  %v4366_v2 = vadd.f32 %v4365_v57, %v4364_v54  ;;  %v7181_v43 = vld [vmem:[%s7016_s14 + $0x60] sm:$0xff]  ;;  %v7186_v54 = vsel %vm1139_vm3, %v1183_v52, %v1185_v39  ;;  %v1191_v52 = vrot.slane %v6670_v22, 2 }
  0x66   : > { %9524 = vst [vmem:[#allocation28_spill] sm:$0xff] %v7186_v54 }
  0x67   : > { %6054 = vmatmul.mubr.msk.f32.gmra.mxu0 %vm411_vm2, %v7151_v61  ;;  %v4368_v57 = vadd.f32 %v4367_v46, %v4366_v2  ;;  %v1189_v61 = vrot.slane %v6660_v16, 2  ;;  %v7207_v46 = vld [vmem:[%s7016_s14 + $0x70] sm:$0xff] }
  0x68   : > { %5992 = vmatmul.mubr.msk.f32.gmra.mxu1 %vm411_vm2, %v6881_v51  ;;  %6056 = vmatprep.mubr.msk.f32.mxu0 %vm411_vm2, %v7160_v13  ;;  %v4369_v13 = vsel %vm4345_vm4, %v7181_v43, 0.0  ;;  %v7192_v51 = vld [vmem:[%s7016_s14 + $0x68] sm:$0xff] }
  0x69   : > { %5994 = vmatprep.mubr.msk.f32.mxu1 %vm411_vm2, %v6639_v5  ;;  %v4370_v56 = vadd.f32 %v4369_v13, %v4368_v57  ;;  %v4371_v2 = vsel %vm4345_vm4, %v7192_v51, 0.0  ;;  %v7203_v5 = vsel %vm1139_vm3, %v1185_v39, %v1187_v3  ;;  %v7212_v57 = vsel %vm1139_vm3, %v1187_v3, %v1189_v61  ;;  %v4319_v3 = vld [vmem:[%s7016_s14 + $0x80] sm:$0xff] }
  0x6a   : > { %v4373_v39 = vsel %vm4345_vm4, %v7207_v46, 0.0 }
  0x6b   : > { %6057 = vmatmul.mubr.msk.f32.gmra.mxu0 %vm411_vm2, %v7177_v19  ;;  %v4372_v13 = vadd.f32 %v4371_v2, %v4370_v56  ;;  %v6570_v19 = vmov 0  }
  0x6c   : > { %5995 = vmatmul.mubr.msk.f32.gmra.mxu1 %vm411_vm2, %v6644_v8  ;;  %6059 = vmatprep.mubr.msk.f32.mxu0 %vm411_vm2, %v7186_v54  ;;  %v1193_v8 = vrot.slane %v6676_v24, 2  ;;  %v7219_v54 = vld [vmem:[%s7016_s14 + $0x78] sm:$0xff] }
  0x6d   : > { %5997 = vmatprep.mubr.msk.f32.mxu1 %vm411_vm2, %v6651_v11  ;;  %6495 = vset.pattern.permute.xlu1 %v6570_v19  ;;  %v4374_v56 = vadd.f32 %v4373_v39, %v4372_v13  ;;  %v4375_v11 = vsel %vm4345_vm4, %v7219_v54, 0.0  ;;  %v1197_v13 = vrot.slane %v6700_v35, 2  ;;  %v7244_v39 = vld [vmem:[%s7016_s14 + $0x88] sm:$0xff] }
  0x6e   : > { %4451 = vperm.xlu1 %6495, %v7039_v0   ;;  %6494 = vset.pattern.permute.xlu0 %v6570_v19  ;;  %v7231_v0 = vsel %vm1139_vm3, %v1189_v61, %v1191_v52  ;;  %v1195_v19 = vrot.slane %v6689_v30, 2 }
  0x6f   : > { %6060 = vmatmul.mubr.msk.f32.gmra.mxu0 %vm411_vm2, %v7203_v5  ;;  %4441 = vperm.xlu0 %6494, %v7019_v42   ;;  %v4376_v2 = vadd.f32 %v4375_v11, %v4374_v56  ;;  %v7238_v42 = vsel %vm1139_vm3, %v1191_v52, %v1193_v8  ;;  %v1199_v52 = vrot.slane %v6730_v48, 2  ;;  %v7260_v56 = vld [vmem:[%s7016_s14 + $0x90] sm:$0xff] }
  0x70   : > { %5998 = vmatmul.mubr.msk.f32.gmra.mxu1 %vm411_vm2, %v6660_v16  ;;  %6062 = vmatprep.mubr.msk.f32.mxu0 %vm411_vm2, %v7212_v57  ;;  %v4377_v16 = vsel %vm4345_vm4, %v4319_v3, 0.0 }
  0x71   : > { %6000 = vmatprep.mubr.msk.f32.mxu1 %vm411_vm2, %v6670_v22  ;;  %v4378_v61 = vadd.f32 %v4377_v16, %v4376_v2  ;;  %v4379_v22 = vsel %vm4345_vm4, %v7244_v39, 0.0  ;;  %v4381_v2 = vsel %vm4345_vm4, %v7260_v56, 0.0 }
  0x72   : > { %4456 = vperm.xlu1 %6495, %v7050_v27   ;;  %v7256_v27 = vsel %vm1139_vm3, %v1193_v8, %v1195_v19  ;;  %v7272_v8 = vld [vmem:[%s7016_s14 + $0x98] sm:$0xff] }
  0x73   : > { %6063 = vmatmul.mubr.msk.f32.gmra.mxu0 %vm411_vm2, %v7231_v0  ;;  %4446 = vperm.xlu0 %6494, %v7022_v9   ;;  %v4380_v11 = vadd.f32 %v4379_v22, %v4378_v61  ;;  %v7265_v9 = vsel %vm1139_vm3, %v1195_v19, %v1197_v13  ;;  %v1203_v19 = vrot.slane %v6758_v60, 2  ;;  %v7288_v61 = vld [vmem:[%s7016_s14 + $0xa0] sm:$0xff] }
  0x74   : > { %6001 = vmatmul.mubr.msk.f32.gmra.mxu1 %vm411_vm2, %v6676_v24  ;;  %6065 = vmatprep.mubr.msk.f32.mxu0 %vm411_vm2, %v7238_v42  ;;  %v1201_v24 = vrot.slane %v6739_v50, 2 }
  0x75   : > { %6003 = vmatprep.mubr.msk.f32.mxu1 %vm411_vm2, %v6689_v30  ;;  %v4382_v16 = vadd.f32 %v4381_v2, %v4380_v11  ;;  %v4383_v30 = vsel %vm4345_vm4, %v7272_v8, 0.0  ;;  %v4385_v11 = vsel %vm4345_vm4, %v7288_v61, 0.0 }
  0x76   : > { %4466 = vperm.xlu1 %6495, %v7076_v37   ;;  %v7284_v37 = vsel %vm1139_vm3, %v1197_v13, %v1199_v52  ;;  %v4324_v13 = vld [vmem:[%s7016_s14 + $0xa8] sm:$0xff] }
  0x77   : > { %6066 = vmatmul.mubr.msk.f32.gmra.mxu0 %vm411_vm2, %v7256_v27  ;;  %4461 = vperm.xlu0 %6494, %v7065_v12   ;;  %v4384_v22 = vadd.f32 %v4383_v30, %v4382_v16  ;;  %v7293_v12 = vsel %vm1139_vm3, %v1199_v52, %v1201_v24  ;;  %v4387_v16 = vsel %vm4345_vm4, %v4324_v13, 0.0  ;;  %v7312_v52 = vld [vmem:[%s7016_s14 + $0xb0] sm:$0xff] }
  0x78   : > { %6004 = vmatmul.mubr.msk.f32.gmra.mxu1 %vm411_vm2, %v6700_v35  ;;  %6068 = vmatprep.mubr.msk.f32.mxu0 %vm411_vm2, %v7265_v9  ;;  %v1205_v35 = vrot.slane %v6765_v62, 2 }
  0x79   : > { %6006 = vmatprep.mubr.msk.f32.mxu1 %vm411_vm2, %v6730_v48  ;;  %v4386_v2 = vadd.f32 %v4385_v11, %v4384_v22  ;;  %v7308_v48 = vsel %vm1139_vm3, %v1201_v24, %v1203_v19  ;;  %v4389_v22 = vsel %vm4345_vm4, %v7312_v52, 0.0  ;;  %v4326_v24 = vld [vmem:[%s7016_s14 + $0xb8] sm:$0xff] }
  0x7a   : > { %4521 = vperm.xlu1 %6495, %v4319_v3   ;;  %v1207_v3 = vrot.slane %v6782_v18, 2 }
  0x7b   : > { %6069 = vmatmul.mubr.msk.f32.gmra.mxu0 %vm411_vm2, %v7284_v37  ;;  %4471 = vperm.xlu0 %6494, %v7091_v33   ;;  %v4388_v30 = vadd.f32 %v4387_v16, %v4386_v2  ;;  %v7317_v33 = vsel %vm1139_vm3, %v1203_v19, %v1205_v35  ;;  %v4391_v2 = vsel %vm4345_vm4, %v4326_v24, 0.0  ;;  %v1211_v19 = vrot.slane %v6806_v38, 2 }
  0x7c   : > { %6007 = vmatmul.mubr.msk.f32.gmra.mxu1 %vm411_vm2, %v6739_v50  ;;  %6071 = vmatprep.mubr.msk.f32.mxu0 %vm411_vm2, %v7293_v12  ;;  %v1209_v50 = vrot.slane %v6789_v20, 2 }
  0x7d   : > { %6009 = vmatprep.mubr.msk.f32.mxu1 %vm411_vm2, %v6758_v60  ;;  %v4390_v11 = vadd.f32 %v4389_v22, %v4388_v30  ;;  %v7332_v60 = vsel %vm1139_vm3, %v1205_v35, %v1207_v3  ;;  %v7347_v22 = vld [vmem:[%s7016_s14 + $0xc8] sm:$0xff] }
  0x7e   : > { %4546 = vperm.xlu1 %6495, %v4324_v13   ;;  %v7336_v13 = vld [vmem:[%s7016_s14 + $0xc0] sm:$0xff] }
  0x7f   : > { %6072 = vmatmul.mubr.msk.f32.gmra.mxu0 %vm411_vm2, %v7308_v48  ;;  %4476 = vperm.xlu0 %6494, %v7102_v28   ;;  %v4392_v16 = vadd.f32 %v4391_v2, %v4390_v11  ;;  %v7341_v28 = vsel %vm1139_vm3, %v1207_v3, %v1209_v50  ;;  %v4393_v30 = vsel %vm4345_vm4, %v7336_v13, 0.0  ;;  %v7359_v3 = vsel %vm1139_vm3, %v1209_v50, %v1211_v19  ;;  %v7363_v11 = vld [vmem:[%s7016_s14 + $0xd0] sm:$0xff]  ;;  %v7374_v50 = vld [vmem:[%s7016_s14 + $0xd8] sm:$0xff] }
  0x80   : > { %6010 = vmatmul.mubr.msk.f32.gmra.mxu1 %vm411_vm2, %v6765_v62  ;;  %6074 = vmatprep.mubr.msk.f32.mxu0 %vm411_vm2, %v7317_v33  ;;  %v1213_v62 = vrot.slane %v6813_v41, 2 }
  0x81   : > { %6012 = vmatprep.mubr.msk.f32.mxu1 %vm411_vm2, %v6782_v18  ;;  %v4394_v35 = vadd.f32 %v4393_v30, %v4392_v16  ;;  %v4395_v18 = vsel %vm4345_vm4, %v7347_v22, 0.0  ;;  %v4397_v16 = vsel %vm4345_vm4, %v7363_v11, 0.0 }
  0x82   : > { %4556 = vperm.xlu1 %6495, %v4326_v24   ;;  %v1215_v24 = vrot.slane %v6830_v55, 2 }
  0x83   : > { %6075 = vmatmul.mubr.msk.f32.gmra.mxu0 %vm411_vm2, %v7332_v60  ;;  %4481 = vperm.xlu0 %6494, %v7122_v14   ;;  %v4396_v2 = vadd.f32 %v4395_v18, %v4394_v35  ;;  %v7368_v14 = vsel %vm1139_vm3, %v1211_v19, %v1213_v62  ;;  %v1219_v35 = vrot.slane %v6854_v21, 2  ;;  %v7390_v18 = vld [vmem:[%s7016_s14 + $0xe0] sm:$0xff] }
  0x84   : > { %6013 = vmatmul.mubr.msk.f32.gmra.mxu1 %vm411_vm2, %v6789_v20  ;;  %6077 = vmatprep.mubr.msk.f32.mxu0 %vm411_vm2, %v7341_v28  ;;  %9525 = vst [vmem:[#allocation29_spill] sm:$0xff] %v7368_v14  ;;  %v1217_v20 = vrot.slane %v6837_v58, 2  ;;  %v7386_v19 = vsel %vm1139_vm3, %v1213_v62, %v1215_v24 }
  0x85   : > { %6015 = vmatprep.mubr.msk.f32.mxu1 %vm411_vm2, %v6806_v38  ;;  %v4398_v30 = vadd.f32 %v4397_v16, %v4396_v2  ;;  %v4399_v38 = vsel %vm4345_vm4, %v7374_v50, 0.0  ;;  %v4401_v16 = vsel %vm4345_vm4, %v7390_v18, 0.0 }
  0x87   : > { %6078 = vmatmul.mubr.msk.f32.gmra.mxu0 %vm411_vm2, %v7359_v3  ;;  %4486 = vperm.xlu0 %6494, %v7140_v34   ;;  %v4400_v2 = vadd.f32 %v4399_v38, %v4398_v30  ;;  %v7395_v34 = vsel %vm1139_vm3, %v1215_v24, %v1217_v20  ;;  %v7413_v24 = vsel %vm1139_vm3, %v1217_v20, %v1219_v35  ;;  %v7416_v30 = vld [vmem:[%s7016_s14 + $0xf0] sm:$0xff]  ;;  %v7428_v20 = vld [vmem:[%s7016_s14 + $0xf8] sm:$0xff] }
  0x88   : > { %6016 = vmatmul.mubr.msk.f32.gmra.mxu1 %vm411_vm2, %v6813_v41  ;;  %6080 = vmatprep.mubr.msk.f32.mxu0 %vm411_vm2, %v7368_v14  ;;  %9526 = vst [vmem:[#allocation30_spill] sm:$0xff] %v7395_v34  ;;  %v1221_v41 = vrot.slane %v6861_v26, 2  ;;  %v7401_v14 = vld [vmem:[%s7016_s14 + $0xe8] sm:$0xff] }
  0x89   : > { %6018 = vmatprep.mubr.msk.f32.mxu1 %vm411_vm2, %v6830_v55  ;;  %v4402_v62 = vadd.f32 %v4401_v16, %v4400_v2  ;;  %v4403_v55 = vsel %vm4345_vm4, %v7401_v14, 0.0  ;;  %v1964_v2 = vrot.slane %v6648_v10, 3  ;;  %v4405_v16 = vsel %vm4345_vm4, %v7416_v30, 0.0 }
  0x8a   : > { %v9527_v10 = vrot.slane %v6878_v47, 2  ;;  %v7455_v47 = vld [vmem:[%s7016_s14 + $0x108] sm:$0xff] }
  0x8b   : > { %6081 = vmatmul.mubr.msk.f32.gmra.mxu0 %vm411_vm2, %v7386_v19  ;;  %4491 = vperm.xlu0 %6494, %v7155_v63   ;;  %v4404_v38 = vadd.f32 %v4403_v55, %v4402_v62  ;;  %v7421_v63 = vsel %vm1139_vm3, %v1219_v35, %v1221_v41  ;;  %v1967_v35 = vrot.slane %v6663_v17, 3  ;;  %v7446_v62 = vld [vmem:[%s7016_s14 + $0x100] sm:$0xff]  ;;  %v7462_v17 = vld [vmem:[%s9393_s1 + $0x1c] sm:$0xf] }
  0x8c   : > { %6019 = vmatmul.mubr.msk.f32.gmra.mxu1 %vm411_vm2, %v6837_v58  ;;  %6083 = vmatprep.mubr.msk.f32.mxu0 %vm411_vm2, %v7395_v34  ;;  %v1965_v58 = vrot.slane %v6657_v15, 3  ;;  %v7442_v15 = vsel %vm1139_vm3, %v1221_v41, %v9527_v10  ;;  %v1975_v10 = vrot.slane %v6724_v45, 3  ;;  %v7516_v45 = vld [vmem:[%s7016_s14 + $0x128] sm:$0xff] }
  0x8d   : > { %6021 = vmatprep.mubr.msk.f32.mxu1 %vm411_vm2, %v6854_v21  ;;  %v4406_v34 = vadd.f32 %v4405_v16, %v4404_v38  ;;  %v4407_v21 = vsel %vm4345_vm4, %v7428_v20, 0.0  ;;  %v1969_v38 = vrot.slane %v6673_v23, 3 }
  0x8e   : > { %v1968_v23 = vsel %vm1963_vm5, %v1965_v58, %v1967_v35 }
  0x8f   : > { %6084 = vmatmul.mubr.msk.f32.gmra.mxu0 %vm411_vm2, %v7413_v24  ;;  %4496 = vperm.xlu0 %6494, %v7166_v32   ;;  %v4408_v55 = vadd.f32 %v4407_v21, %v4406_v34  ;;  %v1966_v32 = vsel %vm1963_vm5, %v1964_v2, %v1965_v58  ;;  %v1971_v34 = vrot.slane %v6686_v29, 3  ;;  %v7473_v2 = vld [vmem:[%s7016_s14 + $0x110] sm:$0xff]  ;;  %v1970_v21 = vsel %vm1963_vm5, %v1967_v35, %v1969_v38  ;;  %v7486_v29 = vld [vmem:[%s7016_s14 + $0x118] sm:$0xff]  ;;  %v7504_v35 = vld [vmem:[%s7016_s14 + $0x120] sm:$0xff] }
  0x90   : > { %6022 = vmatmul.mubr.msk.f32.gmra.mxu1 %vm411_vm2, %v6861_v26  ;;  %6086 = vmatprep.mubr.msk.f32.mxu0 %vm411_vm2, %v7421_v63  ;;  %v4409_v26 = vsel %vm4345_vm4, %v7446_v62, 0.0 }
  0x91   : > { %6091 = vmatprep.mubr.msk.f32.mxu1 %vm411_vm2, %v6931_v53  ;;  %v4410_v41 = vadd.f32 %v4409_v26, %v4408_v55  ;;  %v4411_v53 = vsel %vm4345_vm4, %v7455_v47, 0.0  ;;  %v9528_v26 = vld [vmem:[#allocation2_spill] sm:$0xff] }
  0x93   : > { %6087 = vmatmul.mubr.msk.f32.gmra.mxu0 %vm411_vm2, %v7442_v15  ;;  %4501 = vperm.xlu0 %6494, %v7181_v43   ;;  %v4412_v16 = vadd.f32 %v4411_v53, %v4410_v41  ;;  %v1973_v43 = vrot.slane %v6692_v31, 3  ;;  %v4415_v31 = vsel %vm4345_vm4, %v7486_v29, 0.0  ;;  %v7528_v41 = vld [vmem:[%s7016_s14 + $0x130] sm:$0xff] }
  0x94   : > { %6092 = vmatmul.mubr.msk.f32.vlgmr.msra.gmra.mxu1 %vm411_vm2, %v6946_v36  ;;  %6156 = vmatprep.mubr.msk.f32.mxu0 %vm411_vm2, %v1966_v32  ;;  %v4413_v36 = vsel %vm4345_vm4, %v7473_v2, 0.0 }
  0x95   : > { %6220 = vmatpush3.msk.msra.mxu1 %vm496_vm0, %v6918_v44  ;;  %6094 = vmatprep.mubr.msk.f32.mxu1 %vm411_vm2, %v6954_v59  ;;  %v4414_v58 = vadd.f32 %v4413_v36, %v4412_v16  ;;  %v7492_v44 = vld [vmem:[%s9393_s1 + $0x20] sm:$0xf]  ;;  %v1972_v59 = vsel %vm1963_vm5, %v1969_v38, %v1971_v34  ;;  %v1979_v38 = vrot.slane %v9528_v26, 3  ;;  %v9530_v16 = vld [vmem:[#allocation3_spill] sm:$0xff]  ;;  %v7537_v36 = vld [vmem:[%s7016_s14 + $0x138] sm:$0xff] }
  0x96   : > { %6349 = vmatprep.subr.msk.mxu1 %vm496_vm0, %v7462_v17  ;;  %v7558_v26 = vld [vmem:[%s7016_s14 + $0x148] sm:$0xff] }
  0x97   : > { %6157 = vmatmul.mubr.msk.f32.vlgmr.msra.gmra.mxu0 %vm411_vm2, %v1968_v23  ;;  %4506 = vperm.xlu0 %6494, %v7192_v51   ;;  %v4416_v55 = vadd.f32 %v4415_v31, %v4414_v58  ;;  %v1974_v51 = vsel %vm1963_vm5, %v1971_v34, %v1973_v43  ;;  %v9529_v23 = vld [vmem:[#allocation12_spill] sm:$0xff]  ;;  %v9531_v58 = vld [vmem:[#allocation13_spill] sm:$0xff] }
  0x98   : > { %6095 = vmatmul.mubr.msk.f32.gmra.mxu1 %vm411_vm2, %v6966_v40  ;;  %6285 = vmatpush3.msk.msra.mxu0 %vm496_vm0, %v6939_v4  ;;  %v1977_v40 = vrot.slane %v6733_v49, 3  ;;  %v4417_v4 = vsel %vm4345_vm4, %v7504_v35, 0.0  ;;  %v1976_v49 = vsel %vm1963_vm5, %v1973_v43, %v1975_v10 }
  0x99   : > { %6097 = vmatprep.mubr.msk.f32.mxu1 %vm411_vm2, %v6972_v1  ;;  %6159 = vmatprep.mubr.msk.f32.mxu0 %vm411_vm2, %v1970_v21  ;;  %v4418_v32 = vadd.f32 %v4417_v4, %v4416_v55  ;;  %v4419_v1 = vsel %vm4345_vm4, %v7516_v45, 0.0  ;;  %v4423_v21 = vsel %vm4345_vm4, %v7537_v36, 0.0  ;;  %v7549_v55 = vld [vmem:[%s7016_s14 + $0x140] sm:$0xff] }
  0x9a   : > { %6414 = vmatprep.subr.msk.mxu0 %vm496_vm0, %v7492_v44  ;;  %v1978_v34 = vsel %vm1963_vm5, %v1975_v10, %v1977_v40  ;;  %v1980_v31 = vsel %vm1963_vm5, %v1977_v40, %v1979_v38  ;;  %v9533_v4 = vld [vmem:[#allocation14_spill] sm:$0xff]  ;;  %v4427_v40 = vsel %vm4345_vm4, %v7558_v26, 0.0 }
  0x9b   : > { %6160 = vmatmul.mubr.msk.f32.gmra.mxu0 %vm411_vm2, %v1972_v59  ;;  %4511 = vperm.xlu0 %6494, %v7207_v46   ;;  %v4420_v53 = vadd.f32 %v4419_v1, %v4418_v32  ;;  %v1981_v46 = vrot.slane %v9530_v16, 3  ;;  %v9532_v59 = vld [vmem:[#allocation4_spill] sm:$0xff]  ;;  %v9534_v1 = vld [vmem:[#allocation5_spill] sm:$0xff] }
  0x9c   : > { %6098 = vmatmul.mubr.msk.f32.gmra.mxu1 %vm411_vm2, %v6983_v6  ;;  %6162 = vmatprep.mubr.msk.f32.mxu0 %vm411_vm2, %v1974_v51  ;;  %v4421_v6 = vsel %vm4345_vm4, %v7528_v41, 0.0  ;;  %v1983_v10 = vrot.slane %v9532_v59, 3  ;;  %v9540_v59 = vld [vmem:[#allocation8_spill] sm:$0xff] }
  0x9d   : > { %6100 = vmatprep.mubr.msk.f32.mxu1 %vm411_vm2, %v9529_v23  ;;  %v4422_v43 = vadd.f32 %v4421_v6, %v4420_v53  ;;  %v1982_v32 = vsel %vm1963_vm5, %v1979_v38, %v1981_v46  ;;  %v9535_v23 = vld [vmem:[#allocation15_spill] sm:$0xff] }
  0x9e   : > { %v1984_v38 = vsel %vm1963_vm5, %v1981_v46, %v1983_v10 }
  0x9f   : > { %6163 = vmatmul.mubr.msk.f32.gmra.mxu0 %vm411_vm2, %v1976_v49  ;;  %4516 = vperm.xlu0 %6494, %v7219_v54   ;;  %v4424_v51 = vadd.f32 %v4423_v21, %v4422_v43  ;;  %v1985_v49 = vrot.slane %v9534_v1, 3  ;;  %v4425_v54 = vsel %vm4345_vm4, %v7549_v55, 0.0  ;;  %v9537_v43 = vld [vmem:[#allocation16_spill] sm:$0xff] }
  0xa0   : > { %6101 = vmatmul.mubr.msk.f32.gmra.mxu1 %vm411_vm2, %v9531_v58  ;;  %6165 = vmatprep.mubr.msk.f32.mxu0 %vm411_vm2, %v1978_v34  ;;  %v9536_v34 = vld [vmem:[#allocation6_spill] sm:$0xff]  ;;  %v9538_v58 = vld [vmem:[#allocation7_spill] sm:$0xff] }
  0xa1   : > { %6103 = vmatprep.mubr.msk.f32.mxu1 %vm411_vm2, %v9533_v4  ;;  %v4426_v53 = vadd.f32 %v4425_v54, %v4424_v51  ;;  %v1987_v16 = vrot.slane %v9536_v34, 3  ;;  %v1986_v21 = vsel %vm1963_vm5, %v1983_v10, %v1985_v49  ;;  %v1991_v51 = vrot.slane %v9540_v59, 3  ;;  %v9541_v4 = vld [vmem:[#allocation18_spill] sm:$0xff]  ;;  %v7620_v59 = vld [vmem:[%s6630_s27 + $0xb8] sm:$0xff] }
  0xa2   : > { %v1995_v54 = vrot.slane %v6849_v7, 3 }
  0xa3   : > { %6166 = vmatmul.mubr.msk.f32.gmra.mxu0 %vm411_vm2, %v1980_v31  ;;  %4526 = vperm.xlu0 %6494, %v7244_v39   ;;  %v4428_v6 = vadd.f32 %v4427_v40, %v4426_v53  ;;  %v1989_v31 = vrot.slane %v9538_v58, 3  ;;  %v9539_v39 = vld [vmem:[#allocation17_spill] sm:$0xff]  ;;  %v1988_v46 = vsel %vm1963_vm5, %v1985_v49, %v1987_v16  ;;  %v9544_v53 = vld [vmem:[#allocation20_spill] sm:$0xff] }
  0xa4   : > { %6104 = vmatmul.mubr.msk.f32.gmra.mxu1 %vm411_vm2, %v9535_v23  ;;  %6168 = vmatprep.mubr.msk.f32.mxu0 %vm411_vm2, %v1982_v32  ;;  %v9542_v32 = vld [vmem:[#allocation9_spill] sm:$0xff]  ;;  %v1997_v23 = vrot.slane %v6857_v25, 3  ;;  %v9548_v25 = vld [vmem:[#allocation11_spill] sm:$0xff]  ;;  %v7613_v58 = vld [vmem:[%s6630_s27 + $0xb0] sm:$0xff] }
  0xa5   : > { %6106 = vmatprep.mubr.msk.f32.mxu1 %vm411_vm2, %v9537_v43  ;;  %v1990_v10 = vsel %vm1963_vm5, %v1987_v16, %v1989_v31  ;;  %v1993_v1 = vrot.slane %v9542_v32, 3  ;;  %v1992_v49 = vsel %vm1963_vm5, %v1989_v31, %v1991_v51  ;;  %v9547_v16 = vld [vmem:[#allocation23_spill] sm:$0xff]  ;;  %v2001_v43 = vrot.slane %v9548_v25, 3 }
  0xa6   : > { %4429 = vadd.xlane.f32.xlu1 %v4428_v6  ;;  %v1998_v6 = vsel %vm1963_vm5, %v1995_v54, %v1997_v23  ;;  %v2003_v31 = vrot.slane %v7613_v58, 3 }
  0xa7   : > { %6169 = vmatmul.mubr.msk.f32.gmra.mxu0 %vm411_vm2, %v1984_v38  ;;  %4531 = vperm.xlu0 %6494, %v7260_v56   ;;  %v9543_v56 = vld [vmem:[#allocation19_spill] sm:$0xff]  ;;  %v1994_v40 = vsel %vm1963_vm5, %v1991_v51, %v1993_v1  ;;  %v1996_v7 = vsel %vm1963_vm5, %v1993_v1, %v1995_v54  ;;  %v9546_v38 = vld [vmem:[#allocation10_spill] sm:$0xff]  ;;  %v9552_v1 = vld [vmem:[#allocation28_spill] sm:$0xff] }
  0xa8   : > { %6107 = vmatmul.mubr.msk.f32.gmra.mxu1 %vm411_vm2, %v9539_v39  ;;  %6171 = vmatprep.mubr.msk.f32.mxu0 %vm411_vm2, %v1986_v21  ;;  %v1999_v34 = vrot.slane %v9546_v38, 3  ;;  %v9550_v39 = vld [vmem:[#allocation26_spill] sm:$0xff]  ;;  %v9551_v51 = vld [vmem:[#allocation27_spill] sm:$0xff] }
  0xa9   : > { %6109 = vmatprep.mubr.msk.f32.mxu1 %vm411_vm2, %v9541_v4  ;;  %v2004_v4 = vsel %vm1963_vm5, %v2001_v43, %v2003_v31 }
  0xaa   : > { %v2000_v21 = vsel %vm1963_vm5, %v1997_v23, %v1999_v34  ;;  %v7655_v23 = vld [vmem:[%s6630_s27 + $0xd8] sm:$0xff] }
  0xab   : > { %6172 = vmatmul.mubr.msk.f32.gmra.mxu0 %vm411_vm2, %v1988_v46  ;;  %4536 = vperm.xlu0 %6494, %v7272_v8   ;;  %v9545_v8 = vld [vmem:[#allocation22_spill] sm:$0xff]  ;;  %v2002_v46 = vsel %vm1963_vm5, %v1999_v34, %v2001_v43  ;;  %v7691_v34 = vld [vmem:[%s6630_s27 + $0xf8] sm:$0xff] }
  0xac   : > { %6110 = vmatmul.mubr.msk.f32.gmra.mxu1 %vm411_vm2, %v9543_v56  ;;  %6174 = vmatprep.mubr.msk.f32.mxu0 %vm411_vm2, %v1990_v10  ;;  %v7630_v10 = vld [vmem:[%s6630_s27 + $0xc0] sm:$0xff]  ;;  %v7727_v43 = vld [vmem:[%s6630_s27 + $0x118] sm:$0xff] }
  0xad   : > { %6112 = vmatprep.mubr.msk.f32.mxu1 %vm411_vm2, %v9544_v53  ;;  %v2007_v32 = vrot.slane %v7630_v10, 3  ;;  %v7648_v53 = vld [vmem:[%s6630_s27 + $0xd0] sm:$0xff] }
  0xaf   : > { %6175 = vmatmul.mubr.msk.f32.gmra.mxu0 %vm411_vm2, %v1992_v49  ;;  %4541 = vperm.xlu0 %6494, %v7288_v61   ;;  %v9549_v61 = vld [vmem:[#allocation25_spill] sm:$0xff]  ;;  %v7637_v49 = vld [vmem:[%s6630_s27 + $0xc8] sm:$0xff] }
  0xb0   : > { %6113 = vmatmul.mubr.msk.f32.gmra.mxu1 %vm411_vm2, %v9545_v8  ;;  %6177 = vmatprep.mubr.msk.f32.mxu0 %vm411_vm2, %v1994_v40  ;;  %v2011_v40 = vrot.slane %v7648_v53, 3 }
  0xb1   : > { %6115 = vmatprep.mubr.msk.f32.mxu1 %vm411_vm2, %v9547_v16 }
  0xb3   : > { %6178 = vmatmul.mubr.msk.f32.gmra.mxu0 %vm411_vm2, %v1996_v7  ;;  %4551 = vperm.xlu0 %6494, %v7312_v52   ;;  %v2005_v52 = vrot.slane %v7620_v59, 3  ;;  %v7673_v7 = vld [vmem:[%s6630_s27 + $0xe8] sm:$0xff] }
  0xb4   : > { %6116 = vmatmul.mubr.msk.f32.gmra.mxu1 %vm411_vm2, %v9549_v61  ;;  %6180 = vmatprep.mubr.msk.f32.mxu0 %vm411_vm2, %v1998_v6  ;;  %v7709_v6 = vld [vmem:[%s6630_s27 + $0x108] sm:$0xff] }
  0xb5   : > { %6118 = vmatprep.mubr.msk.f32.mxu1 %vm411_vm2, %v9550_v39  ;;  %v2006_v56 = vsel %vm1963_vm5, %v2003_v31, %v2005_v52  ;;  %v2008_v54 = vsel %vm1963_vm5, %v2005_v52, %v2007_v32  ;;  %v9553_v39 = vld [vmem:[#allocation29_spill] sm:$0xff] }
  0xb7   : > { %6181 = vmatmul.mubr.msk.f32.gmra.mxu0 %vm411_vm2, %v2000_v21  ;;  %4566 = vperm.xlu1 %6495, %v7347_v22   ;;  %v2009_v22 = vrot.slane %v7637_v49, 3  ;;  %v7745_v21 = vld [vmem:[%s6630_s27 + $0x128] sm:$0xff] }
  0xb8   : > { %6119 = vmatmul.mubr.msk.f32.gmra.mxu1 %vm411_vm2, %v9551_v51  ;;  %6183 = vmatprep.mubr.msk.f32.mxu0 %vm411_vm2, %v2002_v46  ;;  %v7763_v46 = vld [vmem:[%s6630_s27 + $0x138] sm:$0xff] }
  0xb9   : > { %6121 = vmatprep.mubr.msk.f32.mxu1 %vm411_vm2, %v9552_v1  ;;  %4561 = vperm.xlu0 %6494, %v7336_v13   ;;  %v2010_v13 = vsel %vm1963_vm5, %v2007_v32, %v2009_v22  ;;  %v9554_v1 = vld [vmem:[#allocation30_spill] sm:$0xff] }
  0xbb   : > { %6184 = vmatmul.mubr.msk.f32.gmra.mxu0 %vm411_vm2, %v2004_v4  ;;  %4576 = vperm.xlu1 %6495, %v7374_v50   ;;  %v2013_v50 = vrot.slane %v7655_v23, 3  ;;  %v7778_v4 = vld [vmem:[%s6630_s27 + $0x140] sm:$0xff] }
  0xbc   : > { %6122 = vmatmul.mubr.msk.f32.gmra.mxu1 %vm411_vm2, %v7203_v5  ;;  %6186 = vmatprep.mubr.msk.f32.mxu0 %vm411_vm2, %v2006_v56  ;;  %v2012_v5 = vsel %vm1963_vm5, %v2009_v22, %v2011_v40  ;;  %v7787_v56 = vld [vmem:[%s6630_s27 + $0x148] sm:$0xff] }
  0xbd   : > { %6124 = vmatprep.mubr.msk.f32.mxu1 %vm411_vm2, %v7212_v57  ;;  %4571 = vperm.xlu0 %6494, %v7363_v11   ;;  %v7666_v57 = vld [vmem:[%s6630_s27 + $0xe0] sm:$0xff]  ;;  %v2014_v11 = vsel %vm1963_vm5, %v2011_v40, %v2013_v50 }
  0xbe   : > { %v2015_v8 = vrot.slane %v7666_v57, 3 }
  0xbf   : > { %6187 = vmatmul.mubr.msk.f32.gmra.mxu0 %vm411_vm2, %v2008_v54  ;;  %4586 = vperm.xlu1 %6495, %v7401_v14   ;;  %v2017_v14 = vrot.slane %v7673_v7, 3  ;;  %v7794_v54 = vld [vmem:[%s6630_s27 + $0x160] sm:$0xff] }
  0xc0   : > { %6125 = vmatmul.mubr.msk.f32.gmra.mxu1 %vm411_vm2, %v7231_v0  ;;  %6189 = vmatprep.mubr.msk.f32.mxu0 %vm411_vm2, %v2010_v13  ;;  %v2016_v0 = vsel %vm1963_vm5, %v2013_v50, %v2015_v8 }
  0xc1   : > { %6127 = vmatprep.mubr.msk.f32.mxu1 %vm411_vm2, %v7238_v42  ;;  %4581 = vperm.xlu0 %6494, %v7390_v18   ;;  %v7684_v42 = vld [vmem:[%s6630_s27 + $0xf0] sm:$0xff]  ;;  %v2018_v18 = vsel %vm1963_vm5, %v2015_v8, %v2017_v14 }
  0xc2   : > { %v2019_v38 = vrot.slane %v7684_v42, 3 }
  0xc3   : > { %6190 = vmatmul.mubr.msk.f32.gmra.mxu0 %vm411_vm2, %v2012_v5  ;;  %4596 = vperm.xlu1 %6495, %v7428_v20   ;;  %v2021_v20 = vrot.slane %v7691_v34, 3 }
  0xc4   : > { %6128 = vmatmul.mubr.msk.f32.gmra.mxu1 %vm411_vm2, %v7256_v27  ;;  %6192 = vmatprep.mubr.msk.f32.mxu0 %vm411_vm2, %v2014_v11  ;;  %v2020_v27 = vsel %vm1963_vm5, %v2017_v14, %v2019_v38  ;;  %v1635_v14 = vrot.slane %v7794_v54, 2 }
  0xc5   : > { %6130 = vmatprep.mubr.msk.f32.mxu1 %vm411_vm2, %v7265_v9  ;;  %4591 = vperm.xlu0 %6494, %v7416_v30   ;;  %v7702_v9 = vld [vmem:[%s6630_s27 + $0x100] sm:$0xff]  ;;  %v2022_v30 = vsel %vm1963_vm5, %v2019_v38, %v2021_v20 }
  0xc6   : > { %v2023_v16 = vrot.slane %v7702_v9, 3 }
  0xc7   : > { %6193 = vmatmul.mubr.msk.f32.gmra.mxu0 %vm411_vm2, %v2016_v0  ;;  %4606 = vperm.xlu1 %6495, %v7455_v47   ;;  %v2025_v47 = vrot.slane %v7709_v6, 3  ;;  %v9555_v0 = vld [vmem:[#allocation21_spill] sm:$0xff] }
  0xc8   : > { %6131 = vmatmul.mubr.msk.f32.gmra.mxu1 %vm411_vm2, %v7284_v37  ;;  %6195 = vmatprep.mubr.msk.f32.mxu0 %vm411_vm2, %v2018_v18  ;;  %v2024_v37 = vsel %vm1963_vm5, %v2021_v20, %v2023_v16  ;;  %v2045_v38 = vrot.slane %v9555_v0, 3  ;;  %v6519_v18 = vld [vmem:[%s6630_s27 + $0x10] sm:$0xff] }
  0xc9   : > { %6133 = vmatprep.mubr.msk.f32.mxu1 %vm411_vm2, %v7293_v12  ;;  %4601 = vperm.xlu0 %6494, %v7446_v62   ;;  %v7720_v12 = vld [vmem:[%s6630_s27 + $0x110] sm:$0xff]  ;;  %v2026_v62 = vsel %vm1963_vm5, %v2023_v16, %v2025_v47  ;;  %v2455_v20 = vrot.slane %v6519_v18, 4 }
  0xca   : > { %v2027_v25 = vrot.slane %v7720_v12, 3 }
  0xcb   : > { %6196 = vmatmul.mubr.msk.f32.gmra.mxu0 %vm411_vm2, %v2020_v27  ;;  %4616 = vperm.xlu1 %6495, %v7486_v29   ;;  %v2029_v29 = vrot.slane %v7727_v43, 3  ;;  %v6520_v27 = vld [vmem:[%s6630_s27 + $0x18] sm:$0xff] }
  0xcc   : > { %6134 = vmatmul.mubr.msk.f32.gmra.mxu1 %vm411_vm2, %v7308_v48  ;;  %6198 = vmatprep.mubr.msk.f32.mxu0 %vm411_vm2, %v2022_v30  ;;  %v2028_v48 = vsel %vm1963_vm5, %v2025_v47, %v2027_v25  ;;  %v2456_v16 = vrot.slane %v6520_v27, 4 }
  0xcd   : > { %6136 = vmatprep.mubr.msk.f32.mxu1 %vm411_vm2, %v7317_v33  ;;  %4611 = vperm.xlu0 %6494, %v7473_v2   ;;  %v7738_v33 = vld [vmem:[%s6630_s27 + $0x120] sm:$0xff]  ;;  %v2030_v2 = vsel %vm1963_vm5, %v2027_v25, %v2029_v29 }
  0xce   : > { %v2031_v61 = vrot.slane %v7738_v33, 3 }
  0xcf   : > { %6199 = vmatmul.mubr.msk.f32.gmra.mxu0 %vm411_vm2, %v2024_v37  ;;  %4626 = vperm.xlu1 %6495, %v7516_v45   ;;  %v2033_v45 = vrot.slane %v7745_v21, 3  ;;  %v2047_v37 = vrot.slane %v7794_v54, 3 }
  0xd0   : > { %6137 = vmatmul.mubr.msk.f32.gmra.mxu1 %vm411_vm2, %v7332_v60  ;;  %6201 = vmatprep.mubr.msk.f32.mxu0 %vm411_vm2, %v2026_v62  ;;  %v2032_v60 = vsel %vm1963_vm5, %v2029_v29, %v2031_v61  ;;  %v9558_v62 = vld [vmem:[#allocation24_spill] sm:$0xff]  ;;  %v9559_v29 = vrot.slane %v9555_v0, 2 }
  0xd1   : > { %6139 = vmatprep.mubr.msk.f32.mxu1 %vm411_vm2, %v7341_v28  ;;  %4621 = vperm.xlu0 %6494, %v7504_v35   ;;  %v7756_v28 = vld [vmem:[%s6630_s27 + $0x130] sm:$0xff]  ;;  %v2034_v35 = vsel %vm1963_vm5, %v2031_v61, %v2033_v45 }
  0xd2   : > { %v2035_v31 = vrot.slane %v7756_v28, 3 }
  0xd3   : > { %6202 = vmatmul.mubr.msk.f32.gmra.mxu0 %vm411_vm2, %v2028_v48  ;;  %4636 = vperm.xlu1 %6495, %v7537_v36   ;;  %v2037_v36 = vrot.slane %v7763_v46, 3  ;;  %v1636_v48 = vsel %vm1139_vm3, %v9559_v29, %v1635_v14 }
  0xd4   : > { %6140 = vmatmul.mubr.msk.f32.gmra.mxu1 %vm411_vm2, %v7359_v3  ;;  %6204 = vmatprep.mubr.msk.f32.mxu0 %vm411_vm2, %v2030_v2  ;;  %v2036_v51 = vsel %vm1963_vm5, %v2033_v45, %v2035_v31  ;;  %v7839_v2 = vld [vmem:[%s6630_s27 + $0x20] sm:$0xff]  ;;  %v7843_v45 = vld [vmem:[%s6630_s27 + $0x28] sm:$0xff] }
  0xd5   : > { %6142 = vmatprep.mubr.msk.f32.mxu1 %vm411_vm2, %v9553_v39  ;;  %4631 = vperm.xlu0 %6494, %v7528_v41   ;;  %v2039_v41 = vrot.slane %v7778_v4, 3  ;;  %v2457_v39 = vsel %vm496_vm0, %v2455_v20, %v2456_v16  ;;  %v7881_v20 = vld [vmem:[%s6630_s27 + $0x40] sm:$0xff] }
  0xd6   : > { %9566 = vst [vmem:[#allocation6_spill] sm:$0xff] %v7881_v20  ;;  %v2466_v27 = vrot.slane %v7881_v20, 4 }
  0xd7   : > { %v7767_v3 = vpop.f32.mrf.mxu0  ;;  %6205 = vmatmul.mubr.msk.f32.gmra.mxu0 %vm411_vm2, %v2032_v60  ;;  %4646 = vperm.xlu1 %6495, %v7558_v26   ;;  %v2038_v26 = vsel %vm1963_vm5, %v2035_v31, %v2037_v36  ;;  %v2040_v50 = vsel %vm1963_vm5, %v2037_v36, %v2039_v41  ;;  %v2460_v60 = vrot.slane %v7843_v45, 4 }
  0xd8   : > { %v7771_v52 = vpop.f32.mrf.mxu1  ;;  %6143 = vmatmul.mubr.msk.f32.gmra.mxu1 %vm411_vm2, %v7386_v19  ;;  %6207 = vmatprep.mubr.msk.f32.mxu0 %vm411_vm2, %v2034_v35  ;;  %v2041_v19 = vrot.slane %v7787_v56, 3 }
  0xd9   : > { %v7781_v32 = vpop.f32.mrf.mxu0  ;;  %6145 = vmatprep.mubr.msk.f32.mxu1 %vm411_vm2, %v9554_v1  ;;  %4641 = vperm.xlu0 %6494, %v7549_v55   ;;  %v7806_v55 = vld [vmem:[%s6630_s27 + $0x150] sm:$0xff] }
  0xda   : > { %v7791_v22 = vpop.f32.mrf.mxu1  ;;  %v2043_v5 = vrot.slane %v7806_v55, 3  ;;  %v2042_v11 = vsel %vm1963_vm5, %v2039_v41, %v2041_v19  ;;  %v7858_v41 = vld [vmem:[%s6630_s27 + $0x30] sm:$0xff] }
  0xdb   : > { %v7796_v40 = vpop.f32.mrf.mxu0  ;;  %6208 = vmatmul.mubr.msk.f32.gmra.mxu0 %vm411_vm2, %v2036_v51  ;;  %v2048_v51 = vsel %vm1963_vm5, %v2045_v38, %v2047_v37  ;;  %9562 = vst [vmem:[#allocation4_spill] sm:$0xff] %v7858_v41  ;;  %v2462_v1 = vrot.slane %v7858_v41, 4 }
  0xdc   : > { %v7799_v13 = vpop.f32.mrf.mxu1  ;;  %6146 = vmatmul.mubr.msk.f32.gmra.mxu1 %vm411_vm2, %v7413_v24  ;;  %6210 = vmatprep.mubr.msk.f32.mxu0 %vm411_vm2, %v2038_v26  ;;  %v2046_v61 = vsel %vm1963_vm5, %v2043_v5, %v2045_v38 }
  0xdd   : > { %v7809_v8 = vpop.f32.mrf.mxu0  ;;  %6148 = vmatprep.mubr.msk.f32.mxu1 %vm411_vm2, %v7421_v63  ;;  %v2044_v63 = vsel %vm1963_vm5, %v2041_v19, %v2043_v5  ;;  %v2463_v18 = vsel %vm496_vm0, %v2460_v60, %v2462_v1 }
  0xde   : > { %v7816_v24 = vpop.f32.mrf.mxu1 }
  0xdf   : > { %9556 = vst [vmem:[#allocation2_spill] sm:$0xff] %v7816_v24  ;;  %v7820_v30 = vpop.f32.mrf.mxu0  ;;  %6211 = vmatmul.mubr.msk.f32.gmra.mxu0 %vm411_vm2, %v2040_v50 }
  0xe0   : > { %v7823_v47 = vpop.f32.mrf.mxu1  ;;  %6149 = vmatmul.mubr.msk.f32.gmra.mxu1 %vm411_vm2, %v7442_v15  ;;  %6213 = vmatprep.mubr.msk.f32.mxu0 %vm411_vm2, %v2042_v11  ;;  %v2458_v15 = vrot.slane %v7839_v2, 4  ;;  %v7869_v11 = vld [vmem:[%s6630_s27 + $0x38] sm:$0xff] }
  0xe1   : > { %9557 = vst [vmem:[#allocation12_spill] sm:$0xff] %v7823_v47  ;;  %v7830_v25 = vpop.f32.mrf.mxu0  ;;  %6151 = vmatprep.mubr.msk.f32.mxu1 %vm411_vm2, %v9558_v62  ;;  %9564 = vst [vmem:[#allocation5_spill] sm:$0xff] %v7869_v11  ;;  %v2464_v14 = vrot.slane %v7869_v11, 4  ;;  %v8024_v11 = vld [vmem:[%s6630_s27 + $0xa8] sm:$0xff] }
  0xe2   : > { %v7846_v31 = vpop.f32.mrf.mxu1  ;;  %v2459_v19 = vsel %vm496_vm0, %v2456_v16, %v2458_v15  ;;  %v2461_v50 = vsel %vm496_vm0, %v2458_v15, %v2460_v60  ;;  %v7906_v15 = vld [vmem:[%s6630_s27 + $0x50] sm:$0xff]  ;;  %9590 = vst [vmem:[#allocation34_spill] sm:$0xff] %v8024_v11 }
  0xe3   : > { %9560 = vst [vmem:[#allocation3_spill] sm:$0xff] %v7846_v31  ;;  %v7849_v35 = vpop.f32.mrf.mxu0  ;;  %6214 = vmatmul.mubr.msk.f32.gmra.mxu0 %vm411_vm2, %v2044_v63  ;;  %v7890_v63 = vld [vmem:[%s6630_s27 + $0x48] sm:$0xff]  ;;  %v2465_v29 = vsel %vm496_vm0, %v2462_v1, %v2464_v14  ;;  %9570 = vst [vmem:[#allocation8_spill] sm:$0xff] %v7906_v15  ;;  %v2470_v60 = vrot.slane %v7906_v15, 4  ;;  %v7915_v1 = vld [vmem:[%s6630_s27 + $0x58] sm:$0xff] }
  0xe4   : > { %v7852_v36 = vpop.f32.mrf.mxu1  ;;  %6152 = vmatmul.mubr.msk.f32.gmra.mxu1 %vm411_vm2, %v1636_v48  ;;  %6216 = vmatprep.mubr.msk.f32.mxu0 %vm411_vm2, %v2046_v61  ;;  %9567 = vst [vmem:[#allocation16_spill] sm:$0xff] %v7890_v63  ;;  %v2468_v37 = vrot.slane %v7890_v63, 4  ;;  %9571 = vst [vmem:[#allocation18_spill] sm:$0xff] %v7915_v1 }
  0xe5   : > { %9561 = vst [vmem:[#allocation13_spill] sm:$0xff] %v7852_v36  ;;  %v7861_v26 = vpop.f32.mrf.mxu0  ;;  %6221 = vmatprep.mubr.msk.f32.mxu1 %vm411_vm2, %v2457_v39  ;;  %v8003_v36 = vld [vmem:[%s6630_s27 + $0x98] sm:$0xff] }
  0xe6   : > { %v7866_v5 = vpop.f32.mrf.mxu1  ;;  %9587 = vst [vmem:[#allocation31_spill] sm:$0xff] %v8003_v36 }
  0xe7   : > { %9563 = vst [vmem:[#allocation14_spill] sm:$0xff] %v7866_v5  ;;  %v7872_v0 = vpop.f32.mrf.mxu0  ;;  %6217 = vmatmul.mubr.msk.f32.gmra.mxu0 %vm411_vm2, %v2048_v51  ;;  %v2469_v51 = vsel %vm496_vm0, %v2466_v27, %v2468_v37  ;;  %v7981_v5 = vld [vmem:[%s6630_s27 + $0x88] sm:$0xff] }
  0xe8   : > { %v7875_v38 = vpop.f32.mrf.mxu1  ;;  %6222 = vmatmul.mubr.msk.f32.vlgmr.msra.gmra.mxu1 %vm411_vm2, %v2459_v19  ;;  %6286 = vmatprep.mubr.msk.f32.mxu0 %vm411_vm2, %v2461_v50  ;;  %9583 = vst [vmem:[#allocation29_spill] sm:$0xff] %v7981_v5 }
  0xe9   : > { %9565 = vst [vmem:[#allocation15_spill] sm:$0xff] %v7875_v38  ;;  %v7884_v16 = vpop.f32.mrf.mxu0  ;;  %6350 = vmatpush3.msk.msra.mxu1 %vm496_vm0, %v7462_v17  ;;  %6224 = vmatprep.mubr.msk.f32.mxu1 %vm411_vm2, %v2461_v50  ;;  %v2467_v17 = vsel %vm496_vm0, %v2464_v14, %v2466_v27  ;;  %v7929_v27 = vld [vmem:[%s6630_s27 + $0x60] sm:$0xff]  ;;  %v7959_v38 = vld [vmem:[%s6630_s27 + $0x78] sm:$0xff] }
  0xea   : > { %v7893_v62 = vpop.f32.mrf.mxu1  ;;  %9574 = vst [vmem:[#allocation20_spill] sm:$0xff] %v7929_v27  ;;  %9579 = vst [vmem:[#allocation25_spill] sm:$0xff] %v7959_v38 }
  0xeb   : > { %9568 = vst [vmem:[#allocation7_spill] sm:$0xff] %v7893_v62  ;;  %v7896_v48 = vpop.f32.mrf.mxu0  ;;  %6287 = vmatmul.mubr.msk.f32.vlgmr.msra.gmra.mxu0 %vm411_vm2, %v2463_v18  ;;  %v7937_v62 = vld [vmem:[%s6630_s27 + $0x68] sm:$0xff] }
  0xec   : > { %v7899_v61 = vpop.f32.mrf.mxu1  ;;  %6225 = vmatmul.mubr.msk.f32.gmra.mxu1 %vm411_vm2, %v2463_v18  ;;  %6415 = vmatpush3.msk.msra.mxu0 %vm496_vm0, %v7492_v44  ;;  %v2472_v44 = vrot.slane %v7915_v1, 4  ;;  %v2471_v18 = vsel %vm496_vm0, %v2468_v37, %v2470_v60  ;;  %9575 = vst [vmem:[#allocation22_spill] sm:$0xff] %v7937_v62 }
  0xed   : > { %9569 = vst [vmem:[#allocation17_spill] sm:$0xff] %v7899_v61  ;;  %v7909_v39 = vpop.f32.mrf.mxu0  ;;  %6227 = vmatprep.mubr.msk.f32.mxu1 %vm411_vm2, %v2465_v29  ;;  %6289 = vmatprep.mubr.msk.f32.mxu0 %vm411_vm2, %v2465_v29  ;;  %v2474_v29 = vrot.slane %v7929_v27, 4 }
  0xee   : > { %v7918_v19 = vpop.f32.mrf.mxu1 }
  0xef   : > { %9572 = vst [vmem:[#allocation9_spill] sm:$0xff] %v7918_v19  ;;  %v7920_v50 = vpop.f32.mrf.mxu0  ;;  %6290 = vmatmul.mubr.msk.f32.gmra.mxu0 %vm411_vm2, %v2467_v17  ;;  %v2473_v19 = vsel %vm496_vm0, %v2470_v60, %v2472_v44  ;;  %v7951_v60 = vld [vmem:[%s6630_s27 + $0x70] sm:$0xff] }
  0xf0   : > { %v7923_v14 = vpop.f32.mrf.mxu1  ;;  %6228 = vmatmul.mubr.msk.f32.gmra.mxu1 %vm411_vm2, %v2467_v17  ;;  %6292 = vmatprep.mubr.msk.f32.mxu0 %vm411_vm2, %v2469_v51  ;;  %v2476_v17 = vrot.slane %v7937_v62, 4  ;;  %9578 = vst [vmem:[#allocation11_spill] sm:$0xff] %v7951_v60  ;;  %v2478_v27 = vrot.slane %v7951_v60, 4 }
  0xf1   : > { %9573 = vst [vmem:[#allocation19_spill] sm:$0xff] %v7923_v14  ;;  %v7932_v61 = vpop.f32.mrf.mxu0  ;;  %6230 = vmatprep.mubr.msk.f32.mxu1 %vm411_vm2, %v2469_v51  ;;  %v2475_v51 = vsel %vm496_vm0, %v2472_v44, %v2474_v29 }
  0xf2   : > { %v7940_v14 = vpop.f32.mrf.mxu1 }
  0xf3   : > { %9576 = vst [vmem:[#allocation10_spill] sm:$0xff] %v7940_v14  ;;  %v7942_v1 = vpop.f32.mrf.mxu0  ;;  %6293 = vmatmul.mubr.msk.f32.gmra.mxu0 %vm411_vm2, %v2471_v18  ;;  %v2477_v14 = vsel %vm496_vm0, %v2474_v29, %v2476_v17  ;;  %v7973_v29 = vld [vmem:[%s6630_s27 + $0x80] sm:$0xff] }
  0xf4   : > { %v7945_v37 = vpop.f32.mrf.mxu1  ;;  %6231 = vmatmul.mubr.msk.f32.gmra.mxu1 %vm411_vm2, %v2471_v18  ;;  %6295 = vmatprep.mubr.msk.f32.mxu0 %vm411_vm2, %v2473_v19  ;;  %v2480_v18 = vrot.slane %v7959_v38, 4  ;;  %9582 = vst [vmem:[#allocation28_spill] sm:$0xff] %v7973_v29  ;;  %v2482_v60 = vrot.slane %v7973_v29, 4 }
  0xf5   : > { %9577 = vst [vmem:[#allocation23_spill] sm:$0xff] %v7945_v37  ;;  %v7954_v62 = vpop.f32.mrf.mxu0  ;;  %6233 = vmatprep.mubr.msk.f32.mxu1 %vm411_vm2, %v2473_v19  ;;  %v2479_v19 = vsel %vm496_vm0, %v2476_v17, %v2478_v27 }
  0xf6   : > { %v7962_v37 = vpop.f32.mrf.mxu1 }
  0xf7   : > { %9580 = vst [vmem:[#allocation26_spill] sm:$0xff] %v7962_v37  ;;  %v7964_v15 = vpop.f32.mrf.mxu0  ;;  %6296 = vmatmul.mubr.msk.f32.gmra.mxu0 %vm411_vm2, %v2475_v51  ;;  %v2481_v37 = vsel %vm496_vm0, %v2478_v27, %v2480_v18  ;;  %v7995_v27 = vld [vmem:[%s6630_s27 + $0x90] sm:$0xff] }
  0xf8   : > { %v7967_v44 = vpop.f32.mrf.mxu1  ;;  %6234 = vmatmul.mubr.msk.f32.gmra.mxu1 %vm411_vm2, %v2475_v51  ;;  %6298 = vmatprep.mubr.msk.f32.mxu0 %vm411_vm2, %v2477_v14  ;;  %v2484_v51 = vrot.slane %v7981_v5, 4  ;;  %9586 = vst [vmem:[#allocation24_spill] sm:$0xff] %v7995_v27  ;;  %v2486_v29 = vrot.slane %v7995_v27, 4  ;;  %v8015_v27 = vld [vmem:[%s6630_s27 + $0xa0] sm:$0xff] }
  0xf9   : > { %9581 = vst [vmem:[#allocation27_spill] sm:$0xff] %v7967_v44  ;;  %v7976_v38 = vpop.f32.mrf.mxu0  ;;  %6236 = vmatprep.mubr.msk.f32.mxu1 %vm411_vm2, %v2477_v14  ;;  %v2483_v14 = vsel %vm496_vm0, %v2480_v18, %v2482_v60  ;;  %9589 = vst [vmem:[#allocation33_spill] sm:$0xff] %v8015_v27 }
  0xfa   : > { %v7984_v44 = vpop.f32.mrf.mxu1 }
  0xfb   : > { %9584 = vst [vmem:[#allocation30_spill] sm:$0xff] %v7984_v44  ;;  %v7986_v63 = vpop.f32.mrf.mxu0  ;;  %6299 = vmatmul.mubr.msk.f32.gmra.mxu0 %vm411_vm2, %v2479_v19  ;;  %v2485_v44 = vsel %vm496_vm0, %v2482_v60, %v2484_v51  ;;  %v2490_v60 = vrot.slane %v8015_v27, 4 }
  0xfc   : > { %v7989_v17 = vpop.f32.mrf.mxu1  ;;  %6237 = vmatmul.mubr.msk.f32.gmra.mxu1 %vm411_vm2, %v2479_v19  ;;  %6301 = vmatprep.mubr.msk.f32.mxu0 %vm411_vm2, %v2481_v37  ;;  %v2488_v19 = vrot.slane %v8003_v36, 4 }
  0xfd   : > { %9585 = vst [vmem:[#allocation21_spill] sm:$0xff] %v7989_v17  ;;  %v7998_v5 = vpop.f32.mrf.mxu0  ;;  %6239 = vmatprep.mubr.msk.f32.mxu1 %vm411_vm2, %v2481_v37  ;;  %v2487_v37 = vsel %vm496_vm0, %v2484_v51, %v2486_v29 }
  0xfe   : > { %v8006_v17 = vpop.f32.mrf.mxu1 }
  0xff   : > { %9588 = vst [vmem:[#allocation32_spill] sm:$0xff] %v8006_v17  ;;  %v8008_v20 = vpop.f32.mrf.mxu0  ;;  %6302 = vmatmul.mubr.msk.f32.gmra.mxu0 %vm411_vm2, %v2483_v14  ;;  %v2489_v17 = vsel %vm496_vm0, %v2486_v29, %v2488_v19 }
 0x100   : > { %v5963_v18 = vpop.f32.mrf.mxu1  ;;  %6240 = vmatmul.mubr.msk.f32.gmra.mxu1 %vm411_vm2, %v2483_v14  ;;  %6304 = vmatprep.mubr.msk.f32.mxu0 %vm411_vm2, %v2485_v44  ;;  %v2492_v14 = vrot.slane %v8024_v11, 4 }
 0x101   : > { %v934_v31 = vadd.f32 %v5963_v18, %v7767_v3  ;;  %v8019_v36 = vpop.f32.mrf.mxu0  ;;  %6242 = vmatprep.mubr.msk.f32.mxu1 %vm411_vm2, %v2485_v44  ;;  %v2491_v3 = vsel %vm496_vm0, %v2488_v19, %v2490_v60  ;;  %v2494_v44 = vrot.slane %v7613_v58, 4 }
 0x102   : > { %v928_v47 = vpop.f32.mrf.mxu1 }
 0x103   : > { %v929_v41 = vadd.f32 %v928_v47, %v7781_v32  ;;  %v6028_v51 = vpop.f32.mrf.mxu0  ;;  %6305 = vmatmul.mubr.msk.f32.gmra.mxu0 %vm411_vm2, %v2487_v37  ;;  %v2493_v32 = vsel %vm496_vm0, %v2490_v60, %v2492_v14  ;;  %v2496_v47 = vrot.slane %v7620_v59, 4  ;;  %v2495_v58 = vsel %vm496_vm0, %v2492_v14, %v2494_v44 }
 0x104   : > { %v5966_v24 = vpop.f32.mrf.mxu1  ;;  %v8029_v27 = vadd.f32 %v6028_v51, %v934_v31  ;;  %6243 = vmatmul.mubr.msk.f32.gmra.mxu1 %vm411_vm2, %v2487_v37  ;;  %6307 = vmatprep.mubr.msk.f32.mxu0 %vm411_vm2, %v2489_v17 }
 0x105   : > { %v944_v29 = vadd.f32 %v5966_v24, %v7796_v40  ;;  %v1378_v18 = vpop.f32.mrf.mxu0  ;;  %6245 = vmatprep.mubr.msk.f32.mxu1 %vm411_vm2, %v2489_v17  ;;  %v2498_v40 = vrot.slane %v7630_v10, 4 }
 0x106   : > { %9591 = vst [vmem:[#allocation35_spill] sm:$0xff] %v8029_v27  ;;  %v938_v11 = vpop.f32.mrf.mxu1  ;;  %v8039_v31 = vadd.f32 %v1378_v18, %v929_v41  ;;  %v2500_v41 = vrot.slane %v7637_v49, 4  ;;  %v2504_v18 = vrot.slane %v7655_v23, 4 }
 0x107   : > { %v939_v37 = vadd.f32 %v938_v11, %v7809_v8  ;;  %v6031_v51 = vpop.f32.mrf.mxu0  ;;  %6308 = vmatmul.mubr.msk.f32.gmra.mxu0 %vm411_vm2, %v2491_v3  ;;  %v2497_v8 = vsel %vm496_vm0, %v2494_v44, %v2496_v47  ;;  %v2499_v10 = vsel %vm496_vm0, %v2496_v47, %v2498_v40 }
 0x108   : > { %v5969_v19 = vpop.f32.mrf.mxu1  ;;  %v8043_v27 = vadd.f32 %v6031_v51, %v944_v29  ;;  %6246 = vmatmul.mubr.msk.f32.gmra.mxu1 %vm411_vm2, %v2491_v3  ;;  %6310 = vmatprep.mubr.msk.f32.mxu0 %vm411_vm2, %v2493_v32 }
 0x109   : > { %v954_v59 = vadd.f32 %v5969_v19, %v7820_v30  ;;  %v1388_v24 = vpop.f32.mrf.mxu0  ;;  %6248 = vmatprep.mubr.msk.f32.mxu1 %vm411_vm2, %v2493_v32  ;;  %v2502_v30 = vrot.slane %v7648_v53, 4 }
 0x10a   : > { %v948_v11 = vpop.f32.mrf.mxu1  ;;  %v8053_v17 = vadd.f32 %v1388_v24, %v939_v37 }
 0x10b   : > { %v949_v60 = vadd.f32 %v948_v11, %v7830_v25  ;;  %v6034_v3 = vpop.f32.mrf.mxu0  ;;  %6311 = vmatmul.mubr.msk.f32.gmra.mxu0 %vm411_vm2, %v2495_v58  ;;  %v2501_v25 = vsel %vm496_vm0, %v2498_v40, %v2500_v41  ;;  %v2503_v53 = vsel %vm496_vm0, %v2500_v41, %v2502_v30 }
 0x10c   : > { %v5972_v14 = vpop.f32.mrf.mxu1  ;;  %v8057_v29 = vadd.f32 %v6034_v3, %v954_v59  ;;  %6249 = vmatmul.mubr.msk.f32.gmra.mxu1 %vm411_vm2, %v2495_v58  ;;  %6313 = vmatprep.mubr.msk.f32.mxu0 %vm411_vm2, %v2497_v8  ;;  %v2508_v59 = vrot.slane %v7673_v7, 4 }
 0x10d   : > { %v964_v49 = vadd.f32 %v5972_v14, %v7849_v35  ;;  %v1398_v44 = vpop.f32.mrf.mxu0  ;;  %6251 = vmatprep.mubr.msk.f32.mxu1 %vm411_vm2, %v2497_v8  ;;  %v2506_v35 = vrot.slane %v7666_v57, 4 }
 0x10e   : > { %v958_v32 = vpop.f32.mrf.mxu1  ;;  %v8067_v37 = vadd.f32 %v1398_v44, %v949_v60 }
 0x10f   : > { %v959_v51 = vadd.f32 %v958_v32, %v7861_v26  ;;  %v6037_v19 = vpop.f32.mrf.mxu0  ;;  %6314 = vmatmul.mubr.msk.f32.gmra.mxu0 %vm411_vm2, %v2499_v10  ;;  %v2505_v26 = vsel %vm496_vm0, %v2502_v30, %v2504_v18  ;;  %v2507_v57 = vsel %vm496_vm0, %v2504_v18, %v2506_v35 }
 0x110   : > { %v5975_v47 = vpop.f32.mrf.mxu1  ;;  %v8071_v58 = vadd.f32 %v6037_v19, %v964_v49  ;;  %6252 = vmatmul.mubr.msk.f32.gmra.mxu1 %vm411_vm2, %v2499_v10  ;;  %6316 = vmatprep.mubr.msk.f32.mxu0 %vm411_vm2, %v2501_v25  ;;  %v2512_v10 = vrot.slane %v7691_v34, 4  ;;  %v2516_v19 = vrot.slane %v7709_v6, 4 }
 0x111   : > { %v974_v23 = vadd.f32 %v5975_v47, %v7872_v0  ;;  %v1408_v40 = vpop.f32.mrf.mxu0  ;;  %6254 = vmatprep.mubr.msk.f32.mxu1 %vm411_vm2, %v2501_v25  ;;  %v2510_v0 = vrot.slane %v7684_v42, 4 }
 0x112   : > { %v968_v24 = vpop.f32.mrf.mxu1  ;;  %v8081_v8 = vadd.f32 %v1408_v40, %v959_v51 }
 0x113   : > { %v969_v11 = vadd.f32 %v968_v24, %v7884_v16  ;;  %v6040_v60 = vpop.f32.mrf.mxu0  ;;  %6317 = vmatmul.mubr.msk.f32.gmra.mxu0 %vm411_vm2, %v2503_v53  ;;  %v2509_v16 = vsel %vm496_vm0, %v2506_v35, %v2508_v59  ;;  %v2511_v42 = vsel %vm496_vm0, %v2508_v59, %v2510_v0  ;;  %v2520_v24 = vrot.slane %v7727_v43, 4 }
 0x114   : > { %v5978_v41 = vpop.f32.mrf.mxu1  ;;  %v8085_v3 = vadd.f32 %v6040_v60, %v974_v23  ;;  %6255 = vmatmul.mubr.msk.f32.gmra.mxu1 %vm411_vm2, %v2503_v53  ;;  %6319 = vmatprep.mubr.msk.f32.mxu0 %vm411_vm2, %v2505_v26 }
 0x115   : > { %v984_v7 = vadd.f32 %v5978_v41, %v7896_v48  ;;  %v1418_v14 = vpop.f32.mrf.mxu0  ;;  %6257 = vmatprep.mubr.msk.f32.mxu1 %vm411_vm2, %v2505_v26  ;;  %v2514_v48 = vrot.slane %v7702_v9, 4 }
 0x116   : > { %v978_v30 = vpop.f32.mrf.mxu1  ;;  %v8095_v49 = vadd.f32 %v1418_v14, %v969_v11 }
 0x117   : > { %v979_v44 = vadd.f32 %v978_v30, %v7909_v39  ;;  %v6043_v25 = vpop.f32.mrf.mxu0  ;;  %6320 = vmatmul.mubr.msk.f32.gmra.mxu0 %vm411_vm2, %v2507_v57  ;;  %v2513_v39 = vsel %vm496_vm0, %v2510_v0, %v2512_v10  ;;  %v2515_v9 = vsel %vm496_vm0, %v2512_v10, %v2514_v48 }
 0x118   : > { %v5981_v18 = vpop.f32.mrf.mxu1  ;;  %v8099_v32 = vadd.f32 %v6043_v25, %v984_v7  ;;  %6258 = vmatmul.mubr.msk.f32.gmra.mxu1 %vm411_vm2, %v2507_v57  ;;  %6322 = vmatprep.mubr.msk.f32.mxu0 %vm411_vm2, %v2509_v16 }
 0x119   : > { %v994_v34 = vadd.f32 %v5981_v18, %v7920_v50  ;;  %v1428_v51 = vpop.f32.mrf.mxu0  ;;  %6260 = vmatprep.mubr.msk.f32.mxu1 %vm411_vm2, %v2509_v16  ;;  %v2518_v50 = vrot.slane %v7720_v12, 4  ;;  %v2524_v16 = vrot.slane %v7745_v21, 4 }
 0x11a   : > { %v988_v47 = vpop.f32.mrf.mxu1  ;;  %v8109_v53 = vadd.f32 %v1428_v51, %v979_v44 }
 0x11b   : > { %v989_v35 = vadd.f32 %v988_v47, %v7932_v61  ;;  %v6046_v23 = vpop.f32.mrf.mxu0  ;;  %6323 = vmatmul.mubr.msk.f32.gmra.mxu0 %vm411_vm2, %v2511_v42  ;;  %v2517_v61 = vsel %vm496_vm0, %v2514_v48, %v2516_v19  ;;  %v2519_v12 = vsel %vm496_vm0, %v2516_v19, %v2518_v50 }
 0x11c   : > { %v5984_v40 = vpop.f32.mrf.mxu1  ;;  %v8113_v26 = vadd.f32 %v6046_v23, %v994_v34  ;;  %6261 = vmatmul.mubr.msk.f32.gmra.mxu1 %vm411_vm2, %v2511_v42  ;;  %6325 = vmatprep.mubr.msk.f32.mxu0 %vm411_vm2, %v2513_v39  ;;  %v2528_v34 = vrot.slane %v7763_v46, 4 }
 0x11d   : > { %v1004_v6 = vadd.f32 %v5984_v40, %v7942_v1  ;;  %v1438_v59 = vpop.f32.mrf.mxu0  ;;  %6263 = vmatprep.mubr.msk.f32.mxu1 %vm411_vm2, %v2513_v39  ;;  %v2522_v1 = vrot.slane %v7738_v33, 4 }
 0x11e   : > { %v998_v11 = vpop.f32.mrf.mxu1  ;;  %v8123_v60 = vadd.f32 %v1438_v59, %v989_v35 }
 0x11f   : > { %v999_v41 = vadd.f32 %v998_v11, %v7954_v62  ;;  %v6049_v57 = vpop.f32.mrf.mxu0  ;;  %6326 = vmatmul.mubr.msk.f32.gmra.mxu0 %vm411_vm2, %v2515_v9  ;;  %v2521_v62 = vsel %vm496_vm0, %v2518_v50, %v2520_v24  ;;  %v2523_v33 = vsel %vm496_vm0, %v2520_v24, %v2522_v1 }
 0x120   : > { %v5987_v0 = vpop.f32.mrf.mxu1  ;;  %v8127_v7 = vadd.f32 %v6049_v57, %v1004_v6  ;;  %6264 = vmatmul.mubr.msk.f32.gmra.mxu1 %vm411_vm2, %v2515_v9  ;;  %6328 = vmatprep.mubr.msk.f32.mxu0 %vm411_vm2, %v2517_v61  ;;  %v2532_v9 = vrot.slane %v7787_v56, 4  ;;  %v2534_v56 = vrot.slane %v7806_v55, 4  ;;  %v2538_v55 = vrot.slane %v7794_v54, 4 }
 0x121   : > { %v1014_v43 = vadd.f32 %v5987_v0, %v7964_v15  ;;  %v1448_v14 = vpop.f32.mrf.mxu0  ;;  %6266 = vmatprep.mubr.msk.f32.mxu1 %vm411_vm2, %v2517_v61  ;;  %v2526_v15 = vrot.slane %v7756_v28, 4  ;;  %v3279_v54 = vrot.slane %v7839_v2, 5 }
 0x122   : > { %v1008_v10 = vpop.f32.mrf.mxu1  ;;  %v8137_v30 = vadd.f32 %v1448_v14, %v999_v41  ;;  %v8178_v41 = vld [vmem:[%s6630_s27 + $0x158] sm:$0xff] }
 0x123   : > { %v1009_v44 = vadd.f32 %v1008_v10, %v7976_v38  ;;  %v6052_v25 = vpop.f32.mrf.mxu0  ;;  %6329 = vmatmul.mubr.msk.f32.gmra.mxu0 %vm411_vm2, %v2519_v12  ;;  %v2525_v38 = vsel %vm496_vm0, %v2522_v1, %v2524_v16  ;;  %v2527_v28 = vsel %vm496_vm0, %v2524_v16, %v2526_v15  ;;  %v2536_v57 = vrot.slane %v8178_v41, 4 }
 0x124   : > { %v5990_v18 = vpop.f32.mrf.mxu1  ;;  %v8141_v42 = vadd.f32 %v6052_v25, %v1014_v43  ;;  %6267 = vmatmul.mubr.msk.f32.gmra.mxu1 %vm411_vm2, %v2519_v12  ;;  %6331 = vmatprep.mubr.msk.f32.mxu0 %vm411_vm2, %v2521_v62  ;;  %v8185_v43 = vld [vmem:[%s6630_s27 + $0x168] sm:$0xff] }
 0x125   : > { %v1024_v21 = vadd.f32 %v5990_v18, %v7986_v63  ;;  %v1458_v48 = vpop.f32.mrf.mxu0  ;;  %6269 = vmatprep.mubr.msk.f32.mxu1 %vm411_vm2, %v2521_v62  ;;  %v2530_v63 = vrot.slane %v7778_v4, 4  ;;  %v2537_v25 = vsel %vm496_vm0, %v2534_v56, %v2536_v57  ;;  %v2948_v18 = vrot.slane %v8185_v43, 4 }
 0x126   : > { %v1018_v51 = vpop.f32.mrf.mxu1  ;;  %v8151_v39 = vadd.f32 %v1458_v48, %v1009_v44 }
 0x127   : > { %v1019_v19 = vadd.f32 %v1018_v51, %v7998_v5  ;;  %v6055_v47 = vpop.f32.mrf.mxu0  ;;  %6332 = vmatmul.mubr.msk.f32.gmra.mxu0 %vm411_vm2, %v2523_v33  ;;  %v2529_v5 = vsel %vm496_vm0, %v2526_v15, %v2528_v34  ;;  %v9592_v51 = vld [vmem:[#allocation2_spill] sm:$0xff] }
 0x128   : > { %v5993_v35 = vpop.f32.mrf.mxu1  ;;  %v8155_v23 = vadd.f32 %v6055_v47, %v1024_v21  ;;  %6270 = vmatmul.mubr.msk.f32.gmra.mxu1 %vm411_vm2, %v2523_v33  ;;  %6334 = vmatprep.mubr.msk.f32.mxu0 %vm411_vm2, %v2525_v38  ;;  %v8201_v33 = vld [vmem:[%s6630_s27 + $0x170] sm:$0x3f] }
 0x129   : > { %v1034_v46 = vadd.f32 %v5993_v35, %v8008_v20  ;;  %v1468_v40 = vpop.f32.mrf.mxu0  ;;  %6272 = vmatprep.mubr.msk.f32.mxu1 %vm411_vm2, %v2525_v38  ;;  %v2531_v20 = vsel %vm496_vm0, %v2528_v34, %v2530_v63  ;;  %v2539_v34 = vsel %vm496_vm0, %v2536_v57, %v2538_v55  ;;  %v9596_v57 = vld [vmem:[#allocation3_spill] sm:$0xff] }
 0x12a   : > { %v1028_v50 = vpop.f32.mrf.mxu1  ;;  %v8165_v6 = vadd.f32 %v1468_v40, %v1019_v19  ;;  %v2949_v40 = vsel %vm496_vm0, %v2538_v55, %v2948_v18 }
 0x12b   : > { %v1029_v59 = vadd.f32 %v1028_v50, %v8019_v36  ;;  %v6058_v61 = vpop.f32.mrf.mxu0  ;;  %6335 = vmatmul.mubr.msk.f32.gmra.mxu0 %vm411_vm2, %v2527_v28  ;;  %v2533_v36 = vsel %vm496_vm0, %v2530_v63, %v2532_v9  ;;  %v3772_v50 = vrot.slane %v7843_v45, 6 }
 0x12c   : > { %v5996_v4 = vpop.f32.mrf.mxu1  ;;  %v8169_v24 = vadd.f32 %v6058_v61, %v1034_v46  ;;  %6273 = vmatmul.mubr.msk.f32.gmra.mxu1 %vm411_vm2, %v2527_v28  ;;  %6337 = vmatprep.mubr.msk.f32.mxu0 %vm411_vm2, %v2529_v5  ;;  %v9593_v28 = vld [vmem:[#allocation4_spill] sm:$0xff] }
 0x12d   : > { %v1478_v11 = vpop.f32.mrf.mxu0  ;;  %6275 = vmatprep.mubr.msk.f32.mxu1 %vm411_vm2, %v2529_v5  ;;  %v1044_v0 = vadd.f32 %v5996_v4, %v7771_v52  ;;  %v2535_v52 = vsel %vm496_vm0, %v2532_v9, %v2534_v56  ;;  %v3282_v63 = vrot.slane %v9593_v28, 5  ;;  %v3771_v9 = vrot.slane %v7839_v2, 6  ;;  %v9595_v56 = vld [vmem:[#allocation5_spill] sm:$0xff] }
 0x12e   : > { %v1038_v12 = vpop.f32.mrf.mxu1  ;;  %v8182_v1 = vadd.f32 %v1478_v11, %v1029_v59  ;;  %v9594_v59 = vld [vmem:[#allocation12_spill] sm:$0xff]  ;;  %v3284_v11 = vrot.slane %v9595_v56, 5 }
 0x12f   : > { %v6061_v14 = vpop.f32.mrf.mxu0  ;;  %6338 = vmatmul.mubr.msk.f32.gmra.mxu0 %vm411_vm2, %v2531_v20  ;;  %v1039_v62 = vadd.f32 %v1038_v12, %v7791_v22  ;;  %v3280_v22 = vrot.slane %v7843_v45, 5  ;;  %v3774_v45 = vrot.slane %v9593_v28, 6 }
 0x130   : > { %v5999_v16 = vpop.f32.mrf.mxu1  ;;  %v8190_v10 = vadd.f32 %v6061_v14, %v1044_v0  ;;  %6276 = vmatmul.mubr.msk.f32.gmra.mxu1 %vm411_vm2, %v2531_v20  ;;  %6340 = vmatprep.mubr.msk.f32.mxu0 %vm411_vm2, %v2533_v36 }
 0x131   : > { %v1488_v44 = vpop.f32.mrf.mxu0  ;;  %6278 = vmatprep.mubr.msk.f32.mxu1 %vm411_vm2, %v2533_v36  ;;  %v1054_v15 = vadd.f32 %v5999_v16, %v7799_v13  ;;  %v2950_v13 = vrot.slane %v8201_v33, 4  ;;  %v3281_v5 = vsel %vm3278_vm6, %v3279_v54, %v3280_v22  ;;  %v3773_v16 = vsel %vm3770_vm7, %v3771_v9, %v3772_v50  ;;  %v9598_v54 = vld [vmem:[#allocation13_spill] sm:$0xff] }
 0x132   : > { %v1048_v21 = vpop.f32.mrf.mxu1  ;;  %v8204_v48 = vadd.f32 %v1488_v44, %v1039_v62  ;;  %v3283_v62 = vsel %vm3278_vm6, %v3280_v22, %v3282_v63 }
 0x133   : > { %v6064_v38 = vpop.f32.mrf.mxu0  ;;  %6341 = vmatmul.mubr.msk.f32.gmra.mxu0 %vm411_vm2, %v2535_v52  ;;  %v1049_v19 = vadd.f32 %v1048_v21, %v9592_v51  ;;  %v2951_v2 = vsel %vm496_vm0, %v2948_v18, %v2950_v13  ;;  %v3285_v18 = vsel %vm3278_vm6, %v3282_v63, %v3284_v11 }
 0x134   : > { %v6002_v47 = vpop.f32.mrf.mxu1  ;;  %v8209_v35 = vadd.f32 %v6064_v38, %v1054_v15  ;;  %6279 = vmatmul.mubr.msk.f32.gmra.mxu1 %vm411_vm2, %v2535_v52  ;;  %6343 = vmatprep.mubr.msk.f32.mxu0 %vm411_vm2, %v2537_v25  ;;  %v9597_v52 = vld [vmem:[#allocation6_spill] sm:$0xff] }
 0x135   : > { %v1498_v46 = vpop.f32.mrf.mxu0  ;;  %6281 = vmatprep.mubr.msk.f32.mxu1 %vm411_vm2, %v2537_v25  ;;  %v1064_v61 = vadd.f32 %v6002_v47, %v9594_v59  ;;  %v3286_v44 = vrot.slane %v9597_v52, 5  ;;  %v3776_v25 = vrot.slane %v9595_v56, 6  ;;  %v9600_v47 = vld [vmem:[#allocation14_spill] sm:$0xff]  ;;  %v9601_v59 = vld [vmem:[#allocation8_spill] sm:$0xff]  ;;  %v9602_v56 = vld [vmem:[#allocation15_spill] sm:$0xff] }
 0x136   : > { %v1058_v4 = vpop.f32.mrf.mxu1  ;;  %v8221_v20 = vadd.f32 %v1498_v46, %v1049_v19  ;;  %v3775_v46 = vsel %vm3770_vm7, %v3772_v50, %v3774_v45 }
 0x137   : > { %v6067_v36 = vpop.f32.mrf.mxu0  ;;  %6344 = vmatmul.mubr.msk.f32.gmra.mxu0 %vm411_vm2, %v2539_v34  ;;  %v1059_v0 = vadd.f32 %v1058_v4, %v9596_v57  ;;  %v3287_v63 = vsel %vm3278_vm6, %v3284_v11, %v3286_v44  ;;  %v3777_v9 = vsel %vm3770_vm7, %v3774_v45, %v3776_v25 }
 0x138   : > { %v6005_v12 = vpop.f32.mrf.mxu1  ;;  %v8226_v14 = vadd.f32 %v6067_v36, %v1064_v61  ;;  %6282 = vmatmul.mubr.msk.f32.gmra.mxu1 %vm411_vm2, %v2539_v34  ;;  %6346 = vmatprep.mubr.msk.f32.mxu0 %vm411_vm2, %v2949_v40  ;;  %v9599_v34 = vld [vmem:[#allocation16_spill] sm:$0xff]  ;;  %v3778_v40 = vrot.slane %v9597_v52, 6  ;;  %v3290_v61 = vrot.slane %v9601_v59, 5 }
 0x139   : > { %v1508_v55 = vpop.f32.mrf.mxu0  ;;  %6351 = vmatprep.mubr.msk.f32.mxu1 %vm411_vm2, %v3281_v5  ;;  %v1074_v15 = vadd.f32 %v6005_v12, %v9598_v54  ;;  %v3288_v51 = vrot.slane %v9599_v34, 5  ;;  %v3780_v4 = vrot.slane %v9599_v34, 6  ;;  %v9603_v12 = vld [vmem:[#allocation18_spill] sm:$0xff]  ;;  %v3782_v54 = vrot.slane %v9601_v59, 6  ;;  %v9608_v59 = vld [vmem:[#allocation9_spill] sm:$0xff] }
 0x13a   : > { %v1068_v21 = vpop.f32.mrf.mxu1  ;;  %v8238_v38 = vadd.f32 %v1508_v55, %v1059_v0  ;;  %v3779_v52 = vsel %vm3770_vm7, %v3776_v25, %v3778_v40 }
 0x13b   : > { %v6070_v19 = vpop.f32.mrf.mxu0  ;;  %6347 = vmatmul.mubr.msk.f32.gmra.mxu0 %vm411_vm2, %v2951_v2  ;;  %v1069_v22 = vadd.f32 %v1068_v21, %v9600_v47  ;;  %v3289_v50 = vsel %vm3278_vm6, %v3286_v44, %v3288_v51  ;;  %v3292_v2 = vrot.slane %v9603_v12, 5  ;;  %v3291_v44 = vsel %vm3278_vm6, %v3288_v51, %v3290_v61  ;;  %v9606_v47 = vld [vmem:[#allocation17_spill] sm:$0xff] }
 0x13c   : > { %v6008_v13 = vpop.f32.mrf.mxu1  ;;  %v8244_v28 = vadd.f32 %v6070_v19, %v1074_v15  ;;  %6352 = vmatmul.mubr.msk.f32.vlgmr.msra.gmra.mxu1 %vm411_vm2, %v3283_v62  ;;  %6416 = vmatprep.mubr.msk.f32.mxu0 %vm411_vm2, %v3773_v16  ;;  %v9604_v62 = vld [vmem:[#allocation7_spill] sm:$0xff]  ;;  %v3781_v21 = vsel %vm3770_vm7, %v3778_v40, %v3780_v4  ;;  %v3784_v19 = vrot.slane %v9603_v12, 6 }
 0x13d   : > { %v1518_v5 = vpop.f32.mrf.mxu0  ;;  %6354 = vmatprep.mubr.msk.f32.mxu1 %vm411_vm2, %v3285_v18  ;;  %v1084_v36 = vadd.f32 %v6008_v13, %v9602_v56  ;;  %v9605_v18 = vld [vmem:[#allocation20_spill] sm:$0xff]  ;;  %v3293_v25 = vsel %vm3278_vm6, %v3290_v61, %v3292_v2 }
 0x13e   : > { %v1078_v57 = vpop.f32.mrf.mxu1  ;;  %v8256_v0 = vadd.f32 %v1518_v5, %v1069_v22  ;;  %v3294_v34 = vrot.slane %v9605_v18, 5  ;;  %v9607_v5 = vld [vmem:[#allocation22_spill] sm:$0xff]  ;;  %v3785_v12 = vsel %vm3770_vm7, %v3782_v54, %v3784_v19 }
 0x13f   : > { %v6073_v55 = vpop.f32.mrf.mxu0  ;;  %6417 = vmatmul.mubr.msk.f32.vlgmr.msra.gmra.mxu0 %vm411_vm2, %v3775_v46  ;;  %v1079_v11 = vadd.f32 %v1078_v57, %v9604_v62  ;;  %v3786_v57 = vrot.slane %v9605_v18, 6 }
 0x140   : > { %v6011_v16 = vpop.f32.mrf.mxu1  ;;  %v8262_v45 = vadd.f32 %v6073_v55, %v1084_v36  ;;  %6355 = vmatmul.mubr.msk.f32.gmra.mxu1 %vm411_vm2, %v3287_v63  ;;  %6419 = vmatprep.mubr.msk.f32.mxu0 %vm411_vm2, %v3777_v9  ;;  %v3296_v63 = vrot.slane %v9607_v5, 5  ;;  %v3783_v36 = vsel %vm3770_vm7, %v3780_v4, %v3782_v54  ;;  %v3295_v61 = vsel %vm3278_vm6, %v3292_v2, %v3294_v34  ;;  %v9609_v55 = vld [vmem:[#allocation11_spill] sm:$0xff] }
 0x141   : > { %v1528_v15 = vpop.f32.mrf.mxu0  ;;  %6357 = vmatprep.mubr.msk.f32.mxu1 %vm411_vm2, %v3289_v50  ;;  %v1094_v22 = vadd.f32 %v6011_v16, %v9606_v47  ;;  %v3298_v62 = vrot.slane %v9609_v55, 5  ;;  %v9610_v16 = vld [vmem:[#allocation19_spill] sm:$0xff] }
 0x142   : > { %v1088_v13 = vpop.f32.mrf.mxu1  ;;  %v8274_v46 = vadd.f32 %v1528_v15, %v1079_v11  ;;  %v3788_v11 = vrot.slane %v9607_v5, 6  ;;  %v3297_v4 = vsel %vm3278_vm6, %v3294_v34, %v3296_v63  ;;  %v3790_v5 = vrot.slane %v9609_v55, 6 }
 0x143   : > { %v6076_v9 = vpop.f32.mrf.mxu0  ;;  %6420 = vmatmul.mubr.msk.f32.gmra.mxu0 %vm411_vm2, %v3779_v52  ;;  %v1089_v51 = vadd.f32 %v1088_v13, %v9608_v59  ;;  %v3299_v34 = vsel %vm3278_vm6, %v3296_v63, %v3298_v62 }
 0x144   : > { %v6014_v56 = vpop.f32.mrf.mxu1  ;;  %v8280_v40 = vadd.f32 %v6076_v9, %v1094_v22  ;;  %6358 = vmatmul.mubr.msk.f32.gmra.mxu1 %vm411_vm2, %v3291_v44  ;;  %6422 = vmatprep.mubr.msk.f32.mxu0 %vm411_vm2, %v3781_v21  ;;  %v9611_v21 = vld [vmem:[#allocation25_spill] sm:$0xff]  ;;  %v9612_v22 = vld [vmem:[#allocation10_spill] sm:$0xff]  ;;  %v3789_v59 = vsel %vm3770_vm7, %v3786_v57, %v3788_v11 }
 0x145   : > { %v1538_v50 = vpop.f32.mrf.mxu0  ;;  %6360 = vmatprep.mubr.msk.f32.mxu1 %vm411_vm2, %v3293_v25  ;;  %v1104_v52 = vadd.f32 %v6014_v56, %v9610_v16  ;;  %v3300_v18 = vrot.slane %v9611_v21, 5  ;;  %v3787_v25 = vsel %vm3770_vm7, %v3784_v19, %v3786_v57 }
 0x146   : > { %v1098_v15 = vpop.f32.mrf.mxu1  ;;  %v8292_v44 = vadd.f32 %v1538_v50, %v1089_v51  ;;  %v9614_v51 = vld [vmem:[#allocation28_spill] sm:$0xff]  ;;  %v9615_v50 = vld [vmem:[#allocation23_spill] sm:$0xff] }
 0x147   : > { %v6079_v47 = vpop.f32.mrf.mxu0  ;;  %6423 = vmatmul.mubr.msk.f32.gmra.mxu0 %vm411_vm2, %v3783_v36  ;;  %v1099_v2 = vadd.f32 %v1098_v15, %v9612_v22  ;;  %v3302_v56 = vrot.slane %v9614_v51, 5  ;;  %v3792_v36 = vrot.slane %v9611_v21, 6  ;;  %v3301_v19 = vsel %vm3278_vm6, %v3298_v62, %v3300_v18 }
 0x148   : > { %v6017_v13 = vpop.f32.mrf.mxu1  ;;  %v8298_v54 = vadd.f32 %v6079_v47, %v1104_v52  ;;  %6361 = vmatmul.mubr.msk.f32.gmra.mxu1 %vm411_vm2, %v3295_v61  ;;  %6425 = vmatprep.mubr.msk.f32.mxu0 %vm411_vm2, %v3785_v12  ;;  %v9617_v12 = vld [vmem:[#allocation29_spill] sm:$0xff]  ;;  %v3791_v21 = vsel %vm3770_vm7, %v3788_v11, %v3790_v5  ;;  %v3794_v22 = vrot.slane %v9614_v51, 6 }
 0x149   : > { %v1548_v9 = vpop.f32.mrf.mxu0  ;;  %6363 = vmatprep.mubr.msk.f32.mxu1 %vm411_vm2, %v3297_v4  ;;  %v1114_v16 = vadd.f32 %v6017_v13, %v9615_v50  ;;  %v3304_v55 = vrot.slane %v9617_v12, 5  ;;  %v9618_v4 = vld [vmem:[#allocation26_spill] sm:$0xff]  ;;  %v3303_v62 = vsel %vm3278_vm6, %v3300_v18, %v3302_v56  ;;  %v3793_v13 = vsel %vm3770_vm7, %v3790_v5, %v3792_v36 }
 0x14a   : > { %9613 = vst [vmem:[#allocation2_spill] sm:$0xff] %v8298_v54  ;;  %v1108_v61 = vpop.f32.mrf.mxu1  ;;  %v8310_v52 = vadd.f32 %v1548_v9, %v1099_v2  ;;  %v3796_v50 = vrot.slane %v9617_v12, 6  ;;  %v3795_v12 = vsel %vm3770_vm7, %v3792_v36, %v3794_v22 }
 0x14b   : > { %v6082_v15 = vpop.f32.mrf.mxu0  ;;  %6426 = vmatmul.mubr.msk.f32.gmra.mxu0 %vm411_vm2, %v3787_v25  ;;  %v1109_v63 = vadd.f32 %v1108_v61, %v9618_v4  ;;  %v9620_v25 = vld [vmem:[#allocation24_spill] sm:$0xff]  ;;  %v3305_v11 = vsel %vm3278_vm6, %v3302_v56, %v3304_v55 }
 0x14c   : > { %9616 = vst [vmem:[#allocation4_spill] sm:$0xff] %v8310_v52  ;;  %v6020_v47 = vpop.f32.mrf.mxu1  ;;  %v8316_v57 = vadd.f32 %v6082_v15, %v1114_v16  ;;  %6364 = vmatmul.mubr.msk.f32.gmra.mxu1 %vm411_vm2, %v3299_v34  ;;  %6428 = vmatprep.mubr.msk.f32.mxu0 %vm411_vm2, %v3789_v59  ;;  %v3306_v9 = vrot.slane %v9620_v25, 5  ;;  %v9621_v16 = vld [vmem:[#allocation27_spill] sm:$0xff]  ;;  %v3798_v56 = vrot.slane %v9620_v25, 6 }
 0x14d   : > { %v1558_v2 = vpop.f32.mrf.mxu0  ;;  %6366 = vmatprep.mubr.msk.f32.mxu1 %vm411_vm2, %v3301_v19  ;;  %v1124_v61 = vadd.f32 %v6020_v47, %v9621_v16  ;;  %v9622_v59 = vld [vmem:[#allocation31_spill] sm:$0xff]  ;;  %v9623_v19 = vld [vmem:[#allocation33_spill] sm:$0xff] }
 0x14e   : > { %9619 = vst [vmem:[#allocation12_spill] sm:$0xff] %v8316_v57  ;;  %v1118_v34 = vpop.f32.mrf.mxu1  ;;  %v8328_v15 = vadd.f32 %v1558_v2, %v1109_v63  ;;  %v3308_v51 = vrot.slane %v9622_v59, 5  ;;  %v3310_v18 = vrot.slane %v9623_v19, 5  ;;  %v9624_v57 = vld [vmem:[#allocation30_spill] sm:$0xff]  ;;  %v3307_v47 = vsel %vm3278_vm6, %v3304_v55, %v3306_v9  ;;  %v9625_v2 = vld [vmem:[#allocation21_spill] sm:$0xff]  ;;  %v9627_v55 = vld [vmem:[#allocation32_spill] sm:$0xff] }
 0x14f   : > { %v6085_v4 = vpop.f32.mrf.mxu0  ;;  %6429 = vmatmul.mubr.msk.f32.gmra.mxu0 %vm411_vm2, %v3791_v21  ;;  %v1119_v5 = vadd.f32 %v1118_v34, %v9624_v57  ;;  %v3797_v21 = vsel %vm3770_vm7, %v3794_v22, %v3796_v50  ;;  %v3800_v57 = vrot.slane %v9622_v59, 6 }
 0x150   : > { %v6023_v52 = vpop.f32.mrf.mxu1  ;;  %v8335_v54 = vadd.f32 %v6085_v4, %v1124_v61  ;;  %6367 = vmatmul.mubr.msk.f32.gmra.mxu1 %vm411_vm2, %v3303_v62  ;;  %6431 = vmatprep.mubr.msk.f32.mxu0 %vm411_vm2, %v3793_v13  ;;  %v3309_v62 = vsel %vm3278_vm6, %v3306_v9, %v3308_v51  ;;  %v9626_v13 = vld [vmem:[#allocation34_spill] sm:$0xff]  ;;  %v3802_v9 = vrot.slane %v9623_v19, 6 }
 0x151   : > { %v1568_v63 = vpop.f32.mrf.mxu0  ;;  %6369 = vmatprep.mubr.msk.f32.mxu1 %vm411_vm2, %v3305_v11  ;;  %v1134_v16 = vadd.f32 %v6023_v52, %v9625_v2  ;;  %v3312_v36 = vrot.slane %v9626_v13, 5  ;;  %v3311_v11 = vsel %vm3278_vm6, %v3308_v51, %v3310_v18  ;;  %v3799_v52 = vsel %vm3770_vm7, %v3796_v50, %v3798_v56  ;;  %v6541_v50 = vld [vmem:[%s6630_s27 + $0xb8] sm:$0xff] }
 0x152   : > { %v1128_v61 = vpop.f32.mrf.mxu1  ;;  %v8346_v34 = vadd.f32 %v1568_v63, %v1119_v5  ;;  %v9628_v5 = vld [vmem:[#allocation35_spill] sm:$0xff]  ;;  %v3801_v51 = vsel %vm3770_vm7, %v3798_v56, %v3800_v57  ;;  %v3803_v56 = vsel %vm3770_vm7, %v3800_v57, %v3802_v9 }
 0x153   : > { %v6088_v25 = vpop.f32.mrf.mxu0  ;;  %6432 = vmatmul.mubr.msk.f32.gmra.mxu0 %vm411_vm2, %v3795_v12  ;;  %v1129_v4 = vadd.f32 %v1128_v61, %v9627_v55  ;;  %v6540_v12 = vld [vmem:[%s6630_s27 + $0xb0] sm:$0xff]  ;;  %v3804_v61 = vrot.slane %v9626_v13, 6  ;;  %v3316_v55 = vrot.slane %v6541_v50, 5  ;;  %v6542_v13 = vld [vmem:[%s6630_s27 + $0xc0] sm:$0xff] }
 0x154   : > { %v8353_v22 = vadd.f32 %v6088_v25, %v1134_v16  ;;  %v6093_v59 = vpop.f32.mrf.mxu1  ;;  %6370 = vmatmul.mubr.msk.f32.gmra.mxu1 %vm411_vm2, %v3307_v47  ;;  %6434 = vmatprep.mubr.msk.f32.mxu0 %vm411_vm2, %v3797_v21  ;;  %v3314_v16 = vrot.slane %v6540_v12, 5  ;;  %v3313_v21 = vsel %vm3278_vm6, %v3310_v18, %v3312_v36  ;;  %v3806_v18 = vrot.slane %v6540_v12, 6 }
 0x155   : > { %v1920_v63 = vadd.f32 %v6093_v59, %v9628_v5  ;;  %v1578_v2 = vpop.f32.mrf.mxu0  ;;  %6372 = vmatprep.mubr.msk.f32.mxu1 %vm411_vm2, %v3309_v62 }
 0x156   : > { %v8364_v25 = vadd.f32 %v1578_v2, %v1129_v4  ;;  %v1710_v47 = vpop.f32.mrf.mxu1  ;;  %v3318_v4 = vrot.slane %v6542_v13, 5 }
 0x157   : > { %v1919_v19 = vadd.f32 %v1710_v47, %v8039_v31  ;;  %v6158_v59 = vpop.f32.mrf.mxu0  ;;  %6435 = vmatmul.mubr.msk.f32.gmra.mxu0 %vm411_vm2, %v3799_v52  ;;  %v3315_v31 = vsel %vm3278_vm6, %v3312_v36, %v3314_v16  ;;  %v3805_v52 = vsel %vm3770_vm7, %v3802_v9, %v3804_v61  ;;  %v3807_v9 = vsel %vm3770_vm7, %v3804_v61, %v3806_v18 }
 0x158   : > { %9629 = vst [vmem:[#allocation5_spill] sm:$0xff] %v8364_v25  ;;  %v6096_v62 = vpop.f32.mrf.mxu1  ;;  %v8370_v5 = vadd.f32 %v6158_v59, %v1920_v63  ;;  %6373 = vmatmul.mubr.msk.f32.gmra.mxu1 %vm411_vm2, %v3311_v11  ;;  %6437 = vmatprep.mubr.msk.f32.mxu0 %vm411_vm2, %v3801_v51  ;;  %v3808_v63 = vrot.slane %v6541_v50, 6  ;;  %v3317_v11 = vsel %vm3278_vm6, %v3314_v16, %v3316_v55  ;;  %v6543_v51 = vld [vmem:[%s6630_s27 + $0xc8] sm:$0xff]  ;;  %v3810_v16 = vrot.slane %v6542_v13, 6 }
 0x159   : > { %v1922_v2 = vadd.f32 %v6096_v62, %v8043_v27  ;;  %v2202_v25 = vpop.f32.mrf.mxu0  ;;  %6375 = vmatprep.mubr.msk.f32.mxu1 %vm411_vm2, %v3313_v21  ;;  %v3320_v57 = vrot.slane %v6543_v51, 5  ;;  %v3319_v36 = vsel %vm3278_vm6, %v3316_v55, %v3318_v4  ;;  %v6545_v55 = vld [vmem:[%s6630_s27 + $0xd8] sm:$0xff] }
 0x15a   : > { %9630 = vst [vmem:[#allocation3_spill] sm:$0xff] %v8370_v5  ;;  %v1720_v47 = vpop.f32.mrf.mxu1  ;;  %v8380_v59 = vadd.f32 %v2202_v25, %v1919_v19  ;;  %v6544_v19 = vld [vmem:[%s6630_s27 + $0xd0] sm:$0xff] }
 0x15b   : > { %v1921_v12 = vadd.f32 %v1720_v47, %v8053_v17  ;;  %v6161_v5 = vpop.f32.mrf.mxu0  ;;  %6438 = vmatmul.mubr.msk.f32.gmra.mxu0 %vm411_vm2, %v3803_v56  ;;  %v3809_v17 = vsel %vm3770_vm7, %v3806_v18, %v3808_v63  ;;  %v3322_v62 = vrot.slane %v6544_v19, 5  ;;  %v3811_v18 = vsel %vm3770_vm7, %v3808_v63, %v3810_v16 }
 0x15c   : > { %v6099_v27 = vpop.f32.mrf.mxu1  ;;  %v8386_v21 = vadd.f32 %v6161_v5, %v1922_v2  ;;  %6376 = vmatmul.mubr.msk.f32.gmra.mxu1 %vm411_vm2, %v3315_v31  ;;  %6440 = vmatprep.mubr.msk.f32.mxu0 %vm411_vm2, %v3805_v52  ;;  %v3812_v5 = vrot.slane %v6543_v51, 6  ;;  %v3321_v31 = vsel %vm3278_vm6, %v3318_v4, %v3320_v57  ;;  %v3324_v52 = vrot.slane %v6545_v55, 5 }
 0x15d   : > { %v1924_v25 = vadd.f32 %v6099_v27, %v8057_v29  ;;  %v2212_v50 = vpop.f32.mrf.mxu0  ;;  %6378 = vmatprep.mubr.msk.f32.mxu1 %vm411_vm2, %v3317_v11  ;;  %v6546_v11 = vld [vmem:[%s6630_s27 + $0xe0] sm:$0xff]  ;;  %v3814_v4 = vrot.slane %v6544_v19, 6 }
 0x15e   : > { %v1730_v56 = vpop.f32.mrf.mxu1  ;;  %v8396_v2 = vadd.f32 %v2212_v50, %v1921_v12  ;;  %v3326_v51 = vrot.slane %v6546_v11, 5 }
 0x15f   : > { %v1923_v61 = vadd.f32 %v1730_v56, %v8067_v37  ;;  %v6164_v13 = vpop.f32.mrf.mxu0  ;;  %6441 = vmatmul.mubr.msk.f32.gmra.mxu0 %vm411_vm2, %v3807_v9  ;;  %v3323_v37 = vsel %vm3278_vm6, %v3320_v57, %v3322_v62  ;;  %v3813_v9 = vsel %vm3770_vm7, %v3810_v16, %v3812_v5  ;;  %v3815_v16 = vsel %vm3770_vm7, %v3812_v5, %v3814_v4 }
 0x160   : > { %v6102_v29 = vpop.f32.mrf.mxu1  ;;  %v8402_v47 = vadd.f32 %v6164_v13, %v1924_v25  ;;  %6379 = vmatmul.mubr.msk.f32.gmra.mxu1 %vm411_vm2, %v3319_v36  ;;  %6443 = vmatprep.mubr.msk.f32.mxu0 %vm411_vm2, %v3809_v17  ;;  %v3816_v25 = vrot.slane %v6545_v55, 6  ;;  %v3325_v36 = vsel %vm3278_vm6, %v3322_v62, %v3324_v52  ;;  %v6547_v17 = vld [vmem:[%s6630_s27 + $0xe8] sm:$0xff]  ;;  %v3327_v57 = vsel %vm3278_vm6, %v3324_v52, %v3326_v51  ;;  %v6549_v52 = vld [vmem:[%s6630_s27 + $0xf8] sm:$0xff] }
 0x161   : > { %v1926_v12 = vadd.f32 %v6102_v29, %v8071_v58  ;;  %v2222_v27 = vpop.f32.mrf.mxu0  ;;  %6381 = vmatprep.mubr.msk.f32.mxu1 %vm411_vm2, %v3321_v31  ;;  %v3328_v63 = vrot.slane %v6547_v17, 5  ;;  %v3818_v62 = vrot.slane %v6546_v11, 6  ;;  %v6548_v29 = vld [vmem:[%s6630_s27 + $0xf0] sm:$0xff] }
 0x162   : > { %v1740_v50 = vpop.f32.mrf.mxu1  ;;  %v8412_v56 = vadd.f32 %v2222_v27, %v1923_v61 }
 0x163   : > { %v1925_v19 = vadd.f32 %v1740_v50, %v8081_v8  ;;  %v6167_v13 = vpop.f32.mrf.mxu0  ;;  %6444 = vmatmul.mubr.msk.f32.gmra.mxu0 %vm411_vm2, %v3811_v18  ;;  %v3817_v8 = vsel %vm3770_vm7, %v3814_v4, %v3816_v25  ;;  %v3330_v18 = vrot.slane %v6548_v29, 5  ;;  %v3332_v50 = vrot.slane %v6549_v52, 5 }
 0x164   : > { %v6105_v58 = vpop.f32.mrf.mxu1  ;;  %v8418_v31 = vadd.f32 %v6167_v13, %v1926_v12  ;;  %6382 = vmatmul.mubr.msk.f32.gmra.mxu1 %vm411_vm2, %v3323_v37  ;;  %6446 = vmatprep.mubr.msk.f32.mxu0 %vm411_vm2, %v3813_v9  ;;  %v3820_v12 = vrot.slane %v6547_v17, 6  ;;  %v3329_v9 = vsel %vm3278_vm6, %v3326_v51, %v3328_v63  ;;  %v3819_v4 = vsel %vm3770_vm7, %v3816_v25, %v3818_v62  ;;  %v6550_v17 = vld [vmem:[%s6630_s27 + $0x100] sm:$0xff] }
 0x165   : > { %v1928_v55 = vadd.f32 %v6105_v58, %v8085_v3  ;;  %v2232_v61 = vpop.f32.mrf.mxu0  ;;  %6384 = vmatprep.mubr.msk.f32.mxu1 %vm411_vm2, %v3325_v36  ;;  %v3822_v51 = vrot.slane %v6548_v29, 6  ;;  %v3333_v25 = vsel %vm3278_vm6, %v3330_v18, %v3332_v50 }
 0x166   : > { %v1750_v27 = vpop.f32.mrf.mxu1  ;;  %v8428_v37 = vadd.f32 %v2232_v61, %v1925_v19  ;;  %v3334_v19 = vrot.slane %v6550_v17, 5  ;;  %v8444_v61 = vpop.permute.xlu1 %4451 }
 0x167   : > { %v1927_v5 = vadd.f32 %v1750_v27, %v8095_v49  ;;  %v6170_v11 = vpop.f32.mrf.mxu0  ;;  %6447 = vmatmul.mubr.msk.f32.gmra.mxu0 %vm411_vm2, %v3815_v16  ;;  %v3331_v49 = vsel %vm3278_vm6, %v3328_v63, %v3330_v18  ;;  %v3821_v16 = vsel %vm3770_vm7, %v3818_v62, %v3820_v12  ;;  %9631 = vst [vmem:[#allocation6_spill] sm:$0xff] %v8444_v61 }
 0x168   : > { %v6108_v3 = vpop.f32.mrf.mxu1  ;;  %v8434_v36 = vadd.f32 %v6170_v11, %v1928_v55  ;;  %6385 = vmatmul.mubr.msk.f32.gmra.mxu1 %vm411_vm2, %v3327_v57  ;;  %6449 = vmatprep.mubr.msk.f32.mxu0 %vm411_vm2, %v3817_v8  ;;  %v3824_v55 = vrot.slane %v6549_v52, 6  ;;  %v6551_v8 = vld [vmem:[%s6630_s27 + $0x108] sm:$0xff]  ;;  %v3335_v62 = vsel %vm3278_vm6, %v3332_v50, %v3334_v19  ;;  %v3823_v18 = vsel %vm3770_vm7, %v3820_v12, %v3822_v51  ;;  %v6553_v50 = vld [vmem:[%s6630_s27 + $0x118] sm:$0xff] }
 0x169   : > { %v1930_v13 = vadd.f32 %v6108_v3, %v8099_v32  ;;  %v2242_v58 = vpop.f32.mrf.mxu0  ;;  %6387 = vmatprep.mubr.msk.f32.mxu1 %vm411_vm2, %v3329_v9  ;;  %v3336_v29 = vrot.slane %v6551_v8, 5  ;;  %v3826_v52 = vrot.slane %v6550_v17, 6 }
 0x16a   : > { %v1760_v57 = vpop.f32.mrf.mxu1  ;;  %v8446_v27 = vadd.f32 %v2242_v58, %v1927_v5  ;;  %v3828_v58 = vrot.slane %v6551_v8, 6 }
 0x16b   : > { %v1929_v32 = vadd.f32 %v1760_v57, %v8109_v53  ;;  %v6173_v11 = vpop.f32.mrf.mxu0  ;;  %6450 = vmatmul.mubr.msk.f32.gmra.mxu0 %vm411_vm2, %v3819_v4  ;;  %v3825_v53 = vsel %vm3770_vm7, %v3822_v51, %v3824_v55  ;;  %v6552_v4 = vld [vmem:[%s6630_s27 + $0x110] sm:$0xff]  ;;  %v3827_v8 = vsel %vm3770_vm7, %v3824_v55, %v3826_v52 }
 0x16c   : > { %v6111_v9 = vpop.f32.mrf.mxu1  ;;  %v8452_v63 = vadd.f32 %v6173_v11, %v1930_v13  ;;  %6388 = vmatmul.mubr.msk.f32.gmra.mxu1 %vm411_vm2, %v3331_v49  ;;  %6452 = vmatprep.mubr.msk.f32.mxu0 %vm411_vm2, %v3821_v16  ;;  %v3338_v13 = vrot.slane %v6552_v4, 5  ;;  %v3337_v16 = vsel %vm3278_vm6, %v3334_v19, %v3336_v29  ;;  %v3340_v11 = vrot.slane %v6553_v50, 5  ;;  %v6554_v19 = vld [vmem:[%s6630_s27 + $0x120] sm:$0xff] }
 0x16d   : > { %v1932_v5 = vadd.f32 %v6111_v9, %v8113_v26  ;;  %v2252_v3 = vpop.f32.mrf.mxu0  ;;  %6390 = vmatprep.mubr.msk.f32.mxu1 %vm411_vm2, %v3333_v25  ;;  %v8468_v26 = vpop.permute.xlu1 %4456  ;;  %v3830_v9 = vrot.slane %v6552_v4, 6 }
 0x16e   : > { %v1770_v57 = vpop.f32.mrf.mxu1  ;;  %v8462_v49 = vadd.f32 %v2252_v3, %v1929_v32  ;;  %9632 = vst [vmem:[#allocation13_spill] sm:$0xff] %v8468_v26  ;;  %v3342_v32 = vrot.slane %v6554_v19, 5 }
 0x16f   : > { %v1931_v12 = vadd.f32 %v1770_v57, %v8123_v60  ;;  %v6176_v17 = vpop.f32.mrf.mxu0  ;;  %6453 = vmatmul.mubr.msk.f32.gmra.mxu0 %vm411_vm2, %v3823_v18  ;;  %v3339_v18 = vsel %vm3278_vm6, %v3336_v29, %v3338_v13  ;;  %v3832_v57 = vrot.slane %v6553_v50, 6 }
 0x170   : > { %v6114_v25 = vpop.f32.mrf.mxu1  ;;  %v8470_v51 = vadd.f32 %v6176_v17, %v1932_v5  ;;  %6391 = vmatmul.mubr.msk.f32.gmra.mxu1 %vm411_vm2, %v3335_v62  ;;  %6455 = vmatprep.mubr.msk.f32.mxu0 %vm411_vm2, %v3825_v53  ;;  %v3829_v5 = vsel %vm3770_vm7, %v3826_v52, %v3828_v58  ;;  %v3341_v62 = vsel %vm3278_vm6, %v3338_v13, %v3340_v11  ;;  %v6555_v53 = vld [vmem:[%s6630_s27 + $0x128] sm:$0xff]  ;;  %v3834_v13 = vrot.slane %v6554_v19, 6 }
 0x171   : > { %v1934_v60 = vadd.f32 %v6114_v25, %v8127_v7  ;;  %v2262_v3 = vpop.f32.mrf.mxu0  ;;  %6393 = vmatprep.mubr.msk.f32.mxu1 %vm411_vm2, %v3337_v16  ;;  %v3344_v55 = vrot.slane %v6555_v53, 5  ;;  %v3343_v29 = vsel %vm3278_vm6, %v3340_v11, %v3342_v32  ;;  %v3831_v52 = vsel %vm3770_vm7, %v3828_v58, %v3830_v9  ;;  %v6556_v25 = vld [vmem:[%s6630_s27 + $0x130] sm:$0xff]  ;;  %v6557_v58 = vld [vmem:[%s6630_s27 + $0x138] sm:$0xff] }
 0x172   : > { %v1780_v17 = vpop.f32.mrf.mxu1  ;;  %v8480_v61 = vadd.f32 %v2262_v3, %v1931_v12  ;;  %v3348_v19 = vrot.slane %v6557_v58, 5 }
 0x173   : > { %v1933_v4 = vadd.f32 %v1780_v17, %v8137_v30  ;;  %v6179_v26 = vpop.f32.mrf.mxu0  ;;  %6456 = vmatmul.mubr.msk.f32.gmra.mxu0 %vm411_vm2, %v3827_v8  ;;  %v3833_v30 = vsel %vm3770_vm7, %v3830_v9, %v3832_v57  ;;  %v3836_v8 = vrot.slane %v6555_v53, 6  ;;  %v3345_v11 = vsel %vm3278_vm6, %v3342_v32, %v3344_v55  ;;  %v6558_v53 = vld [vmem:[%s6630_s27 + $0x140] sm:$0xff] }
 0x174   : > { %v6117_v7 = vpop.f32.mrf.mxu1  ;;  %v8486_v16 = vadd.f32 %v6179_v26, %v1934_v60  ;;  %6394 = vmatmul.mubr.msk.f32.gmra.mxu1 %vm411_vm2, %v3339_v18  ;;  %6458 = vmatprep.mubr.msk.f32.mxu0 %vm411_vm2, %v3829_v5  ;;  %v3346_v26 = vrot.slane %v6556_v25, 5  ;;  %v8496_v60 = vpop.permute.xlu1 %4466  ;;  %v3838_v32 = vrot.slane %v6556_v25, 6 }
 0x175   : > { %v1936_v50 = vadd.f32 %v6117_v7, %v8141_v42  ;;  %v2272_v12 = vpop.f32.mrf.mxu0  ;;  %6396 = vmatprep.mubr.msk.f32.mxu1 %vm411_vm2, %v3341_v62  ;;  %9633 = vst [vmem:[#allocation16_spill] sm:$0xff] %v8496_v60  ;;  %v3835_v62 = vsel %vm3770_vm7, %v3832_v57, %v3834_v13 }
 0x176   : > { %v1790_v3 = vpop.f32.mrf.mxu1  ;;  %v8498_v18 = vadd.f32 %v2272_v12, %v1933_v4  ;;  %v3350_v4 = vrot.slane %v6558_v53, 5 }
 0x177   : > { %v1935_v42 = vadd.f32 %v1790_v3, %v8151_v39  ;;  %v6182_v5 = vpop.f32.mrf.mxu0  ;;  %6459 = vmatmul.mubr.msk.f32.gmra.mxu0 %vm411_vm2, %v3831_v52  ;;  %v3347_v39 = vsel %vm3278_vm6, %v3344_v55, %v3346_v26  ;;  %v3837_v52 = vsel %vm3770_vm7, %v3834_v13, %v3836_v8 }
 0x178   : > { %v6120_v17 = vpop.f32.mrf.mxu1  ;;  %v8504_v9 = vadd.f32 %v6182_v5, %v1936_v50  ;;  %6397 = vmatmul.mubr.msk.f32.gmra.mxu1 %vm411_vm2, %v3343_v29  ;;  %6461 = vmatprep.mubr.msk.f32.mxu0 %vm411_vm2, %v3833_v30  ;;  %v3840_v50 = vrot.slane %v6557_v58, 6  ;;  %v3349_v29 = vsel %vm3278_vm6, %v3346_v26, %v3348_v19  ;;  %v6559_v30 = vld [vmem:[%s6630_s27 + $0x148] sm:$0xff]  ;;  %v3351_v13 = vsel %vm3278_vm6, %v3348_v19, %v3350_v4 }
 0x179   : > { %v1938_v7 = vadd.f32 %v6120_v17, %v8155_v23  ;;  %v2282_v12 = vpop.f32.mrf.mxu0  ;;  %6399 = vmatprep.mubr.msk.f32.mxu1 %vm411_vm2, %v3345_v11  ;;  %v3352_v57 = vrot.slane %v6559_v30, 5  ;;  %v8520_v23 = vpop.permute.xlu1 %4521  ;;  %v3839_v26 = vsel %vm3770_vm7, %v3836_v8, %v3838_v32  ;;  %v3842_v58 = vrot.slane %v6558_v53, 6 }
 0x17a   : > { %v1800_v3 = vpop.f32.mrf.mxu1  ;;  %v8514_v5 = vadd.f32 %v2282_v12, %v1935_v42  ;;  %9634 = vst [vmem:[#allocation14_spill] sm:$0xff] %v8520_v23  ;;  %v3841_v17 = vsel %vm3770_vm7, %v3838_v32, %v3840_v50  ;;  %v3356_v19 = vrot.slane %v8178_v41, 5 }
 0x17b   : > { %v1937_v25 = vadd.f32 %v1800_v3, %v8165_v6  ;;  %v6185_v60 = vpop.f32.mrf.mxu0  ;;  %6462 = vmatmul.mubr.msk.f32.gmra.mxu0 %vm411_vm2, %v3835_v62  ;;  %v6560_v62 = vld [vmem:[%s6630_s27 + $0x150] sm:$0xff]  ;;  %v3843_v32 = vsel %vm3770_vm7, %v3840_v50, %v3842_v58 }
 0x17c   : > { %v6123_v11 = vpop.f32.mrf.mxu1  ;;  %v8522_v55 = vadd.f32 %v6185_v60, %v1938_v7  ;;  %6400 = vmatmul.mubr.msk.f32.gmra.mxu1 %vm411_vm2, %v3347_v39  ;;  %6464 = vmatprep.mubr.msk.f32.mxu0 %vm411_vm2, %v3837_v52  ;;  %v3354_v60 = vrot.slane %v6560_v62, 5  ;;  %v3844_v7 = vrot.slane %v6559_v30, 6  ;;  %v3353_v52 = vsel %vm3278_vm6, %v3350_v4, %v3352_v57 }
 0x17d   : > { %v1940_v42 = vadd.f32 %v6123_v11, %v8169_v24  ;;  %v2292_v6 = vpop.f32.mrf.mxu0  ;;  %6402 = vmatprep.mubr.msk.f32.mxu1 %vm411_vm2, %v3349_v29  ;;  %v6561_v29 = vld [vmem:[%s6630_s27 + $0x160] sm:$0xff]  ;;  %s5109_s27 = sshll.u32 %s6622_s23, 3 }
 0x17e   : > { %v1810_v12 = vpop.f32.mrf.mxu1  ;;  %v8532_v39 = vadd.f32 %v2292_v6, %v1937_v25  ;;  %v3358_v30 = vrot.slane %v6561_v29, 5  ;;  %v3846_v25 = vrot.slane %v6560_v62, 6  ;;  %v8549_v6 = vpop.permute.xlu1 %4546  ;;  %v3357_v50 = vsel %vm3278_vm6, %v3354_v60, %v3356_v19  ;;  %s231_s30 = scalar_lea.vmem %s9396_s4, %s5109_s27 }
 0x17f   : > { %v1939_v8 = vadd.f32 %v1810_v12, %v8182_v1  ;;  %v6188_v53 = vpop.f32.mrf.mxu0  ;;  %6465 = vmatmul.mubr.msk.f32.gmra.mxu0 %vm411_vm2, %v3839_v26  ;;  %v3355_v1 = vsel %vm3278_vm6, %v3352_v57, %v3354_v60  ;;  %v3845_v26 = vsel %vm3770_vm7, %v3842_v58, %v3844_v7  ;;  %9635 = vst [vmem:[#allocation8_spill] sm:$0xff] %v8549_v6  ;;  %v3360_v62 = vrot.slane %v8185_v43, 5 }
 0x180   : > { %v6126_v24 = vpop.f32.mrf.mxu1  ;;  %v8538_v3 = vadd.f32 %v6188_v53, %v1940_v42  ;;  %6403 = vmatmul.mubr.msk.f32.gmra.mxu1 %vm411_vm2, %v3351_v13  ;;  %6467 = vmatprep.mubr.msk.f32.mxu0 %vm411_vm2, %v3841_v17  ;;  %v3848_v42 = vrot.slane %v8178_v41, 6  ;;  %v3359_v41 = vsel %vm3278_vm6, %v3356_v19, %v3358_v30  ;;  %v3847_v58 = vsel %vm3770_vm7, %v3844_v7, %v3846_v25 }
 0x181   : > { %v1942_v4 = vadd.f32 %v6126_v24, %v8190_v10  ;;  %v2302_v11 = vpop.f32.mrf.mxu0  ;;  %6405 = vmatprep.mubr.msk.f32.mxu1 %vm411_vm2, %v3353_v52  ;;  %v3362_v24 = vrot.slane %v8201_v33, 5 }
 0x182   : > { %v1820_v13 = vpop.f32.mrf.mxu1  ;;  %v8551_v17 = vadd.f32 %v2302_v11, %v1939_v8  ;;  %v3850_v8 = vrot.slane %v6561_v29, 6 }
 0x183   : > { %v1941_v10 = vadd.f32 %v1820_v13, %v8204_v48  ;;  %v6191_v12 = vpop.f32.mrf.mxu0  ;;  %6468 = vmatmul.mubr.msk.f32.gmra.mxu0 %vm411_vm2, %v3843_v32  ;;  %v3849_v48 = vsel %vm3770_vm7, %v3846_v25, %v3848_v42  ;;  %v3852_v32 = vrot.slane %v8185_v43, 6  ;;  %v3854_v25 = vrot.slane %v8201_v33, 6 }
 0x184   : > { %v6129_v52 = vpop.f32.mrf.mxu1  ;;  %v8557_v57 = vadd.f32 %v6191_v12, %v1942_v4  ;;  %6406 = vmatmul.mubr.msk.f32.gmra.mxu1 %vm411_vm2, %v3355_v1  ;;  %6470 = vmatprep.mubr.msk.f32.mxu0 %vm411_vm2, %v3845_v26  ;;  %v3361_v1 = vsel %vm3278_vm6, %v3358_v30, %v3360_v62  ;;  %v3851_v43 = vsel %vm3770_vm7, %v3848_v42, %v3850_v8 }
 0x185   : > { %v1944_v60 = vadd.f32 %v6129_v52, %v8209_v35  ;;  %v2312_v53 = vpop.f32.mrf.mxu0  ;;  %6408 = vmatprep.mubr.msk.f32.mxu1 %vm411_vm2, %v3357_v50  ;;  %v8573_v35 = vpop.permute.xlu1 %4556  ;;  %v3853_v50 = vsel %vm3770_vm7, %v3850_v8, %v3852_v32  ;;  %v3855_v33 = vsel %vm3770_vm7, %v3852_v32, %v3854_v25 }
 0x186   : > { %v1830_v4 = vpop.f32.mrf.mxu1  ;;  %v8568_v11 = vadd.f32 %v2312_v53, %v1941_v10  ;;  %9636 = vst [vmem:[#allocation15_spill] sm:$0xff] %v8573_v35 }
 0x187   : > { %v1943_v19 = vadd.f32 %v1830_v4, %v8221_v20  ;;  %v6194_v7 = vpop.f32.mrf.mxu0  ;;  %6471 = vmatmul.mubr.msk.f32.gmra.mxu0 %vm411_vm2, %v3847_v58  ;;  %v3363_v20 = vsel %vm3278_vm6, %v3360_v62, %v3362_v24 }
 0x188   : > { %v6132_v29 = vpop.f32.mrf.mxu1  ;;  %v8575_v26 = vadd.f32 %v6194_v7, %v1944_v60  ;;  %6409 = vmatmul.mubr.msk.f32.gmra.mxu1 %vm411_vm2, %v3359_v41  ;;  %6473 = vmatprep.mubr.msk.f32.mxu0 %vm411_vm2, %v3849_v48 }
 0x189   : > { %v1946_v30 = vadd.f32 %v6132_v29, %v8226_v14  ;;  %v2322_v13 = vpop.f32.mrf.mxu0  ;;  %6411 = vmatprep.mubr.msk.f32.mxu1 %vm411_vm2, %v3361_v1  ;;  %v4430_v8 = vpop.xlane.xlu1 %4429 }
 0x18a   : > { %v1840_v10 = vpop.f32.mrf.mxu1  ;;  %v8585_v12 = vadd.f32 %v2322_v13, %v1943_v19 }
 0x18b   : > { %v1945_v52 = vadd.f32 %v1840_v10, %v8238_v38  ;;  %v6197_v41 = vpop.f32.mrf.mxu0  ;;  %6474 = vmatmul.mubr.msk.f32.gmra.mxu0 %vm411_vm2, %v3851_v43  ;;  %v4431_v38 = vrot.slane %v4430_v8, 4 }
 0x18c   : > { %v6135_v42 = vpop.f32.mrf.mxu1  ;;  %v8589_v58 = vadd.f32 %v6197_v41, %v1946_v30  ;;  %6412 = vmatmul.mubr.msk.f32.gmra.mxu1 %vm411_vm2, %v3363_v20  ;;  %6476 = vmatprep.mubr.msk.f32.mxu0 %vm411_vm2, %v3853_v50 }
 0x18d   : > { %v1948_v14 = vadd.f32 %v6135_v42, %v8244_v28  ;;  %v2332_v62 = vpop.f32.mrf.mxu0  ;;  %v4432_v28 = vadd.f32 %v4431_v38, %v4430_v8 }
 0x18e   : > { %v1850_v60 = vpop.f32.mrf.mxu1  ;;  %v8595_v53 = vadd.f32 %v2332_v62, %v1945_v52 }
 0x18f   : > { %v1947_v48 = vadd.f32 %v1850_v60, %v8256_v0  ;;  %v6200_v24 = vpop.f32.mrf.mxu0  ;;  %6477 = vmatmul.mubr.msk.f32.gmra.mxu0 %vm411_vm2, %v3855_v33  ;;  %v4433_v52 = vrot.slane %v4432_v28, 2 }
 0x190   : > { %v6138_v4 = vpop.f32.mrf.mxu1  ;;  %v8599_v1 = vadd.f32 %v6200_v24, %v1948_v14  ;;  %v9637_v14 = vld [vmem:[#allocation2_spill] sm:$0xff] }
 0x191   : > { %v1950_v19 = vadd.f32 %v6138_v4, %v8262_v45  ;;  %v2342_v7 = vpop.f32.mrf.mxu0  ;;  %v4434_v38 = vadd.f32 %v4433_v52, %v4432_v28 }
 0x192   : > { %v1860_v32 = vpop.f32.mrf.mxu1  ;;  %v8602_v29 = vadd.f32 %v2342_v7, %v1947_v48  ;;  %v9638_v48 = vld [vmem:[#allocation4_spill] sm:$0xff] }
 0x193   : > { %v1949_v43 = vadd.f32 %v1860_v32, %v8274_v46  ;;  %v6203_v25 = vpop.f32.mrf.mxu0  ;;  %v4435_v7 = vrot.slane %v4434_v38, 1  ;;  %v9639_v32 = vld [vmem:[#allocation12_spill] sm:$0xff] }
 0x194   : > { %v6141_v30 = vpop.f32.mrf.mxu1  ;;  %v8605_v13 = vadd.f32 %v6203_v25, %v1950_v19 }
 0x195   : > { %v1952_v0 = vadd.f32 %v6141_v30, %v8280_v40  ;;  %v2352_v20 = vpop.f32.mrf.mxu0 }
 0x196   : > { %v1870_v50 = vpop.f32.mrf.mxu1  ;;  %v8608_v10 = vadd.f32 %v2352_v20, %v1949_v43 }
 0x197   : > { %v1951_v45 = vadd.f32 %v1870_v50, %v8292_v44  ;;  %v6206_v41 = vpop.f32.mrf.mxu0 }
 0x198   : > { %v6144_v42 = vpop.f32.mrf.mxu1  ;;  %v8611_v33 = vadd.f32 %v6206_v41, %v1952_v0  ;;  %v4436_v0 = vadd.f32 %v4435_v7, %v4434_v38 }
 0x199   : > { %v1954_v62 = vadd.f32 %v6144_v42, %v9637_v14  ;;  %v2362_v46 = vpop.f32.mrf.mxu0 }
 0x19a   : > { %v1880_v8 = vpop.f32.mrf.mxu1  ;;  %v8614_v60 = vadd.f32 %v2362_v46, %v1951_v45  ;;  %6482 = vpush %v4436_v0 }
 0x19b   : > { %v1953_v40 = vadd.f32 %v1880_v8, %v9638_v48  ;;  %v6209_v24 = vpop.f32.mrf.mxu0 }
 0x19c   : > { %v6147_v4 = vpop.f32.mrf.mxu1  ;;  %v8617_v19 = vadd.f32 %v6209_v24, %v1954_v62 }
 0x19d   : > { %v1956_v44 = vadd.f32 %v6147_v4, %v9639_v32  ;;  %v2372_v43 = vpop.f32.mrf.mxu0  ;;  %v9640_v4 = vld [vmem:[#allocation5_spill] sm:$0xff] }
 0x19e   : > { %v1890_v25 = vpop.f32.mrf.mxu1  ;;  %v8620_v30 = vadd.f32 %v2372_v43, %v1953_v40  ;;  %v9641_v43 = vld [vmem:[#allocation3_spill] sm:$0xff] }
 0x19f   : > { %v1955_v20 = vadd.f32 %v1890_v25, %v8328_v15  ;;  %v6212_v50 = vpop.f32.mrf.mxu0 }
 0x1a0   : > { %v6150_v45 = vpop.f32.mrf.mxu1  ;;  %v8623_v41 = vadd.f32 %v6212_v50, %v1956_v44 }
 0x1a1   : > { %v1958_v28 = vadd.f32 %v6150_v45, %v8335_v54  ;;  %v2382_v52 = vpop.f32.mrf.mxu0 }
 0x1a2   : > { %v1900_v42 = vpop.f32.mrf.mxu1  ;;  %v8626_v14 = vadd.f32 %v2382_v52, %v1955_v20 }
 0x1a3   : > { %v1957_v62 = vadd.f32 %v1900_v42, %v8346_v34  ;;  %v6215_v46 = vpop.f32.mrf.mxu0 }
 0x1a4   : > { %v6153_v8 = vpop.f32.mrf.mxu1  ;;  %v8629_v48 = vadd.f32 %v6215_v46, %v1958_v28 }
 0x1a5   : > { %v1960_v38 = vadd.f32 %v6153_v8, %v8353_v22  ;;  %v2392_v15 = vpop.f32.mrf.mxu0 }
 0x1a6   : > { %v1910_v40 = vpop.f32.mrf.mxu1  ;;  %v8632_v24 = vadd.f32 %v2392_v15, %v1957_v62 }
 0x1a7   : > { %v1959_v7 = vadd.f32 %v1910_v40, %v9640_v4  ;;  %v6218_v32 = vpop.f32.mrf.mxu0 }
 0x1a8   : > { %v8635_v54 = vadd.f32 %v6218_v32, %v1960_v38  ;;  %v6223_v44 = vpop.f32.mrf.mxu1 }
 0x1a9   : > { %v2903_v25 = vadd.f32 %v6223_v44, %v9641_v43  ;;  %v2402_v0 = vpop.f32.mrf.mxu0 }
 0x1aa   : > { %v8638_v34 = vadd.f32 %v2402_v0, %v1959_v7  ;;  %v2693_v20 = vpop.f32.mrf.mxu1 }
 0x1ab   : > { %v2902_v50 = vadd.f32 %v2693_v20, %v8380_v59  ;;  %v6288_v45 = vpop.f32.mrf.mxu0 }
 0x1ac   : > { %v6226_v22 = vpop.f32.mrf.mxu1  ;;  %v8641_v28 = vadd.f32 %v6288_v45, %v2903_v25  ;;  %v8658_v45 = vpop.permute.xlu0 %4441 }
 0x1ad   : > { %v2905_v52 = vadd.f32 %v6226_v22, %v8386_v21  ;;  %v3025_v42 = vpop.f32.mrf.mxu0  ;;  %9642 = vst [vmem:[#allocation18_spill] sm:$0xff] %v8658_v45 }
 0x1ae   : > { %v2703_v62 = vpop.f32.mrf.mxu1  ;;  %v8644_v46 = vadd.f32 %v3025_v42, %v2902_v50 }
 0x1af   : > { %v2904_v8 = vadd.f32 %v2703_v62, %v8396_v2  ;;  %v6291_v38 = vpop.f32.mrf.mxu0 }
 0x1b0   : > { %v6229_v15 = vpop.f32.mrf.mxu1  ;;  %v8647_v40 = vadd.f32 %v6291_v38, %v2905_v52 }
 0x1b1   : > { %v2907_v4 = vadd.f32 %v6229_v15, %v8402_v47  ;;  %v3035_v7 = vpop.f32.mrf.mxu0 }
 0x1b2   : > { %v2713_v59 = vpop.f32.mrf.mxu1  ;;  %v8650_v32 = vadd.f32 %v3035_v7, %v2904_v8 }
 0x1b3   : > { %v2906_v44 = vadd.f32 %v2713_v59, %v8412_v56  ;;  %v6294_v43 = vpop.f32.mrf.mxu0  ;;  %v8669_v59 = vpop.permute.xlu0 %4446 }
 0x1b4   : > { %v6232_v21 = vpop.f32.mrf.mxu1  ;;  %v8653_v25 = vadd.f32 %v6294_v43, %v2907_v4  ;;  %9643 = vst [vmem:[#allocation7_spill] sm:$0xff] %v8669_v59 }
 0x1b5   : > { %v2909_v0 = vadd.f32 %v6232_v21, %v8418_v31  ;;  %v3045_v20 = vpop.f32.mrf.mxu0 }
 0x1b6   : > { %v2723_v2 = vpop.f32.mrf.mxu1  ;;  %v8656_v50 = vadd.f32 %v3045_v20, %v2906_v44 }
 0x1b7   : > { %v2908_v47 = vadd.f32 %v2723_v2, %v8428_v37  ;;  %v6297_v22 = vpop.f32.mrf.mxu0 }
 0x1b8   : > { %v6235_v52 = vpop.f32.mrf.mxu1  ;;  %v8661_v42 = vadd.f32 %v6297_v22, %v2909_v0 }
 0x1b9   : > { %v2911_v56 = vadd.f32 %v6235_v52, %v8434_v36  ;;  %v3055_v62 = vpop.f32.mrf.mxu0 }
 0x1ba   : > { %v2733_v8 = vpop.f32.mrf.mxu1  ;;  %v8664_v38 = vadd.f32 %v3055_v62, %v2908_v47 }
 0x1bb   : > { %v2910_v31 = vadd.f32 %v2733_v8, %v8446_v27  ;;  %v6300_v15 = vpop.f32.mrf.mxu0 }
 0x1bc   : > { %v6238_v4 = vpop.f32.mrf.mxu1  ;;  %v8667_v7 = vadd.f32 %v6300_v15, %v2911_v56  ;;  %v8680_v56 = vpop.permute.xlu0 %4461 }
 0x1bd   : > { %v2913_v37 = vadd.f32 %v6238_v4, %v8452_v63  ;;  %v3065_v44 = vpop.f32.mrf.mxu0  ;;  %9644 = vst [vmem:[#allocation20_spill] sm:$0xff] %v8680_v56 }
 0x1be   : > { %v2743_v43 = vpop.f32.mrf.mxu1  ;;  %v8672_v21 = vadd.f32 %v3065_v44, %v2910_v31 }
 0x1bf   : > { %v2912_v36 = vadd.f32 %v2743_v43, %v8462_v49  ;;  %v6303_v0 = vpop.f32.mrf.mxu0 }
 0x1c0   : > { %v6241_v20 = vpop.f32.mrf.mxu1  ;;  %v8675_v2 = vadd.f32 %v6303_v0, %v2913_v37  ;;  %v8691_v0 = vpop.permute.xlu0 %4471 }
 0x1c1   : > { %v2915_v27 = vadd.f32 %v6241_v20, %v8470_v51  ;;  %v3075_v47 = vpop.f32.mrf.mxu0 }
 0x1c2   : > { %v2753_v22 = vpop.f32.mrf.mxu1  ;;  %v8678_v52 = vadd.f32 %v3075_v47, %v2912_v36 }
 0x1c3   : > { %v2914_v63 = vadd.f32 %v2753_v22, %v8480_v61  ;;  %v6306_v62 = vpop.f32.mrf.mxu0 }
 0x1c4   : > { %v6244_v8 = vpop.f32.mrf.mxu1  ;;  %v8683_v31 = vadd.f32 %v6306_v62, %v2915_v27 }
 0x1c5   : > { %v2917_v49 = vadd.f32 %v6244_v8, %v8486_v16  ;;  %v3085_v15 = vpop.f32.mrf.mxu0 }
 0x1c6   : > { %v2763_v4 = vpop.f32.mrf.mxu1  ;;  %v8686_v37 = vadd.f32 %v3085_v15, %v2914_v63 }
 0x1c7   : > { %v2916_v51 = vadd.f32 %v2763_v4, %v8498_v18  ;;  %v6309_v44 = vpop.f32.mrf.mxu0  ;;  %v8702_v4 = vpop.permute.xlu0 %4476 }
 0x1c8   : > { %v6247_v43 = vpop.f32.mrf.mxu1  ;;  %v8689_v36 = vadd.f32 %v6309_v44, %v2917_v49 }
 0x1c9   : > { %v2919_v61 = vadd.f32 %v6247_v43, %v8504_v9  ;;  %v3095_v20 = vpop.f32.mrf.mxu0 }
 0x1ca   : > { %v2773_v47 = vpop.f32.mrf.mxu1  ;;  %v8694_v27 = vadd.f32 %v3095_v20, %v2916_v51 }
 0x1cb   : > { %v2918_v16 = vadd.f32 %v2773_v47, %v8514_v5  ;;  %v6312_v22 = vpop.f32.mrf.mxu0  ;;  %s6483_s24 = spop %6482 }
 0x1cc   : > { %v6250_v62 = vpop.f32.mrf.mxu1  ;;  %v8697_v63 = vadd.f32 %v6312_v22, %v2919_v61  ;;  %s4438_s26 = smax.f32 %s6571_s25, %s6483_s24 }
 0x1cd   : > { %v2921_v18 = vadd.f32 %v6250_v62, %v8522_v55  ;;  %v3105_v8 = vpop.f32.mrf.mxu0 }
 0x1ce   : > { %v2783_v15 = vpop.f32.mrf.mxu1  ;;  %v8700_v49 = vadd.f32 %v3105_v8, %v2918_v16  ;;  %v8713_v8 = vpop.permute.xlu0 %4481 }
 0x1cf   : > { %v2920_v9 = vadd.f32 %v2783_v15, %v8532_v39  ;;  %v6315_v44 = vpop.f32.mrf.mxu0 }
 0x1d0   : > { %v6253_v43 = vpop.f32.mrf.mxu1  ;;  %v8705_v51 = vadd.f32 %v6315_v44, %v2921_v18 }
 0x1d1   : > { %v2923_v5 = vadd.f32 %v6253_v43, %v8538_v3  ;;  %v3115_v20 = vpop.f32.mrf.mxu0 }
 0x1d2   : > { %v2793_v47 = vpop.f32.mrf.mxu1  ;;  %v8708_v61 = vadd.f32 %v3115_v20, %v2920_v9 }
 0x1d3   : > { %v2922_v55 = vadd.f32 %v2793_v47, %v8551_v17  ;;  %v6318_v22 = vpop.f32.mrf.mxu0 }
 0x1d4   : > { %v6256_v62 = vpop.f32.mrf.mxu1  ;;  %v8711_v16 = vadd.f32 %v6318_v22, %v2923_v5  ;;  %v8724_v22 = vpop.permute.xlu0 %4486 }
 0x1d5   : > { %v2925_v39 = vadd.f32 %v6256_v62, %v8557_v57  ;;  %v3125_v15 = vpop.f32.mrf.mxu0  ;;  %9646 = vst [vmem:[#allocation22_spill] sm:$0xff] %v8724_v22 }
 0x1d6   : > { %v2803_v35 = vpop.f32.mrf.mxu1  ;;  %v8716_v18 = vadd.f32 %v3125_v15, %v2922_v55 }
 0x1d7   : > { %v2924_v3 = vadd.f32 %v2803_v35, %v8568_v11  ;;  %v6321_v44 = vpop.f32.mrf.mxu0 }
 0x1d8   : > { %v6259_v43 = vpop.f32.mrf.mxu1  ;;  %v8719_v9 = vadd.f32 %v6321_v44, %v2925_v39 }
 0x1d9   : > { %v2927_v17 = vadd.f32 %v6259_v43, %v8575_v26  ;;  %v3135_v20 = vpop.f32.mrf.mxu0 }
 0x1da   : > { %v2813_v47 = vpop.f32.mrf.mxu1  ;;  %v8722_v5 = vadd.f32 %v3135_v20, %v2924_v3  ;;  %v8735_v20 = vpop.permute.xlu0 %4491 }
 0x1db   : > { %v2926_v57 = vadd.f32 %v2813_v47, %v8585_v12  ;;  %v6324_v62 = vpop.f32.mrf.mxu0 }
 0x1dc   : > { %9645 = vst [vmem:[#allocation17_spill] sm:$0xff] %v8722_v5  ;;  %v6262_v6 = vpop.f32.mrf.mxu1  ;;  %v8727_v55 = vadd.f32 %v6324_v62, %v2927_v17 }
 0x1dd   : > { %v2929_v11 = vadd.f32 %v6262_v6, %v8589_v58  ;;  %v3145_v35 = vpop.f32.mrf.mxu0 }
 0x1de   : > { %v2823_v15 = vpop.f32.mrf.mxu1  ;;  %v8730_v39 = vadd.f32 %v3145_v35, %v2926_v57 }
 0x1df   : > { %v2928_v26 = vadd.f32 %v2823_v15, %v8595_v53  ;;  %v6327_v44 = vpop.f32.mrf.mxu0 }
 0x1e0   : > { %v6265_v43 = vpop.f32.mrf.mxu1  ;;  %v8733_v3 = vadd.f32 %v6327_v44, %v2929_v11  ;;  %v8746_v44 = vpop.permute.xlu0 %4496 }
 0x1e1   : > { %v2931_v12 = vadd.f32 %v6265_v43, %v8599_v1  ;;  %v3155_v47 = vpop.f32.mrf.mxu0  ;;  %9649 = vst [vmem:[#allocation19_spill] sm:$0xff] %v8746_v44 }
 0x1e2   : > { %9647 = vst [vmem:[#allocation9_spill] sm:$0xff] %v8733_v3  ;;  %v2833_v5 = vpop.f32.mrf.mxu1  ;;  %v8738_v17 = vadd.f32 %v3155_v47, %v2928_v26 }
 0x1e3   : > { %v2930_v6 = vadd.f32 %v2833_v5, %v8602_v29  ;;  %v6330_v58 = vpop.f32.mrf.mxu0 }
 0x1e4   : > { %v6268_v62 = vpop.f32.mrf.mxu1  ;;  %v8741_v57 = vadd.f32 %v6330_v58, %v2931_v12 }
 0x1e5   : > { %v2933_v53 = vadd.f32 %v6268_v62, %v8605_v13  ;;  %v3165_v35 = vpop.f32.mrf.mxu0 }
 0x1e6   : > { %v2843_v15 = vpop.f32.mrf.mxu1  ;;  %v8744_v11 = vadd.f32 %v3165_v35, %v2930_v6  ;;  %v8757_v35 = vpop.permute.xlu0 %4501 }
 0x1e7   : > { %v2932_v1 = vadd.f32 %v2843_v15, %v8608_v10  ;;  %v6333_v43 = vpop.f32.mrf.mxu0 }
 0x1e8   : > { %9648 = vst [vmem:[#allocation11_spill] sm:$0xff] %v8744_v11  ;;  %v6271_v3 = vpop.f32.mrf.mxu1  ;;  %v8749_v26 = vadd.f32 %v6333_v43, %v2933_v53 }
 0x1e9   : > { %v2935_v29 = vadd.f32 %v6271_v3, %v8611_v33  ;;  %v3175_v5 = vpop.f32.mrf.mxu0 }
 0x1ea   : > { %v2853_v47 = vpop.f32.mrf.mxu1  ;;  %v8752_v12 = vadd.f32 %v3175_v5, %v2932_v1 }
 0x1eb   : > { %v2934_v13 = vadd.f32 %v2853_v47, %v8614_v60  ;;  %v6336_v58 = vpop.f32.mrf.mxu0 }
 0x1ec   : > { %v6274_v62 = vpop.f32.mrf.mxu1  ;;  %v8755_v6 = vadd.f32 %v6336_v58, %v2935_v29  ;;  %v8768_v58 = vpop.permute.xlu0 %4506 }
 0x1ed   : > { %v2937_v10 = vadd.f32 %v6274_v62, %v8617_v19  ;;  %v3185_v15 = vpop.f32.mrf.mxu0 }
 0x1ee   : > { %9650 = vst [vmem:[#allocation25_spill] sm:$0xff] %v8755_v6  ;;  %v2863_v11 = vpop.f32.mrf.mxu1  ;;  %v8760_v53 = vadd.f32 %v3185_v15, %v2934_v13 }
 0x1ef   : > { %v2936_v33 = vadd.f32 %v2863_v11, %v8620_v30  ;;  %v6339_v3 = vpop.f32.mrf.mxu0 }
 0x1f0   : > { %v6277_v43 = vpop.f32.mrf.mxu1  ;;  %v8763_v1 = vadd.f32 %v6339_v3, %v2937_v10 }
 0x1f1   : > { %v2939_v60 = vadd.f32 %v6277_v43, %v8623_v41  ;;  %v3195_v5 = vpop.f32.mrf.mxu0 }
 0x1f2   : > { %v2873_v47 = vpop.f32.mrf.mxu1  ;;  %v8766_v29 = vadd.f32 %v3195_v5, %v2936_v33  ;;  %v8779_v5 = vpop.permute.xlu0 %4511 }
 0x1f3   : > { %v2938_v19 = vadd.f32 %v2873_v47, %v8626_v14  ;;  %v6342_v62 = vpop.f32.mrf.mxu0 }
 0x1f4   : > { %v6280_v6 = vpop.f32.mrf.mxu1  ;;  %v8771_v13 = vadd.f32 %v6342_v62, %v2939_v60 }
 0x1f5   : > { %v2941_v30 = vadd.f32 %v6280_v6, %v8629_v48  ;;  %v3205_v11 = vpop.f32.mrf.mxu0 }
 0x1f6   : > { %v2883_v15 = vpop.f32.mrf.mxu1  ;;  %v8774_v10 = vadd.f32 %v3205_v11, %v2938_v19 }
 0x1f7   : > { %v2940_v41 = vadd.f32 %v2883_v15, %v8632_v24  ;;  %v6345_v3 = vpop.f32.mrf.mxu0 }
 0x1f8   : > { %9651 = vst [vmem:[#allocation10_spill] sm:$0xff] %v8774_v10  ;;  %v6283_v33 = vpop.f32.mrf.mxu1  ;;  %v8777_v43 = vadd.f32 %v6345_v3, %v2941_v30 }
 0x1f9   : > { %v2943_v14 = vadd.f32 %v6283_v33, %v8635_v54  ;;  %v3215_v47 = vpop.f32.mrf.mxu0  ;;  %v8797_v54 = vpop.permute.xlu0 %4516 }
 0x1fa   : > { %v2893_v60 = vpop.f32.mrf.mxu1  ;;  %v8782_v62 = vadd.f32 %v3215_v47, %v2940_v41  ;;  %9652 = vst [vmem:[#allocation28_spill] sm:$0xff] %v8797_v54 }
 0x1fb   : > { %v2942_v48 = vadd.f32 %v2893_v60, %v8638_v34  ;;  %v6348_v6 = vpop.f32.mrf.mxu0 }
 0x1fc   : > { %v8785_v19 = vadd.f32 %v6348_v6, %v2943_v14  ;;  %v6353_v11 = vpop.f32.mrf.mxu1 }
 0x1fd   : > { %v3225_v24 = vpop.f32.mrf.mxu0  ;;  %v3727_v15 = vadd.f32 %v6353_v11, %v8641_v28 }
 0x1fe   : > { %v8788_v10 = vadd.f32 %v3225_v24, %v2942_v48  ;;  %v3517_v30 = vpop.f32.mrf.mxu1 }
 0x1ff   : > { %v6418_v34 = vpop.f32.mrf.mxu0  ;;  %v3726_v41 = vadd.f32 %v3517_v30, %v8644_v46 }
 0x200   : > { %v6356_v3 = vpop.f32.mrf.mxu1  ;;  %v8800_v33 = vadd.f32 %v6418_v34, %v3727_v15  ;;  %v8818_v15 = vpop.permute.xlu0 %4526 }
 0x201   : > { %v4009_v28 = vpop.f32.mrf.mxu0  ;;  %v3729_v14 = vadd.f32 %v6356_v3, %v8647_v40  ;;  %9655 = vst [vmem:[#allocation26_spill] sm:$0xff] %v8818_v15 }
 0x202   : > { %9653 = vst [vmem:[#allocation23_spill] sm:$0xff] %v8800_v33  ;;  %4262 = vst.msk [vmem:[%s8795_s22 + $0x8] sm:$0xff] %vm4260_vm8, %v8800_v33  ;;  %v3527_v47 = vpop.f32.mrf.mxu1  ;;  %v8806_v60 = vadd.f32 %v4009_v28, %v3726_v41  ;;  %v4650_v48 = vmul.f32 %v8669_v59, %v8800_v33 }
 0x203   : > { %v6421_v6 = vpop.f32.mrf.mxu0  ;;  %v3728_v11 = vadd.f32 %v3527_v47, %v8650_v32 }
 0x204   : > { %4261 = vst.msk [vmem:[%s8795_s22] sm:$0xff] %vm4260_vm8, %v8806_v60  ;;  %v4649_v46 = vmul.f32 %v8658_v45, %v8806_v60  ;;  %v6359_v40 = vpop.f32.mrf.mxu1  ;;  %v8816_v24 = vadd.f32 %v6421_v6, %v3729_v14  ;;  %v4692_v28 = vsel %vm4260_vm8, %v4650_v48, 0.0  ;;  %v9656_v14 = vld [vmem:[#allocation13_spill] sm:$0xff] }
 0x205   : > { %v4019_v30 = vpop.f32.mrf.mxu0  ;;  %v3731_v41 = vadd.f32 %v6359_v40, %v8653_v25  ;;  %v9657_v25 = vld [vmem:[#allocation6_spill] sm:$0xff] }
 0x206   : > { %9654 = vst [vmem:[#allocation29_spill] sm:$0xff] %v8816_v24  ;;  %v4691_v34 = vsel %vm4260_vm8, %v4649_v46, 0.0  ;;  %4264 = vst.msk [vmem:[%s8795_s22 + $0x18] sm:$0xff] %vm4260_vm8, %v8816_v24  ;;  %v3537_v32 = vpop.f32.mrf.mxu1  ;;  %v8825_v3 = vadd.f32 %v4019_v30, %v3728_v11  ;;  %v4652_v6 = vmul.f32 %v9656_v14, %v8816_v24  ;;  %v8845_v14 = vpop.permute.xlu0 %4531  ;;  %v9658_v24 = vld [vmem:[#allocation16_spill] sm:$0xff] }
 0x207   : > { %v6424_v47 = vpop.f32.mrf.mxu0  ;;  %v3730_v59 = vadd.f32 %v3537_v32, %v8656_v50  ;;  %v4693_v11 = vadd.f32 %v4692_v28, %v4691_v34 }
 0x208   : > { %4263 = vst.msk [vmem:[%s8795_s22 + $0x10] sm:$0xff] %vm4260_vm8, %v8825_v3  ;;  %v4651_v46 = vmul.f32 %v9657_v25, %v8825_v3  ;;  %v6362_v40 = vpop.f32.mrf.mxu1  ;;  %v8836_v45 = vadd.f32 %v6424_v47, %v3731_v41  ;;  %v4696_v34 = vsel %vm4260_vm8, %v4652_v6, 0.0 }
 0x209   : > { %v4029_v30 = vpop.f32.mrf.mxu0  ;;  %v3733_v33 = vadd.f32 %v6362_v40, %v8661_v42 }
 0x20a   : > { %v4694_v48 = vsel %vm4260_vm8, %v4651_v46, 0.0  ;;  %4266 = vst.msk [vmem:[%s8795_s22 + $0x28] sm:$0xff] %vm4260_vm8, %v8836_v45  ;;  %v3547_v50 = vpop.f32.mrf.mxu1  ;;  %v8843_v32 = vadd.f32 %v4029_v30, %v3730_v59  ;;  %v4654_v41 = vmul.f32 %v9658_v24, %v8836_v45 }
 0x20b   : > { %v4695_v25 = vadd.f32 %v4694_v48, %v4693_v11  ;;  %v6427_v47 = vpop.f32.mrf.mxu0  ;;  %v3732_v28 = vadd.f32 %v3547_v50, %v8664_v38 }
 0x20c   : > { %4265 = vst.msk [vmem:[%s8795_s22 + $0x20] sm:$0xff] %vm4260_vm8, %v8843_v32  ;;  %v4653_v42 = vmul.f32 %v8680_v56, %v8843_v32  ;;  %v6365_v59 = vpop.f32.mrf.mxu1  ;;  %v8856_v46 = vadd.f32 %v6427_v47, %v3733_v33  ;;  %v4700_v50 = vsel %vm4260_vm8, %v4654_v41, 0.0 }
 0x20d   : > { %v4697_v40 = vadd.f32 %v4696_v34, %v4695_v25  ;;  %v4039_v11 = vpop.f32.mrf.mxu0  ;;  %v3735_v48 = vadd.f32 %v6365_v59, %v8667_v7 }
 0x20e   : > { %v4698_v30 = vsel %vm4260_vm8, %v4653_v42, 0.0  ;;  %4268 = vst.msk [vmem:[%s8795_s22 + $0x38] sm:$0xff] %vm4260_vm8, %v8856_v46  ;;  %v3557_v38 = vpop.f32.mrf.mxu1  ;;  %v8863_v6 = vadd.f32 %v4039_v11, %v3732_v28  ;;  %v4656_v33 = vmul.f32 %v8702_v4, %v8856_v46  ;;  %v8876_v28 = vpop.permute.xlu0 %4536 }
 0x20f   : > { %v4699_v24 = vadd.f32 %v4698_v30, %v4697_v40  ;;  %v6430_v56 = vpop.f32.mrf.mxu0  ;;  %v3734_v25 = vadd.f32 %v3557_v38, %v8672_v21  ;;  %9659 = vst [vmem:[#allocation24_spill] sm:$0xff] %v8876_v28 }
 0x210   : > { %4267 = vst.msk [vmem:[%s8795_s22 + $0x30] sm:$0xff] %vm4260_vm8, %v8863_v6  ;;  %v4655_v7 = vmul.f32 %v8691_v0, %v8863_v6  ;;  %v6368_v47 = vpop.f32.mrf.mxu1  ;;  %v8874_v34 = vadd.f32 %v6430_v56, %v3735_v48  ;;  %v4704_v38 = vsel %vm4260_vm8, %v4656_v33, 0.0 }
 0x211   : > { %v4701_v41 = vadd.f32 %v4700_v50, %v4699_v24  ;;  %v4049_v42 = vpop.f32.mrf.mxu0  ;;  %v3737_v40 = vadd.f32 %v6368_v47, %v8675_v2 }
 0x212   : > { %v4702_v59 = vsel %vm4260_vm8, %v4655_v7, 0.0  ;;  %4270 = vst.msk [vmem:[%s8795_s22 + $0x48] sm:$0xff] %vm4260_vm8, %v8874_v34  ;;  %v3567_v21 = vpop.f32.mrf.mxu1  ;;  %v8883_v11 = vadd.f32 %v4049_v42, %v3734_v25  ;;  %v4658_v56 = vmul.f32 %v8724_v22, %v8874_v34 }
 0x213   : > { %v4703_v30 = vadd.f32 %v4702_v59, %v4701_v41  ;;  %v6433_v48 = vpop.f32.mrf.mxu0  ;;  %v3736_v24 = vadd.f32 %v3567_v21, %v8678_v52  ;;  %v8903_v59 = vpop.permute.xlu0 %4541 }
 0x214   : > { %4269 = vst.msk [vmem:[%s8795_s22 + $0x40] sm:$0xff] %vm4260_vm8, %v8883_v11  ;;  %v4657_v2 = vmul.f32 %v8713_v8, %v8883_v11  ;;  %v6371_v50 = vpop.f32.mrf.mxu1  ;;  %v8894_v7 = vadd.f32 %v6433_v48, %v3737_v40  ;;  %9660 = vst [vmem:[#allocation27_spill] sm:$0xff] %v8903_v59  ;;  %v4708_v21 = vsel %vm4260_vm8, %v4658_v56, 0.0 }
 0x215   : > { %v4705_v25 = vadd.f32 %v4704_v38, %v4703_v30  ;;  %v4059_v47 = vpop.f32.mrf.mxu0  ;;  %v3739_v42 = vadd.f32 %v6371_v50, %v8683_v31 }
 0x216   : > { %v4706_v41 = vsel %vm4260_vm8, %v4657_v2, 0.0  ;;  %4272 = vst.msk [vmem:[%s8795_s22 + $0x58] sm:$0xff] %vm4260_vm8, %v8894_v7  ;;  %v3577_v52 = vpop.f32.mrf.mxu1  ;;  %v8901_v33 = vadd.f32 %v4059_v47, %v3736_v24  ;;  %v4660_v30 = vmul.f32 %v8746_v44, %v8894_v7 }
 0x217   : > { %v4707_v22 = vadd.f32 %v4706_v41, %v4705_v25  ;;  %v6436_v40 = vpop.f32.mrf.mxu0  ;;  %v3738_v48 = vadd.f32 %v3577_v52, %v8686_v37 }
 0x218   : > { %4271 = vst.msk [vmem:[%s8795_s22 + $0x50] sm:$0xff] %vm4260_vm8, %v8901_v33  ;;  %v4659_v31 = vmul.f32 %v8735_v20, %v8901_v33  ;;  %v6374_v38 = vpop.f32.mrf.mxu1  ;;  %v8914_v24 = vadd.f32 %v6436_v40, %v3739_v42  ;;  %v4712_v42 = vsel %vm4260_vm8, %v4660_v30, 0.0 }
 0x219   : > { %v4709_v2 = vadd.f32 %v4708_v21, %v4707_v22  ;;  %v4069_v50 = vpop.f32.mrf.mxu0  ;;  %v3741_v25 = vadd.f32 %v6374_v38, %v8689_v36 }
 0x21a   : > { %v4710_v56 = vsel %vm4260_vm8, %v4659_v31, 0.0  ;;  %4274 = vst.msk [vmem:[%s8795_s22 + $0x68] sm:$0xff] %vm4260_vm8, %v8914_v24  ;;  %v3587_v37 = vpop.f32.mrf.mxu1  ;;  %v8921_v47 = vadd.f32 %v4069_v50, %v3738_v48  ;;  %v4662_v52 = vmul.f32 %v8768_v58, %v8914_v24  ;;  %v8934_v48 = vpop.permute.xlu0 %4551 }
 0x21b   : > { %v4711_v41 = vadd.f32 %v4710_v56, %v4709_v2  ;;  %v6439_v44 = vpop.f32.mrf.mxu0  ;;  %v3740_v22 = vadd.f32 %v3587_v37, %v8694_v27  ;;  %9661 = vst [vmem:[#allocation31_spill] sm:$0xff] %v8934_v48 }
 0x21c   : > { %4273 = vst.msk [vmem:[%s8795_s22 + $0x60] sm:$0xff] %vm4260_vm8, %v8921_v47  ;;  %v4661_v36 = vmul.f32 %v8757_v35, %v8921_v47  ;;  %v6377_v21 = vpop.f32.mrf.mxu1  ;;  %v8932_v40 = vadd.f32 %v6439_v44, %v3741_v25  ;;  %v4716_v56 = vsel %vm4260_vm8, %v4662_v52, 0.0  ;;  %v8954_v52 = vpop.permute.xlu1 %4566 }
 0x21d   : > { %v4713_v31 = vadd.f32 %v4712_v42, %v4711_v41  ;;  %v4079_v38 = vpop.f32.mrf.mxu0  ;;  %v3743_v30 = vadd.f32 %v6377_v21, %v8697_v63  ;;  %9663 = vst [vmem:[#allocation30_spill] sm:$0xff] %v8954_v52 }
 0x21e   : > { %v4714_v2 = vsel %vm4260_vm8, %v4661_v36, 0.0  ;;  %4276 = vst.msk [vmem:[%s8795_s22 + $0x78] sm:$0xff] %vm4260_vm8, %v8932_v40  ;;  %v3597_v27 = vpop.f32.mrf.mxu1  ;;  %v8941_v50 = vadd.f32 %v4079_v38, %v3740_v22  ;;  %v4664_v25 = vmul.f32 %v8797_v54, %v8932_v40 }
 0x21f   : > { %v4715_v37 = vadd.f32 %v4714_v2, %v4713_v31  ;;  %v6442_v44 = vpop.f32.mrf.mxu0  ;;  %v3742_v41 = vadd.f32 %v3597_v27, %v8700_v49  ;;  %v8963_v27 = vpop.permute.xlu0 %4561 }
 0x220   : > { %4275 = vst.msk [vmem:[%s8795_s22 + $0x70] sm:$0xff] %vm4260_vm8, %v8941_v50  ;;  %v4663_v63 = vmul.f32 %v8779_v5, %v8941_v50  ;;  %v6380_v42 = vpop.f32.mrf.mxu1  ;;  %v8952_v36 = vadd.f32 %v6442_v44, %v3743_v30 }
 0x221   : > { %v4717_v22 = vadd.f32 %v4716_v56, %v4715_v37  ;;  %v4089_v21 = vpop.f32.mrf.mxu0  ;;  %v3745_v38 = vadd.f32 %v6380_v42, %v8705_v51  ;;  %v4720_v37 = vsel %vm4260_vm8, %v4664_v25, 0.0 }
 0x222   : > { %9662 = vst [vmem:[#allocation33_spill] sm:$0xff] %v8952_v36  ;;  %v4718_v31 = vsel %vm4260_vm8, %v4663_v63, 0.0  ;;  %4278 = vst.msk [vmem:[%s8795_s22 + $0x88] sm:$0xff] %vm4260_vm8, %v8952_v36  ;;  %v3607_v49 = vpop.f32.mrf.mxu1  ;;  %v8961_v2 = vadd.f32 %v4089_v21, %v3742_v41  ;;  %v4666_v30 = vmul.f32 %v8818_v15, %v8952_v36  ;;  %v8984_v36 = vpop.permute.xlu1 %4576 }
 0x223   : > { %v4719_v54 = vadd.f32 %v4718_v31, %v4717_v22  ;;  %v6445_v56 = vpop.f32.mrf.mxu0  ;;  %v3744_v44 = vadd.f32 %v3607_v49, %v8708_v61  ;;  %9664 = vst [vmem:[#allocation21_spill] sm:$0xff] %v8984_v36 }
 0x224   : > { %4277 = vst.msk [vmem:[%s8795_s22 + $0x80] sm:$0xff] %vm4260_vm8, %v8961_v2  ;;  %v4665_v51 = vmul.f32 %v8520_v23, %v8961_v2  ;;  %v6383_v41 = vpop.f32.mrf.mxu1  ;;  %v8974_v63 = vadd.f32 %v6445_v56, %v3745_v38  ;;  %v4724_v49 = vsel %vm4260_vm8, %v4666_v30, 0.0  ;;  %v8996_v30 = vpop.permute.xlu0 %4571 }
 0x225   : > { %v4721_v42 = vadd.f32 %v4720_v37, %v4719_v54  ;;  %v4099_v22 = vpop.f32.mrf.mxu0  ;;  %v3747_v31 = vadd.f32 %v6383_v41, %v8711_v16  ;;  %9666 = vst [vmem:[#allocation32_spill] sm:$0xff] %v8996_v30 }
 0x226   : > { %v4722_v21 = vsel %vm4260_vm8, %v4665_v51, 0.0  ;;  %4280 = vst.msk [vmem:[%s8795_s22 + $0x98] sm:$0xff] %vm4260_vm8, %v8974_v63  ;;  %v3617_v61 = vpop.f32.mrf.mxu1  ;;  %v8981_v25 = vadd.f32 %v4099_v22, %v3744_v44  ;;  %v4668_v54 = vmul.f32 %v8876_v28, %v8974_v63 }
 0x227   : > { %v4723_v15 = vadd.f32 %v4722_v21, %v4721_v42  ;;  %v6448_v23 = vpop.f32.mrf.mxu0  ;;  %v3746_v38 = vadd.f32 %v3617_v61, %v8716_v18  ;;  %v9667_v61 = vld [vmem:[#allocation8_spill] sm:$0xff] }
 0x228   : > { %4279 = vst.msk [vmem:[%s8795_s22 + $0x90] sm:$0xff] %vm4260_vm8, %v8981_v25  ;;  %v4667_v16 = vmul.f32 %v8845_v14, %v8981_v25  ;;  %v6386_v56 = vpop.f32.mrf.mxu1  ;;  %v8994_v37 = vadd.f32 %v6448_v23, %v3747_v31  ;;  %v4728_v28 = vsel %vm4260_vm8, %v4668_v54, 0.0 }
 0x229   : > { %v4725_v44 = vadd.f32 %v4724_v49, %v4723_v15  ;;  %v4109_v51 = vpop.f32.mrf.mxu0  ;;  %v3749_v42 = vadd.f32 %v6386_v56, %v8719_v9  ;;  %v9668_v15 = vld [vmem:[#allocation17_spill] sm:$0xff] }
 0x22a   : > { %9665 = vst [vmem:[#allocation34_spill] sm:$0xff] %v8994_v37  ;;  %v4726_v41 = vsel %vm4260_vm8, %v4667_v16, 0.0  ;;  %4282 = vst.msk [vmem:[%s8795_s22 + $0xa8] sm:$0xff] %vm4260_vm8, %v8994_v37  ;;  %v3627_v18 = vpop.f32.mrf.mxu1  ;;  %v9003_v22 = vadd.f32 %v4109_v51, %v3746_v38  ;;  %v4670_v23 = vmul.f32 %v9667_v61, %v8994_v37  ;;  %v9016_v51 = vpop.permute.xlu1 %4586 }
 0x22b   : > { %v4727_v21 = vadd.f32 %v4726_v41, %v4725_v44  ;;  %v6451_v31 = vpop.f32.mrf.mxu0  ;;  %v3748_v49 = vadd.f32 %v3627_v18, %v9668_v15  ;;  %9670 = vst [vmem:[#allocation2_spill] sm:$0xff] %v9016_v51  ;;  %v9025_v61 = vpop.permute.xlu0 %4581 }
 0x22c   : > { %4281 = vst.msk [vmem:[%s8795_s22 + $0xa0] sm:$0xff] %vm4260_vm8, %v9003_v22  ;;  %v4669_v9 = vmul.f32 %v8903_v59, %v9003_v22  ;;  %v6389_v16 = vpop.f32.mrf.mxu1  ;;  %v9014_v56 = vadd.f32 %v6451_v31, %v3749_v42  ;;  %9671 = vst [vmem:[#allocation4_spill] sm:$0xff] %v9025_v61  ;;  %v4732_v42 = vsel %vm4260_vm8, %v4670_v23, 0.0 }
 0x22d   : > { %v4729_v38 = vadd.f32 %v4728_v28, %v4727_v21  ;;  %v4119_v44 = vpop.f32.mrf.mxu0  ;;  %v3751_v54 = vadd.f32 %v6389_v16, %v8727_v55  ;;  %v9672_v21 = vld [vmem:[#allocation15_spill] sm:$0xff] }
 0x22e   : > { %9669 = vst [vmem:[#allocation35_spill] sm:$0xff] %v9014_v56  ;;  %v4730_v41 = vsel %vm4260_vm8, %v4669_v9, 0.0  ;;  %4284 = vst.msk [vmem:[%s8795_s22 + $0xb8] sm:$0xff] %vm4260_vm8, %v9014_v56  ;;  %v3637_v18 = vpop.f32.mrf.mxu1  ;;  %v9023_v15 = vadd.f32 %v4119_v44, %v3748_v49  ;;  %v4672_v59 = vmul.f32 %v9672_v21, %v9014_v56 }
 0x22f   : > { %v4731_v31 = vadd.f32 %v4730_v41, %v4729_v38  ;;  %v6454_v28 = vpop.f32.mrf.mxu0  ;;  %v3750_v9 = vadd.f32 %v3637_v18, %v8730_v39  ;;  %v9673_v38 = vld [vmem:[#allocation9_spill] sm:$0xff] }
 0x230   : > { %4283 = vst.msk [vmem:[%s8795_s22 + $0xb0] sm:$0xff] %vm4260_vm8, %v9023_v15  ;;  %v4671_v55 = vmul.f32 %v8934_v48, %v9023_v15  ;;  %v6392_v49 = vpop.f32.mrf.mxu1  ;;  %v9036_v16 = vadd.f32 %v6454_v28, %v3751_v54  ;;  %v9047_v54 = vpop.permute.xlu1 %4596 }
 0x231   : > { %v4733_v44 = vadd.f32 %v4732_v42, %v4731_v31  ;;  %v4129_v37 = vpop.f32.mrf.mxu0  ;;  %v3753_v41 = vadd.f32 %v6392_v49, %v9673_v38  ;;  %v4736_v42 = vsel %vm4260_vm8, %v4672_v59, 0.0 }
 0x232   : > { %v4734_v23 = vsel %vm4260_vm8, %v4671_v55, 0.0  ;;  %4286 = vst.msk [vmem:[%s8795_s22 + $0xc8] sm:$0xff] %vm4260_vm8, %v9036_v16  ;;  %v3647_v39 = vpop.f32.mrf.mxu1  ;;  %v9043_v18 = vadd.f32 %v4129_v37, %v3750_v9  ;;  %v4674_v48 = vmul.f32 %v8954_v52, %v9036_v16  ;;  %v9058_v55 = vpop.permute.xlu0 %4591 }
 0x233   : > { %v4735_v21 = vadd.f32 %v4734_v23, %v4733_v44  ;;  %v6457_v56 = vpop.f32.mrf.mxu0  ;;  %v3752_v31 = vadd.f32 %v3647_v39, %v8738_v17 }
 0x234   : > { %4285 = vst.msk [vmem:[%s8795_s22 + $0xc0] sm:$0xff] %vm4260_vm8, %v9043_v18  ;;  %v4673_v28 = vmul.f32 %v8963_v27, %v9043_v18  ;;  %v6395_v37 = vpop.f32.mrf.mxu1  ;;  %v9056_v9 = vadd.f32 %v6457_v56, %v3753_v41  ;;  %v4740_v39 = vsel %vm4260_vm8, %v4674_v48, 0.0  ;;  %v9078_v48 = vpop.permute.xlu1 %4606 }
 0x235   : > { %v4737_v49 = vadd.f32 %v4736_v42, %v4735_v21  ;;  %v4139_v44 = vpop.f32.mrf.mxu0  ;;  %v3755_v59 = vadd.f32 %v6395_v37, %v8741_v57  ;;  %v9674_v21 = vld [vmem:[#allocation11_spill] sm:$0xff]  ;;  %9676 = vst [vmem:[#allocation5_spill] sm:$0xff] %v9078_v48 }
 0x236   : > { %v4738_v23 = vsel %vm4260_vm8, %v4673_v28, 0.0  ;;  %4288 = vst.msk [vmem:[%s8795_s22 + $0xd8] sm:$0xff] %vm4260_vm8, %v9056_v9  ;;  %v3657_v17 = vpop.f32.mrf.mxu1  ;;  %v9065_v38 = vadd.f32 %v4139_v44, %v3752_v31  ;;  %v4676_v41 = vmul.f32 %v8984_v36, %v9056_v9  ;;  %v9087_v36 = vpop.permute.xlu0 %4601 }
 0x237   : > { %v4739_v52 = vadd.f32 %v4738_v23, %v4737_v49  ;;  %v6460_v56 = vpop.f32.mrf.mxu0  ;;  %v3754_v42 = vadd.f32 %v3657_v17, %v9674_v21  ;;  %9678 = vst [vmem:[#allocation17_spill] sm:$0xff] %v9087_v36 }
 0x238   : > { %4287 = vst.msk [vmem:[%s8795_s22 + $0xd0] sm:$0xff] %vm4260_vm8, %v9065_v38  ;;  %v4675_v57 = vmul.f32 %v8996_v30, %v9065_v38  ;;  %v6398_v28 = vpop.f32.mrf.mxu1  ;;  %v9076_v37 = vadd.f32 %v6460_v56, %v3755_v59 }
 0x239   : > { %v4741_v31 = vadd.f32 %v4740_v39, %v4739_v52  ;;  %v4149_v44 = vpop.f32.mrf.mxu0  ;;  %v3757_v23 = vadd.f32 %v6398_v28, %v8749_v26  ;;  %v4744_v39 = vsel %vm4260_vm8, %v4676_v41, 0.0 }
 0x23a   : > { %9675 = vst [vmem:[#allocation12_spill] sm:$0xff] %v9076_v37  ;;  %v4742_v49 = vsel %vm4260_vm8, %v4675_v57, 0.0  ;;  %4290 = vst.msk [vmem:[%s8795_s22 + $0xe8] sm:$0xff] %vm4260_vm8, %v9076_v37  ;;  %v3667_v17 = vpop.f32.mrf.mxu1  ;;  %v9085_v21 = vadd.f32 %v4149_v44, %v3754_v42  ;;  %v4678_v52 = vmul.f32 %v9016_v51, %v9076_v37 }
 0x23b   : > { %v4743_v30 = vadd.f32 %v4742_v49, %v4741_v31  ;;  %v6463_v59 = vpop.f32.mrf.mxu0  ;;  %v3756_v56 = vadd.f32 %v3667_v17, %v8752_v12  ;;  %v9679_v49 = vld [vmem:[#allocation25_spill] sm:$0xff] }
 0x23c   : > { %9677 = vst [vmem:[#allocation3_spill] sm:$0xff] %v9085_v21  ;;  %4289 = vst.msk [vmem:[%s8795_s22 + $0xe0] sm:$0xff] %vm4260_vm8, %v9085_v21  ;;  %v4677_v26 = vmul.f32 %v9025_v61, %v9085_v21  ;;  %v6401_v42 = vpop.f32.mrf.mxu1  ;;  %v9098_v57 = vadd.f32 %v6463_v59, %v3757_v23  ;;  %v4748_v17 = vsel %vm4260_vm8, %v4678_v52, 0.0  ;;  %v9108_v21 = vpop.permute.xlu1 %4616 }
 0x23d   : > { %v4745_v28 = vadd.f32 %v4744_v39, %v4743_v30  ;;  %v4159_v31 = vpop.f32.mrf.mxu0  ;;  %v3759_v51 = vadd.f32 %v6401_v42, %v9679_v49  ;;  %9680 = vst [vmem:[#allocation9_spill] sm:$0xff] %v9108_v21  ;;  %v9120_v52 = vpop.permute.xlu0 %4611 }
 0x23e   : > { %v4746_v44 = vsel %vm4260_vm8, %v4677_v26, 0.0  ;;  %4292 = vst.msk [vmem:[%s8795_s22 + $0xf8] sm:$0xff] %vm4260_vm8, %v9098_v57  ;;  %v3677_v12 = vpop.f32.mrf.mxu1  ;;  %v9105_v41 = vadd.f32 %v4159_v31, %v3756_v56  ;;  %v4680_v30 = vmul.f32 %v9047_v54, %v9098_v57  ;;  %9681 = vst [vmem:[#allocation11_spill] sm:$0xff] %v9120_v52 }
 0x23f   : > { %v4747_v61 = vadd.f32 %v4746_v44, %v4745_v28  ;;  %v6466_v37 = vpop.f32.mrf.mxu0  ;;  %v3758_v23 = vadd.f32 %v3677_v12, %v8760_v53 }
 0x240   : > { %4291 = vst.msk [vmem:[%s8795_s22 + $0xf0] sm:$0xff] %vm4260_vm8, %v9105_v41  ;;  %v4679_v59 = vmul.f32 %v9058_v55, %v9105_v41  ;;  %v6404_v39 = vpop.f32.mrf.mxu1  ;;  %v9118_v56 = vadd.f32 %v6466_v37, %v3759_v51  ;;  %v4752_v12 = vsel %vm4260_vm8, %v4680_v30, 0.0 }
 0x241   : > { %v4749_v26 = vadd.f32 %v4748_v17, %v4747_v61  ;;  %v4169_v42 = vpop.f32.mrf.mxu0  ;;  %v3761_v31 = vadd.f32 %v6404_v39, %v8763_v1 }
 0x242   : > { %v4750_v28 = vsel %vm4260_vm8, %v4679_v59, 0.0  ;;  %4294 = vst.msk [vmem:[%s8795_s22 + $0x108] sm:$0xff] %vm4260_vm8, %v9118_v56  ;;  %v3687_v53 = vpop.f32.mrf.mxu1  ;;  %v9127_v44 = vadd.f32 %v4169_v42, %v3758_v23  ;;  %v4682_v51 = vmul.f32 %v9078_v48, %v9118_v56  ;;  %v9684_v48 = vld [vmem:[#allocation10_spill] sm:$0xff] }
 0x243   : > { %v4751_v49 = vadd.f32 %v4750_v28, %v4749_v26  ;;  %v6469_v37 = vpop.f32.mrf.mxu0  ;;  %v3760_v61 = vadd.f32 %v3687_v53, %v8766_v29  ;;  %v9140_v26 = vpop.permute.xlu1 %4626 }
 0x244   : > { %4293 = vst.msk [vmem:[%s8795_s22 + $0x100] sm:$0xff] %vm4260_vm8, %v9127_v44  ;;  %v4681_v1 = vmul.f32 %v9087_v36, %v9127_v44  ;;  %v6407_v17 = vpop.f32.mrf.mxu1  ;;  %v9138_v59 = vadd.f32 %v6469_v37, %v3761_v31  ;;  %9682 = vst [vmem:[#allocation25_spill] sm:$0xff] %v9140_v26  ;;  %v9149_v53 = vpop.permute.xlu0 %4621  ;;  %v4756_v31 = vsel %vm4260_vm8, %v4682_v51, 0.0 }
 0x245   : > { %v4753_v23 = vadd.f32 %v4752_v12, %v4751_v49  ;;  %v4179_v39 = vpop.f32.mrf.mxu0  ;;  %v3763_v30 = vadd.f32 %v6407_v17, %v8771_v13  ;;  %9683 = vst [vmem:[#allocation36_spill] sm:$0xff] %v9149_v53 }
 0x246   : > { %v4754_v42 = vsel %vm4260_vm8, %v4681_v1, 0.0  ;;  %4296 = vst.msk [vmem:[%s8795_s22 + $0x118] sm:$0xff] %vm4260_vm8, %v9138_v59  ;;  %v3697_v29 = vpop.f32.mrf.mxu1  ;;  %v9147_v28 = vadd.f32 %v4179_v39, %v3760_v61  ;;  %v4684_v12 = vmul.f32 %v9108_v21, %v9138_v59 }
 0x247   : > { %v4755_v37 = vadd.f32 %v4754_v42, %v4753_v23  ;;  %v6472_v49 = vpop.f32.mrf.mxu0  ;;  %v3762_v1 = vadd.f32 %v3697_v29, %v9684_v48 }
 0x248   : > { %4295 = vst.msk [vmem:[%s8795_s22 + $0x110] sm:$0xff] %vm4260_vm8, %v9147_v28  ;;  %v4683_v13 = vmul.f32 %v9120_v52, %v9147_v28  ;;  %v6410_v61 = vpop.f32.mrf.mxu1  ;;  %v9160_v17 = vadd.f32 %v6472_v49, %v3763_v30  ;;  %v9171_v30 = vpop.permute.xlu1 %4636 }
 0x249   : > { %v4757_v39 = vadd.f32 %v4756_v31, %v4755_v37  ;;  %v4189_v36 = vpop.f32.mrf.mxu0  ;;  %v3765_v23 = vadd.f32 %v6410_v61, %v8777_v43  ;;  %9685 = vst [vmem:[#allocation10_spill] sm:$0xff] %v9171_v30  ;;  %v4760_v31 = vsel %vm4260_vm8, %v4684_v12, 0.0 }
 0x24a   : > { %v4758_v51 = vsel %vm4260_vm8, %v4683_v13, 0.0  ;;  %4298 = vst.msk [vmem:[%s8795_s22 + $0x128] sm:$0xff] %vm4260_vm8, %v9160_v17  ;;  %v3707_v48 = vpop.f32.mrf.mxu1  ;;  %v9167_v42 = vadd.f32 %v4189_v36, %v3762_v1  ;;  %v4686_v21 = vmul.f32 %v9140_v26, %v9160_v17  ;;  %v9182_v1 = vpop.permute.xlu0 %4631 }
 0x24b   : > { %v4759_v29 = vadd.f32 %v4758_v51, %v4757_v39  ;;  %v6475_v52 = vpop.f32.mrf.mxu0  ;;  %v3764_v37 = vadd.f32 %v3707_v48, %v8782_v62  ;;  %9687 = vst [vmem:[#allocation38_spill] sm:$0xff] %v9182_v1 }
 0x24c   : > { %4297 = vst.msk [vmem:[%s8795_s22 + $0x120] sm:$0xff] %vm4260_vm8, %v9167_v42  ;;  %v4685_v43 = vmul.f32 %v9149_v53, %v9167_v42  ;;  %v6413_v36 = vpop.f32.mrf.mxu1  ;;  %v9180_v49 = vadd.f32 %v6475_v52, %v3765_v23  ;;  %v4764_v48 = vsel %vm4260_vm8, %v4686_v21, 0.0 }
 0x24d   : > { %v4761_v13 = vadd.f32 %v4760_v31, %v4759_v29  ;;  %v4199_v61 = vpop.f32.mrf.mxu0  ;;  %v3767_v12 = vadd.f32 %v6413_v36, %v8785_v19 }
 0x24e   : > { %9686 = vst [vmem:[#allocation37_spill] sm:$0xff] %v9180_v49  ;;  %v4762_v39 = vsel %vm4260_vm8, %v4685_v43, 0.0  ;;  %4300 = vst.msk [vmem:[%s8795_s22 + $0x138] sm:$0xff] %vm4260_vm8, %v9180_v49  ;;  %v3717_v62 = vpop.f32.mrf.mxu1  ;;  %v9189_v51 = vadd.f32 %v4199_v61, %v3764_v37  ;;  %v4688_v23 = vmul.f32 %v9171_v30, %v9180_v49  ;;  %v4642_v61 = vpop.permute.xlu0 %4641 }
 0x24f   : > { %v4763_v26 = vadd.f32 %v4762_v39, %v4761_v13  ;;  %v6478_v52 = vpop.f32.mrf.mxu0  ;;  %v3766_v29 = vadd.f32 %v3717_v62, %v8788_v10  ;;  %v4647_v13 = vpop.permute.xlu1 %4646 }
 0x250   : > { %9688 = vst [vmem:[#allocation39_spill] sm:$0xff] %v9189_v51  ;;  %4299 = vst.msk [vmem:[%s8795_s22 + $0x130] sm:$0xff] %vm4260_vm8, %v9189_v51  ;;  %v4687_v19 = vmul.f32 %v9182_v1, %v9189_v51  ;;  %v4259_v31 = vadd.f32 %v6478_v52, %v3767_v12  ;;  %v4768_v30 = vsel %vm4260_vm8, %v4688_v23, 0.0 }
 0x251   : > { %v4765_v43 = vadd.f32 %v4764_v48, %v4763_v26  ;;  %v4209_v37 = vpop.f32.mrf.mxu0 }
 0x252   : > { %v4766_v36 = vsel %vm4260_vm8, %v4687_v19, 0.0  ;;  %4302 = vst.msk [vmem:[%s8795_s22 + $0x148] sm:$0xff] %vm4260_vm8, %v4259_v31  ;;  %v4258_v21 = vadd.f32 %v4209_v37, %v3766_v29  ;;  %v4690_v10 = vmul.f32 %v4647_v13, %v4259_v31  ;;  %v4780_v19 = vstv %s4438_s26 }
 0x253   : > { %v4767_v39 = vadd.f32 %v4766_v36, %v4765_v43  ;;  %6496 = vrcp.f32 %v4780_v19  ;;  %v9693_v19 = vld [vmem:[#allocation6_spill] sm:$0xff] }
 0x254   : > { %4301 = vst.msk [vmem:[%s8795_s22 + $0x140] sm:$0xff] %vm4260_vm8, %v4258_v21  ;;  %v4689_v62 = vmul.f32 %v4642_v61, %v4258_v21  ;;  %v4772_v26 = vsel %vm4260_vm8, %v4690_v10, 0.0 }
 0x255   : > { %v4769_v49 = vadd.f32 %v4768_v30, %v4767_v39  ;;  %v9689_v39 = vld [vmem:[#allocation23_spill] sm:$0xff] }
 0x256   : > { %v4770_v1 = vsel %vm4260_vm8, %v4689_v62, 0.0 }
 0x257   : > { %v4771_v12 = vadd.f32 %v4770_v1, %v4769_v49 }
 0x259   : > { %v4773_v48 = vadd.f32 %v4772_v26, %v4771_v12 }
 0x25b   : > { %v4774_v52 = vrot.slane %v4773_v48, 4 }
 0x25d   : > { %v4775_v29 = vadd.f32 %v4774_v52, %v4773_v48  ;;  %v9691_v52 = vld [vmem:[#allocation18_spill] sm:$0xff] }
 0x25f   : > { %v4776_v43 = vrot.slane %v4775_v29, 2 }
 0x260   : > { %v6497_v53 = vpop.eup %6496 }
 0x261   : > { %v4777_v23 = vadd.f32 %v4776_v43, %v4775_v29  ;;  %v9692_v29 = vld [vmem:[#allocation7_spill] sm:$0xff] }
 0x263   : > { %v4778_v37 = vrot.slane %v4777_v23, 1 }
 0x265   : > { %v4779_v36 = vadd.f32 %v4778_v37, %v4777_v23 }
 0x267   : > { %v9208_v51 = vmul.f32 %v6497_v53, %v4779_v36  ;;  %v9690_v53 = vld [vmem:[#allocation29_spill] sm:$0xff] }
 0x269   : > { %v4823_v30 = vsub.f32 %v4258_v21, %v9208_v51  ;;  %v4824_v49 = vsub.f32 %v4259_v31, %v9208_v51  ;;  %v4783_v1 = vsub.f32 %v8806_v60, %v9208_v51  ;;  %v4784_v10 = vsub.f32 %v9689_v39, %v9208_v51 }
 0x26a   : > { %v4785_v26 = vsub.f32 %v8825_v3, %v9208_v51  ;;  %v4786_v48 = vsub.f32 %v9690_v53, %v9208_v51  ;;  %v4787_v60 = vsub.f32 %v8843_v32, %v9208_v51  ;;  %v4789_v3 = vsub.f32 %v8863_v6, %v9208_v51 }
 0x26b   : > { %v9216_v62 = vmul.f32 %v4823_v30, %v4642_v61  ;;  %v9218_v12 = vmul.f32 %v4824_v49, %v4647_v13  ;;  %v4825_v21 = vmul.f32 %v4783_v1, %v9691_v52  ;;  %v4826_v31 = vmul.f32 %v4784_v10, %v9692_v29  ;;  %v9694_v13 = vld [vmem:[#allocation13_spill] sm:$0xff]  ;;  %v9695_v30 = vld [vmem:[#allocation20_spill] sm:$0xff] }
 0x26c   : > { %v4827_v43 = vmul.f32 %v4785_v26, %v9693_v19  ;;  %v4788_v61 = vsub.f32 %v8836_v45, %v9208_v51  ;;  %v4828_v23 = vmul.f32 %v4786_v48, %v9694_v13  ;;  %v4829_v49 = vmul.f32 %v4787_v60, %v9695_v30  ;;  %v9696_v10 = vld [vmem:[#allocation16_spill] sm:$0xff] }
 0x26d   : > { %v4867_v37 = vmul.f32 %v4825_v21, %v4825_v21  ;;  %v4868_v36 = vmul.f32 %v4826_v31, %v4826_v31  ;;  %v4790_v39 = vsub.f32 %v8856_v46, %v9208_v51  ;;  %v4791_v48 = vsub.f32 %v8883_v11, %v9208_v51 }
 0x26e   : > { %v4869_v1 = vmul.f32 %v4827_v43, %v4827_v43  ;;  %v4830_v32 = vmul.f32 %v4788_v61, %v9696_v10  ;;  %v4870_v53 = vmul.f32 %v4828_v23, %v4828_v23  ;;  %v4831_v21 = vmul.f32 %v4789_v3, %v8691_v0  ;;  %v9697_v3 = vld [vmem:[#allocation22_spill] sm:$0xff] }
 0x26f   : > { %v4909_v26 = vsel %vm4260_vm8, %v4867_v37, 0.0  ;;  %v4910_v45 = vsel %vm4260_vm8, %v4868_v36, 0.0  ;;  %v4871_v6 = vmul.f32 %v4829_v49, %v4829_v49  ;;  %v4792_v46 = vsub.f32 %v8874_v34, %v9208_v51 }
 0x270   : > { %v4911_v52 = vadd.f32 %v4910_v45, %v4909_v26  ;;  %v4912_v29 = vsel %vm4260_vm8, %v4869_v1, 0.0  ;;  %v4832_v60 = vmul.f32 %v4790_v39, %v8702_v4  ;;  %v4872_v19 = vmul.f32 %v4830_v32, %v4830_v32 }
 0x271   : > { %v4914_v43 = vsel %vm4260_vm8, %v4870_v53, 0.0  ;;  %v4793_v13 = vsub.f32 %v8901_v33, %v9208_v51  ;;  %v4833_v11 = vmul.f32 %v4791_v48, %v8713_v8  ;;  %v4873_v23 = vmul.f32 %v4831_v21, %v4831_v21  ;;  %v9698_v53 = vld [vmem:[#allocation19_spill] sm:$0xff] }
 0x272   : > { %v4913_v31 = vadd.f32 %v4912_v29, %v4911_v52  ;;  %v4916_v0 = vsel %vm4260_vm8, %v4871_v6, 0.0  ;;  %v4794_v36 = vsub.f32 %v8894_v7, %v9208_v51  ;;  %v4834_v34 = vmul.f32 %v4792_v46, %v9697_v3  ;;  %v9701_v3 = vld [vmem:[#allocation14_spill] sm:$0xff] }
 0x273   : > { %v4874_v30 = vmul.f32 %v4832_v60, %v4832_v60  ;;  %v4918_v4 = vsel %vm4260_vm8, %v4872_v19, 0.0  ;;  %v4795_v1 = vsub.f32 %v8921_v47, %v9208_v51  ;;  %v4835_v33 = vmul.f32 %v4793_v13, %v8735_v20  ;;  %v9699_v13 = vld [vmem:[#allocation33_spill] sm:$0xff] }
 0x274   : > { %v4915_v61 = vadd.f32 %v4914_v43, %v4913_v31  ;;  %v4875_v39 = vmul.f32 %v4833_v11, %v4833_v11  ;;  %v4920_v8 = vsel %vm4260_vm8, %v4873_v23, 0.0  ;;  %v4796_v32 = vsub.f32 %v8914_v24, %v9208_v51  ;;  %v9700_v23 = vld [vmem:[#allocation28_spill] sm:$0xff] }
 0x275   : > { %v4836_v7 = vmul.f32 %v4794_v36, %v9698_v53  ;;  %v4876_v26 = vmul.f32 %v4834_v34, %v4834_v34  ;;  %v4922_v45 = vsel %vm4260_vm8, %v4874_v30, 0.0  ;;  %v4797_v48 = vsub.f32 %v8941_v50, %v9208_v51 }
 0x276   : > { %v4917_v37 = vadd.f32 %v4916_v0, %v4915_v61  ;;  %v4837_v47 = vmul.f32 %v4795_v1, %v8757_v35  ;;  %v4877_v21 = vmul.f32 %v4835_v33, %v4835_v33  ;;  %v4924_v20 = vsel %vm4260_vm8, %v4875_v39, 0.0 }
 0x277   : > { %v4798_v29 = vsub.f32 %v8932_v40, %v9208_v51  ;;  %v4838_v24 = vmul.f32 %v4796_v32, %v8768_v58  ;;  %v4878_v31 = vmul.f32 %v4836_v7, %v4836_v7  ;;  %v4926_v46 = vsel %vm4260_vm8, %v4876_v26, 0.0  ;;  %v9703_v26 = vld [vmem:[#allocation34_spill] sm:$0xff] }
 0x278   : > { %v4919_v49 = vadd.f32 %v4918_v4, %v4917_v37  ;;  %v4799_v19 = vsub.f32 %v8961_v2, %v9208_v51  ;;  %v4839_v50 = vmul.f32 %v4797_v48, %v8779_v5  ;;  %v4879_v43 = vmul.f32 %v4837_v47, %v4837_v47 }
 0x279   : > { %v4928_v35 = vsel %vm4260_vm8, %v4877_v21, 0.0  ;;  %v4800_v11 = vsub.f32 %v9699_v13, %v9208_v51  ;;  %v4840_v40 = vmul.f32 %v4798_v29, %v9700_v23  ;;  %v4880_v0 = vmul.f32 %v4838_v24, %v4838_v24  ;;  %v9708_v13 = vld [vmem:[#allocation31_spill] sm:$0xff] }
 0x27a   : > { %v4921_v10 = vadd.f32 %v4920_v8, %v4919_v49  ;;  %v4930_v58 = vsel %vm4260_vm8, %v4878_v31, 0.0  ;;  %v4801_v36 = vsub.f32 %v8981_v25, %v9208_v51  ;;  %v4841_v2 = vmul.f32 %v4799_v19, %v9701_v3  ;;  %v9702_v49 = vld [vmem:[#allocation26_spill] sm:$0xff]  ;;  %v9706_v31 = vld [vmem:[#allocation35_spill] sm:$0xff] }
 0x27b   : > { %v4881_v34 = vmul.f32 %v4839_v50, %v4839_v50  ;;  %v4932_v5 = vsel %vm4260_vm8, %v4879_v43, 0.0  ;;  %v4802_v4 = vsub.f32 %v8974_v63, %v9208_v51  ;;  %v4842_v1 = vmul.f32 %v4800_v11, %v9702_v49 }
 0x27c   : > { %v4923_v52 = vadd.f32 %v4922_v45, %v4921_v10  ;;  %v4882_v33 = vmul.f32 %v4840_v40, %v4840_v40  ;;  %v4934_v39 = vsel %vm4260_vm8, %v4880_v0, 0.0  ;;  %v4803_v10 = vsub.f32 %v9003_v22, %v9208_v51 }
 0x27d   : > { %v4843_v25 = vmul.f32 %v4801_v36, %v8845_v14  ;;  %v4883_v32 = vmul.f32 %v4841_v2, %v4841_v2  ;;  %v4936_v53 = vsel %vm4260_vm8, %v4881_v34, 0.0  ;;  %v4804_v45 = vsub.f32 %v9703_v26, %v9208_v51  ;;  %v9713_v26 = vld [vmem:[#allocation12_spill] sm:$0xff] }
 0x27e   : > { %v4925_v6 = vadd.f32 %v4924_v20, %v4923_v52  ;;  %v9704_v52 = vld [vmem:[#allocation24_spill] sm:$0xff]  ;;  %v4884_v48 = vmul.f32 %v4842_v1, %v4842_v1  ;;  %v4938_v47 = vsel %vm4260_vm8, %v4882_v33, 0.0  ;;  %v4805_v20 = vsub.f32 %v9023_v15, %v9208_v51  ;;  %v9710_v1 = vld [vmem:[#allocation30_spill] sm:$0xff] }
 0x27f   : > { %v4844_v63 = vmul.f32 %v4802_v4, %v9704_v52  ;;  %v4885_v29 = vmul.f32 %v4843_v25, %v4843_v25  ;;  %v4940_v14 = vsel %vm4260_vm8, %v4883_v32, 0.0  ;;  %v4808_v0 = vsub.f32 %v9036_v16, %v9208_v51  ;;  %v9712_v32 = vld [vmem:[#allocation32_spill] sm:$0xff]  ;;  %v9714_v52 = vld [vmem:[#allocation21_spill] sm:$0xff] }
 0x280   : > { %v4927_v60 = vadd.f32 %v4926_v46, %v4925_v6  ;;  %v9705_v6 = vld [vmem:[#allocation27_spill] sm:$0xff]  ;;  %v4806_v46 = vsub.f32 %v9706_v31, %v9208_v51  ;;  %v4942_v43 = vsel %vm4260_vm8, %v4884_v48, 0.0  ;;  %v4847_v15 = vmul.f32 %v4805_v20, %v9708_v13  ;;  %v9715_v20 = vld [vmem:[#allocation4_spill] sm:$0xff]  ;;  %v9716_v31 = vld [vmem:[#allocation2_spill] sm:$0xff] }
 0x281   : > { %v4845_v22 = vmul.f32 %v4803_v10, %v9705_v6  ;;  %v4886_v50 = vmul.f32 %v4844_v63, %v4844_v63  ;;  %v4944_v23 = vsel %vm4260_vm8, %v4885_v29, 0.0  ;;  %v4809_v34 = vsub.f32 %v9065_v38, %v9208_v51  ;;  %v9711_v10 = vld [vmem:[#allocation3_spill] sm:$0xff] }
 0x282   : > { %v4929_v61 = vadd.f32 %v4928_v35, %v4927_v60  ;;  %v9707_v60 = vld [vmem:[#allocation8_spill] sm:$0xff]  ;;  %v4810_v49 = vsub.f32 %v9056_v9, %v9208_v51  ;;  %v4850_v16 = vmul.f32 %v4808_v0, %v9710_v1  ;;  %v4811_v25 = vsub.f32 %v9711_v10, %v9208_v51 }
 0x283   : > { %v4846_v19 = vmul.f32 %v4804_v45, %v9707_v60  ;;  %v4887_v11 = vmul.f32 %v4845_v22, %v4845_v22  ;;  %v4946_v3 = vsel %vm4260_vm8, %v4886_v50, 0.0  ;;  %v4851_v38 = vmul.f32 %v4809_v34, %v9712_v32 }
 0x284   : > { %v4931_v37 = vadd.f32 %v4930_v58, %v4929_v61  ;;  %v4807_v61 = vsub.f32 %v9043_v18, %v9208_v51  ;;  %v9709_v58 = vld [vmem:[#allocation15_spill] sm:$0xff]  ;;  %v4812_v45 = vsub.f32 %v9713_v26, %v9208_v51  ;;  %v4852_v9 = vmul.f32 %v4810_v49, %v9714_v52  ;;  %v9723_v26 = vld [vmem:[#allocation37_spill] sm:$0xff] }
 0x285   : > { %v4888_v36 = vmul.f32 %v4846_v19, %v4846_v19  ;;  %v4892_v63 = vmul.f32 %v4850_v16, %v4850_v16  ;;  %v4853_v6 = vmul.f32 %v4811_v25, %v9715_v20  ;;  %v4893_v22 = vmul.f32 %v4851_v38, %v4851_v38  ;;  %v9721_v25 = vld [vmem:[#allocation39_spill] sm:$0xff]  ;;  %v9722_v38 = vld [vmem:[#allocation36_spill] sm:$0xff]  ;;  %v9724_v52 = vld [vmem:[#allocation25_spill] sm:$0xff] }
 0x286   : > { %v4933_v30 = vadd.f32 %v4932_v5, %v4931_v37  ;;  %v4848_v37 = vmul.f32 %v4806_v46, %v9709_v58  ;;  %v4849_v18 = vmul.f32 %v4807_v61, %v8963_v27  ;;  %v4889_v5 = vmul.f32 %v4847_v15, %v4847_v15  ;;  %v9717_v58 = vld [vmem:[#allocation17_spill] sm:$0xff] }
 0x287   : > { %v4854_v46 = vmul.f32 %v4812_v45, %v9716_v31  ;;  %v4894_v60 = vmul.f32 %v4852_v9, %v4852_v9  ;;  %v4958_v19 = vsel %vm4260_vm8, %v4892_v63, 0.0  ;;  %v4960_v61 = vsel %vm4260_vm8, %v4893_v22, 0.0 }
 0x288   : > { %v4935_v8 = vadd.f32 %v4934_v39, %v4933_v30  ;;  %v4948_v30 = vsel %vm4260_vm8, %v4887_v11, 0.0  ;;  %v4890_v33 = vmul.f32 %v4848_v37, %v4848_v37  ;;  %v4950_v39 = vsel %vm4260_vm8, %v4888_v36, 0.0 }
 0x289   : > { %v4952_v27 = vsel %vm4260_vm8, %v4889_v5, 0.0  ;;  %v4816_v15 = vsub.f32 %v9118_v56, %v9208_v51  ;;  %v4896_v11 = vmul.f32 %v4854_v46, %v4854_v46  ;;  %v4817_v0 = vsub.f32 %v9147_v28, %v9208_v51 }
 0x28a   : > { %v4937_v7 = vadd.f32 %v4936_v53, %v4935_v8  ;;  %v4891_v53 = vmul.f32 %v4849_v18, %v4849_v18  ;;  %v4954_v48 = vsel %vm4260_vm8, %v4890_v33, 0.0  ;;  %v4819_v5 = vsub.f32 %v9167_v42, %v9208_v51  ;;  %v9720_v33 = vld [vmem:[#allocation9_spill] sm:$0xff] }
 0x28b   : > { %v4820_v16 = vsub.f32 %v9160_v17, %v9208_v51  ;;  %v4821_v32 = vsub.f32 %v9721_v25, %v9208_v51  ;;  %v4822_v45 = vsub.f32 %v9723_v26, %v9208_v51 }
 0x28c   : > { %v4939_v21 = vadd.f32 %v4938_v47, %v4937_v7  ;;  %v4956_v29 = vsel %vm4260_vm8, %v4891_v53, 0.0  ;;  %v4861_v42 = vmul.f32 %v4819_v5, %v9722_v38 }
 0x28d   : > { %v4862_v17 = vmul.f32 %v4820_v16, %v9724_v52 }
 0x28e   : > { %v4941_v24 = vadd.f32 %v4940_v14, %v4939_v21  ;;  %v4813_v21 = vsub.f32 %v9105_v41, %v9208_v51  ;;  %v4903_v20 = vmul.f32 %v4861_v42, %v4861_v42 }
 0x290   : > { %v4943_v35 = vadd.f32 %v4942_v43, %v4941_v24  ;;  %v4814_v24 = vsub.f32 %v9098_v57, %v9208_v51  ;;  %v4815_v43 = vsub.f32 %v9127_v44, %v9208_v51  ;;  %v4855_v41 = vmul.f32 %v4813_v21, %v9058_v55 }
 0x292   : > { %v4945_v40 = vadd.f32 %v4944_v23, %v4943_v35  ;;  %v4895_v35 = vmul.f32 %v4853_v6, %v4853_v6  ;;  %v4856_v57 = vmul.f32 %v4814_v24, %v9047_v54  ;;  %v4962_v23 = vsel %vm4260_vm8, %v4894_v60, 0.0 }
 0x293   : > { %v4857_v44 = vmul.f32 %v4815_v43, %v9717_v58  ;;  %v4897_v37 = vmul.f32 %v4855_v41, %v4855_v41  ;;  %v4966_v54 = vsel %vm4260_vm8, %v4896_v11, 0.0  ;;  %v4904_v24 = vmul.f32 %v4862_v17, %v4862_v17 }
 0x294   : > { %v4947_v2 = vadd.f32 %v4946_v3, %v4945_v40  ;;  %v4964_v55 = vsel %vm4260_vm8, %v4895_v35, 0.0  ;;  %v4818_v3 = vsub.f32 %v9138_v59, %v9208_v51  ;;  %v4898_v34 = vmul.f32 %v4856_v57, %v4856_v57 }
 0x295   : > { %v4968_v49 = vsel %vm4260_vm8, %v4897_v37, 0.0  ;;  %v4982_v41 = vsel %vm4260_vm8, %v4904_v24, 0.0  ;;  %v4908_v57 = vmul.f32 %v9218_v12, %v9218_v12 }
 0x296   : > { %v4949_v4 = vadd.f32 %v4948_v30, %v4947_v2  ;;  %v9718_v2 = vld [vmem:[#allocation5_spill] sm:$0xff]  ;;  %v9719_v30 = vld [vmem:[#allocation11_spill] sm:$0xff]  ;;  %v4860_v59 = vmul.f32 %v4818_v3, %v9720_v33 }
 0x297   : > { %v4858_v56 = vmul.f32 %v4816_v15, %v9718_v2  ;;  %v4859_v28 = vmul.f32 %v4817_v0, %v9719_v30  ;;  %v4990_v58 = vsel %vm4260_vm8, %v4908_v57, 0.0 }
 0x298   : > { %v4951_v8 = vadd.f32 %v4950_v39, %v4949_v4  ;;  %v4899_v4 = vmul.f32 %v4857_v44, %v4857_v44  ;;  %v4902_v9 = vmul.f32 %v4860_v59, %v4860_v59 }
 0x299   : > { %v4900_v39 = vmul.f32 %v4858_v56, %v4858_v56  ;;  %v4901_v53 = vmul.f32 %v4859_v28, %v4859_v28 }
 0x29a   : > { %v4953_v7 = vadd.f32 %v4952_v27, %v4951_v8  ;;  %v4970_v8 = vsel %vm4260_vm8, %v4898_v34, 0.0  ;;  %v4972_v27 = vsel %vm4260_vm8, %v4899_v4, 0.0  ;;  %v4978_v31 = vsel %vm4260_vm8, %v4902_v9, 0.0 }
 0x29b   : > { %v4974_v63 = vsel %vm4260_vm8, %v4900_v39, 0.0  ;;  %v4976_v6 = vsel %vm4260_vm8, %v4901_v53, 0.0 }
 0x29c   : > { %v4955_v47 = vadd.f32 %v4954_v48, %v4953_v7 }
 0x29e   : > { %v4957_v14 = vadd.f32 %v4956_v29, %v4955_v47  ;;  %v9725_v47 = vld [vmem:[#allocation38_spill] sm:$0xff] }
 0x29f   : > { %v4863_v21 = vmul.f32 %v4821_v32, %v9725_v47  ;;  %v9726_v29 = vld [vmem:[#allocation10_spill] sm:$0xff] }
 0x2a0   : > { %v4959_v50 = vadd.f32 %v4958_v19, %v4957_v14  ;;  %v4864_v14 = vmul.f32 %v4822_v45, %v9726_v29  ;;  %v4980_v19 = vsel %vm4260_vm8, %v4903_v20, 0.0 }
 0x2a1   : > { %v4905_v60 = vmul.f32 %v4863_v21, %v4863_v21 }
 0x2a2   : > { %v4961_v13 = vadd.f32 %v4960_v61, %v4959_v50  ;;  %v4906_v43 = vmul.f32 %v4864_v14, %v4864_v14  ;;  %v4907_v61 = vmul.f32 %v9216_v62, %v9216_v62 }
 0x2a4   : > { %v4963_v40 = vadd.f32 %v4962_v23, %v4961_v13  ;;  %v4984_v13 = vsel %vm4260_vm8, %v4905_v60, 0.0  ;;  %v4986_v11 = vsel %vm4260_vm8, %v4906_v43, 0.0 }
 0x2a6   : > { %v4965_v36 = vadd.f32 %v4964_v55, %v4963_v40  ;;  %v4988_v40 = vsel %vm4260_vm8, %v4907_v61, 0.0 }
 0x2a8   : > { %v4967_v18 = vadd.f32 %v4966_v54, %v4965_v36 }
 0x2aa   : > { %v4969_v1 = vadd.f32 %v4968_v49, %v4967_v18 }
 0x2ac   : > { %v4971_v10 = vadd.f32 %v4970_v8, %v4969_v1 }
 0x2ae   : > { %v4973_v7 = vadd.f32 %v4972_v27, %v4971_v10 }
 0x2b0   : > { %v4975_v48 = vadd.f32 %v4974_v63, %v4973_v7 }
 0x2b2   : > { %v4977_v22 = vadd.f32 %v4976_v6, %v4975_v48 }
 0x2b4   : > { %v4979_v46 = vadd.f32 %v4978_v31, %v4977_v22 }
 0x2b6   : > { %v4981_v50 = vadd.f32 %v4980_v19, %v4979_v46 }
 0x2b8   : > { %v4983_v35 = vadd.f32 %v4982_v41, %v4981_v50 }
 0x2ba   : > { %v4985_v15 = vadd.f32 %v4984_v13, %v4983_v35 }
 0x2bc   : > { %v4987_v23 = vadd.f32 %v4986_v11, %v4985_v15 }
 0x2be   : > { %v4989_v0 = vadd.f32 %v4988_v40, %v4987_v23 }
 0x2c0   : > { %v4991_v44 = vadd.f32 %v4990_v58, %v4989_v0 }
 0x2c2   : > { %v4992_v37 = vrot.slane %v4991_v44, 4 }
 0x2c4   : > { %v4993_v55 = vadd.f32 %v4992_v37, %v4991_v44 }
 0x2c6   : > { %v4994_v36 = vrot.slane %v4993_v55, 2 }
 0x2c8   : > { %v4995_v3 = vadd.f32 %v4994_v36, %v4993_v55 }
 0x2ca   : > { %v4996_v62 = vrot.slane %v4995_v3, 1 }
 0x2cc   : > { %v4997_v2 = vadd.f32 %v4996_v62, %v4995_v3 }
 0x2ce   : > { %v4999_v12 = vsel %vm4998_vm9, %v9208_v51, %v4997_v2 }
 0x2cf   : > { %v5000_v56 = vsel %vm3770_vm7, %v4999_v12, 0.0 }
 0x2d0   : > { %5001 = vst.msk [vmem:[%s231_s30] sm:$0xff] %vm4260_vm8, %v5000_v56 }
 0x2d1 PF: > { %s15_s15 = sadd.s32 1, %s6568_s15  }
 0x2d2   : > { %p12_p5 = scmp.ge.s32.totalorder %s15_s15, 4  }
 0x2d4   :  { %14 = sbr.rel (!%p12_p5) target bundleno = 1 (0x1), region = 85 }

</bundles_post_ra>
